<compile_context>
chip_gen: v6e
topology: v6e:2x2x1
jax: 0.10.0
libtpu: 0.0.40
codegen_flags: <defaults>
</compile_context>

<pallas_src>
import jax
import jax.numpy as jnp
from jax.experimental import pallas as pl
from jax.experimental.pallas import tpu as pltpu


# ----------------------------- model config --------------------------------
INPUT_SIZE = 1
HIDDEN_SIZE = 32      # small-shape stand-in for 256
NUM_LAYERS = 3
FC_DIM = 128
PRED_STEPS = 20
BATCH = 2
SEQ = 8

GATES = 4 * HIDDEN_SIZE            # 128
SLAB_COLS = GATES                  # all packed blocks are 128 lanes wide
assert GATES == FC_DIM, "stand-in shapes assume 4H == FC_DIM (single-slab packing)"
assert INPUT_SIZE == 1, "kernel specializes the K=1 input projection"


# ----------------------------- packed-param layout --------------------------
def _param_layout():
    """Static row offsets of every parameter block inside the packed slab."""
    layout = {}
    off = 0

    def add(name, rows):
        nonlocal off
        layout[name] = off
        off += rows

    add("w_ih_0", INPUT_SIZE)          # (In, 4H)
    add("w_hh_0", HIDDEN_SIZE)         # (H, 4H)
    add("b_0", 1)                      # (1, 4H)  b_ih + b_hh
    for l in range(1, NUM_LAYERS):
        add(f"w_ih_{l}", HIDDEN_SIZE)
        add(f"w_hh_{l}", HIDDEN_SIZE)
        add(f"b_{l}", 1)
    add("fc_w", HIDDEN_SIZE)           # (H, 128)
    add("fc_b", 1)                     # (1, 128)
    add("fc2_w", FC_DIM)               # (128, 128) lane-padded from (128, 20)
    add("fc2_b", 1)                    # (1, 128)  lane-padded from (20,)
    return layout, off


LAYOUT, SLAB_ROWS = _param_layout()    # 326 rows x 128 cols f32 (~167 KiB)


def pack_params(params):
    """One-time packing of all weights/biases into a single (R, 128) f32 slab.

    Runs OUTSIDE the per-call jitted forward: all .T transposes, bias sums and
    fc2 lane padding happen exactly once.
    """
    blocks = []
    blocks.append(params["w_ih_0"].T.astype(jnp.float32))                       # (1, 128)
    blocks.append(params["w_hh_0"].T.astype(jnp.float32))                       # (32, 128)
    blocks.append((params["b_ih_0"] + params["b_hh_0"])[None].astype(jnp.float32))
    for l in range(1, NUM_LAYERS):
        blocks.append(params[f"w_ih_{l}"].T.astype(jnp.float32))                # (32, 128)
        blocks.append(params[f"w_hh_{l}"].T.astype(jnp.float32))                # (32, 128)
        blocks.append((params[f"b_ih_{l}"] + params[f"b_hh_{l}"])[None].astype(jnp.float32))
    blocks.append(params["fc_w"].T.astype(jnp.float32))                         # (32, 128)
    blocks.append(params["fc_b"][None].astype(jnp.float32))                     # (1, 128)
    fc2w_t = params["fc2_w"].T.astype(jnp.float32)                              # (128, 20)
    blocks.append(jnp.pad(fc2w_t, ((0, 0), (0, SLAB_COLS - PRED_STEPS))))       # (128, 128)
    fc2b = jnp.pad(params["fc2_b"].astype(jnp.float32),
                   (0, SLAB_COLS - PRED_STEPS))[None]                           # (1, 128)
    blocks.append(fc2b)

    slab = jnp.concatenate(blocks, axis=0)
    assert slab.shape == (SLAB_ROWS, SLAB_COLS)
    return jax.device_put(slab)


# ----------------------------- kernel ---------------------------------------
def _make_kernel(num_layers, seq_len, hidden, batch):
    H = hidden
    B = batch
    T = seq_len

    def kernel(x_ref, w_ref, out_ref):
        # x_ref: (B, T) f32   w_ref: (SLAB_ROWS, 128) f32   out_ref: (B, 128)

        def w(name, rows):
            # Static row slice of the packed slab, loaded at the use site so
            # weight live ranges do not span the unrolled time loop.
            off = LAYOUT[name]
            return w_ref[off:off + rows, :]

        def sigmoid(z):
            # exact: sigmoid(z) = 0.5 * tanh(0.5 z) + 0.5 ; single EUP push.
            return 0.5 * jnp.tanh(0.5 * z) + 0.5

        def cell(gates, c_prev):
            # One full-width sigmoid over all 4 gate blocks (1 EUP push),
            # one tanh on the g block, one tanh on c_new: 3 EUP pushes total.
            sig = sigmoid(gates)                       # (B, 4H)
            i_g = sig[:, 0 * H:1 * H]
            f_g = sig[:, 1 * H:2 * H]
            o_g = sig[:, 3 * H:4 * H]
            g_g = jnp.tanh(gates[:, 2 * H:3 * H])
            c_new = f_g * c_prev + i_g * g_g
            h_new = o_g * jnp.tanh(c_new)
            return h_new, c_new

        h = [jnp.zeros((B, H), jnp.float32) for _ in range(num_layers)]
        c = [jnp.zeros((B, H), jnp.float32) for _ in range(num_layers)]

        # Fully unrolled, statically indexed time loop (T is small).
        for t in range(T):
            # layer 0: K = input_size = 1 -> the input projection is a pure
            # VPU broadcast multiply; only the recurrent matmul hits the MXU.
            x_t = x_ref[:, t:t + 1]                                   # (B, 1)
            gates0 = (x_t * w("w_ih_0", 1)
                      + jnp.dot(h[0], w("w_hh_0", H),
                                preferred_element_type=jnp.float32)
                      + w("b_0", 1))
            h[0], c[0] = cell(gates0, c[0])

            # deeper layers: UN-fused input/recurrent projections (no per-step
            # lane concat; the recurrent dot only depends on h[l]^{t-1}).
            for l in range(1, num_layers):
                gates = (jnp.dot(h[l - 1], w(f"w_ih_{l}", H),
                                 preferred_element_type=jnp.float32)
                         + jnp.dot(h[l], w(f"w_hh_{l}", H),
                                   preferred_element_type=jnp.float32)
                         + w(f"b_{l}", 1))
                h[l], c[l] = cell(gates, c[l])

        # head: fc -> relu -> fc2 (fc2 weight/bias are lane-padded to 128).
        hid = (jnp.dot(h[-1], w("fc_w", H),
                       preferred_element_type=jnp.float32) + w("fc_b", 1))
        hid = jnp.maximum(hid, 0.0)
        out = (jnp.dot(hid, w("fc2_w", FC_DIM),
                       preferred_element_type=jnp.float32) + w("fc2_b", 1))
        out_ref[...] = out.astype(out_ref.dtype)                      # (B, 128) lane-dense

    return kernel


# ----------------------------- wrapper ---------------------------------------
@jax.jit
def lstm_predictor_forward(x_btd, w_slab):
    """x_btd: (B, T, 1) f32 (PyTorch batch_first); w_slab: packed (326, 128) f32."""
    B, T, In = x_btd.shape
    assert In == 1
    x2d = x_btd.reshape(B, T).astype(jnp.float32)      # squeeze only; no transpose

    kernel = _make_kernel(NUM_LAYERS, T, HIDDEN_SIZE, B)
    vmem = pl.BlockSpec(memory_space=pltpu.MemorySpace.VMEM)

    out_pad = pl.pallas_call(
        kernel,
        out_shape=jax.ShapeDtypeStruct((B, SLAB_COLS), jnp.float32),
        in_specs=[vmem, vmem],
        out_specs=vmem,
    )(x2d, w_slab)
    return out_pad[:, :PRED_STEPS]


# ----------------------------- init & reference ------------------------------
def init_params(key):
    """Deterministic PyTorch-style uniform(-1/sqrt(H), 1/sqrt(H)) init."""
    bound = 1.0 / jnp.sqrt(jnp.float32(HIDDEN_SIZE))
    params = {}
    keys = jax.random.split(key, 4 * NUM_LAYERS + 4)
    ki = 0
    for l in range(NUM_LAYERS):
        in_l = INPUT_SIZE if l == 0 else HIDDEN_SIZE
        params[f"w_ih_{l}"] = jax.random.uniform(
            keys[ki], (4 * HIDDEN_SIZE, in_l), jnp.float32, -bound, bound); ki += 1
        params[f"w_hh_{l}"] = jax.random.uniform(
            keys[ki], (4 * HIDDEN_SIZE, HIDDEN_SIZE), jnp.float32, -bound, bound); ki += 1
        params[f"b_ih_{l}"] = jax.random.uniform(
            keys[ki], (4 * HIDDEN_SIZE,), jnp.float32, -bound, bound); ki += 1
        params[f"b_hh_{l}"] = jax.random.uniform(
            keys[ki], (4 * HIDDEN_SIZE,), jnp.float32, -bound, bound); ki += 1
    params["fc_w"] = jax.random.uniform(
        keys[ki], (FC_DIM, HIDDEN_SIZE), jnp.float32, -bound, bound); ki += 1
    params["fc_b"] = jax.random.uniform(
        keys[ki], (FC_DIM,), jnp.float32, -bound, bound); ki += 1
    params["fc2_w"] = jax.random.uniform(
        keys[ki], (PRED_STEPS, FC_DIM), jnp.float32, -bound, bound); ki += 1
    params["fc2_b"] = jax.random.uniform(
        keys[ki], (PRED_STEPS,), jnp.float32, -bound, bound); ki += 1
    return params


def reference_forward(x_btd, params):
    """Pure-JAX reference matching PyTorch nn.LSTM (eval) + fc/relu/fc2."""
    B, T, _ = x_btd.shape
    H = HIDDEN_SIZE
    h = [jnp.zeros((B, H), jnp.float32) for _ in range(NUM_LAYERS)]
    c = [jnp.zeros((B, H), jnp.float32) for _ in range(NUM_LAYERS)]
    for t in range(T):
        inp = x_btd[:, t, :]
        for l in range(NUM_LAYERS):
            gates = (inp @ params[f"w_ih_{l}"].T + params[f"b_ih_{l}"]
                     + h[l] @ params[f"w_hh_{l}"].T + params[f"b_hh_{l}"])
            i_g = jax.nn.sigmoid(gates[:, 0 * H:1 * H])
            f_g = jax.nn.sigmoid(gates[:, 1 * H:2 * H])
            g_g = jnp.tanh(gates[:, 2 * H:3 * H])
            o_g = jax.nn.sigmoid(gates[:, 3 * H:4 * H])
            c[l] = f_g * c[l] + i_g * g_g
            h[l] = o_g * jnp.tanh(c[l])
            inp = h[l]
    y = jnp.maximum(h[-1] @ params["fc_w"].T + params["fc_b"], 0.0)
    return y @ params["fc2_w"].T + params["fc2_b"]


if __name__ == "__main__":
    key = jax.random.PRNGKey(0)
    k_x, k_p = jax.random.split(key)
    x = jax.random.normal(k_x, (BATCH, SEQ, INPUT_SIZE), jnp.float32)
    params = init_params(k_p)

    # One-time parameter packing (outside the per-call forward).
    w_slab = pack_params(params)
    w_slab = jax.block_until_ready(w_slab)

    out = lstm_predictor_forward(x, w_slab)
    out = jax.block_until_ready(out)

    ref = reference_forward(x, params)
    assert out.shape == (BATCH, PRED_STEPS)
    max_err = float(jnp.max(jnp.abs(out - ref)))
    assert max_err < 1e-3, f"max abs err = {max_err}"
    print("KERNEL_OK")
</pallas_src>

<mosaic_0001>
module attributes {stable_mosaic.version = 11 : i64} {
  func.func @kernel(%arg0: memref<2x8xf32, #tpu.memory_space<vmem>>, %arg1: memref<326x128xf32, #tpu.memory_space<vmem>>, %arg2: memref<2x128xf32, #tpu.memory_space<vmem>>) attributes {dimension_semantics = [], scalar_prefetch = 0 : i64, scratch_operands = 0 : i64, tpu.core_type = #tpu.core_type<tc>} {
    %cst = arith.constant 0.000000e+00 : f32
    %0 = vector.broadcast %cst : f32 to vector<2x32xf32>
    %cst_0 = arith.constant 0.000000e+00 : f32
    %1 = vector.broadcast %cst_0 : f32 to vector<2x32xf32>
    %cst_1 = arith.constant 0.000000e+00 : f32
    %2 = vector.broadcast %cst_1 : f32 to vector<2x32xf32>
    %cst_2 = arith.constant 0.000000e+00 : f32
    %3 = vector.broadcast %cst_2 : f32 to vector<2x32xf32>
    %cst_3 = arith.constant 0.000000e+00 : f32
    %4 = vector.broadcast %cst_3 : f32 to vector<2x32xf32>
    %cst_4 = arith.constant 0.000000e+00 : f32
    %5 = vector.broadcast %cst_4 : f32 to vector<2x32xf32>
    %c0 = arith.constant 0 : index
    %c0_5 = arith.constant 0 : index
    %6 = vector.load %arg0[%c0, %c0_5] : memref<2x8xf32, #tpu.memory_space<vmem>>, vector<2x1xf32>
    %c0_6 = arith.constant 0 : index
    %c0_7 = arith.constant 0 : index
    %7 = vector.load %arg1[%c0_6, %c0_7] : memref<326x128xf32, #tpu.memory_space<vmem>>, vector<1x128xf32>
    %8 = vector.broadcast %6 : vector<2x1xf32> to vector<2x128xf32>
    %9 = vector.broadcast %7 : vector<1x128xf32> to vector<2x128xf32>
    %10 = arith.mulf %8, %9 : vector<2x128xf32>
    %c1 = arith.constant 1 : index
    %c0_8 = arith.constant 0 : index
    %11 = vector.load %arg1[%c1, %c0_8] : memref<326x128xf32, #tpu.memory_space<vmem>>, vector<32x128xf32>
    %cst_9 = arith.constant dense<0.000000e+00> : vector<2x128xf32>
    %12 = tpu.matmul %0, %11, %cst_9 {dimension_numbers = #tpu.dot_dimension_numbers<[1], [0], [0], [1], [0, 0, 1, 1], [], []>} : vector<2x32xf32>, vector<32x128xf32>, vector<2x128xf32> -> vector<2x128xf32>
    %13 = arith.addf %10, %12 : vector<2x128xf32>
    %c33 = arith.constant 33 : index
    %c0_10 = arith.constant 0 : index
    %14 = vector.load %arg1[%c33, %c0_10] : memref<326x128xf32, #tpu.memory_space<vmem>>, vector<1x128xf32>
    %15 = vector.broadcast %14 : vector<1x128xf32> to vector<2x128xf32>
    %16 = arith.addf %13, %15 : vector<2x128xf32>
    %cst_11 = arith.constant 5.000000e-01 : f32
    %17 = vector.broadcast %cst_11 : f32 to vector<2x128xf32>
    %18 = arith.mulf %17, %16 : vector<2x128xf32>
    %19 = math.tanh %18 : vector<2x128xf32>
    %cst_12 = arith.constant 5.000000e-01 : f32
    %20 = vector.broadcast %cst_12 : f32 to vector<2x128xf32>
    %21 = arith.mulf %20, %19 : vector<2x128xf32>
    %cst_13 = arith.constant 5.000000e-01 : f32
    %22 = vector.broadcast %cst_13 : f32 to vector<2x128xf32>
    %23 = arith.addf %21, %22 : vector<2x128xf32>
    %24 = vector.extract_strided_slice %23 {offsets = [0, 0], sizes = [2, 32], strides = [1, 1]} : vector<2x128xf32> to vector<2x32xf32>
    %25 = vector.extract_strided_slice %23 {offsets = [0, 32], sizes = [2, 32], strides = [1, 1]} : vector<2x128xf32> to vector<2x32xf32>
    %26 = vector.extract_strided_slice %23 {offsets = [0, 96], sizes = [2, 32], strides = [1, 1]} : vector<2x128xf32> to vector<2x32xf32>
    %27 = vector.extract_strided_slice %16 {offsets = [0, 64], sizes = [2, 32], strides = [1, 1]} : vector<2x128xf32> to vector<2x32xf32>
    %28 = math.tanh %27 : vector<2x32xf32>
    %29 = arith.mulf %25, %3 : vector<2x32xf32>
    %30 = arith.mulf %24, %28 : vector<2x32xf32>
    %31 = arith.addf %29, %30 : vector<2x32xf32>
    %32 = math.tanh %31 : vector<2x32xf32>
    %33 = arith.mulf %26, %32 : vector<2x32xf32>
    %c34 = arith.constant 34 : index
    %c0_14 = arith.constant 0 : index
    %34 = vector.load %arg1[%c34, %c0_14] : memref<326x128xf32, #tpu.memory_space<vmem>>, vector<32x128xf32>
    %cst_15 = arith.constant dense<0.000000e+00> : vector<2x128xf32>
    %35 = tpu.matmul %33, %34, %cst_15 {dimension_numbers = #tpu.dot_dimension_numbers<[1], [0], [0], [1], [0, 0, 1, 1], [], []>} : vector<2x32xf32>, vector<32x128xf32>, vector<2x128xf32> -> vector<2x128xf32>
    %c66 = arith.constant 66 : index
    %c0_16 = arith.constant 0 : index
    %36 = vector.load %arg1[%c66, %c0_16] : memref<326x128xf32, #tpu.memory_space<vmem>>, vector<32x128xf32>
    %cst_17 = arith.constant dense<0.000000e+00> : vector<2x128xf32>
    %37 = tpu.matmul %1, %36, %cst_17 {dimension_numbers = #tpu.dot_dimension_numbers<[1], [0], [0], [1], [0, 0, 1, 1], [], []>} : vector<2x32xf32>, vector<32x128xf32>, vector<2x128xf32> -> vector<2x128xf32>
    %38 = arith.addf %35, %37 : vector<2x128xf32>
    %c98 = arith.constant 98 : index
    %c0_18 = arith.constant 0 : index
    %39 = vector.load %arg1[%c98, %c0_18] : memref<326x128xf32, #tpu.memory_space<vmem>>, vector<1x128xf32>
    %40 = vector.broadcast %39 : vector<1x128xf32> to vector<2x128xf32>
    %41 = arith.addf %38, %40 : vector<2x128xf32>
    %cst_19 = arith.constant 5.000000e-01 : f32
    %42 = vector.broadcast %cst_19 : f32 to vector<2x128xf32>
    %43 = arith.mulf %42, %41 : vector<2x128xf32>
    %44 = math.tanh %43 : vector<2x128xf32>
    %cst_20 = arith.constant 5.000000e-01 : f32
    %45 = vector.broadcast %cst_20 : f32 to vector<2x128xf32>
    %46 = arith.mulf %45, %44 : vector<2x128xf32>
    %cst_21 = arith.constant 5.000000e-01 : f32
    %47 = vector.broadcast %cst_21 : f32 to vector<2x128xf32>
    %48 = arith.addf %46, %47 : vector<2x128xf32>
    %49 = vector.extract_strided_slice %48 {offsets = [0, 0], sizes = [2, 32], strides = [1, 1]} : vector<2x128xf32> to vector<2x32xf32>
    %50 = vector.extract_strided_slice %48 {offsets = [0, 32], sizes = [2, 32], strides = [1, 1]} : vector<2x128xf32> to vector<2x32xf32>
    %51 = vector.extract_strided_slice %48 {offsets = [0, 96], sizes = [2, 32], strides = [1, 1]} : vector<2x128xf32> to vector<2x32xf32>
    %52 = vector.extract_strided_slice %41 {offsets = [0, 64], sizes = [2, 32], strides = [1, 1]} : vector<2x128xf32> to vector<2x32xf32>
    %53 = math.tanh %52 : vector<2x32xf32>
    %54 = arith.mulf %50, %4 : vector<2x32xf32>
    %55 = arith.mulf %49, %53 : vector<2x32xf32>
    %56 = arith.addf %54, %55 : vector<2x32xf32>
    %57 = math.tanh %56 : vector<2x32xf32>
    %58 = arith.mulf %51, %57 : vector<2x32xf32>
    %c99 = arith.constant 99 : index
    %c0_22 = arith.constant 0 : index
    %59 = vector.load %arg1[%c99, %c0_22] : memref<326x128xf32, #tpu.memory_space<vmem>>, vector<32x128xf32>
    %cst_23 = arith.constant dense<0.000000e+00> : vector<2x128xf32>
    %60 = tpu.matmul %58, %59, %cst_23 {dimension_numbers = #tpu.dot_dimension_numbers<[1], [0], [0], [1], [0, 0, 1, 1], [], []>} : vector<2x32xf32>, vector<32x128xf32>, vector<2x128xf32> -> vector<2x128xf32>
    %c131 = arith.constant 131 : index
    %c0_24 = arith.constant 0 : index
    %61 = vector.load %arg1[%c131, %c0_24] : memref<326x128xf32, #tpu.memory_space<vmem>>, vector<32x128xf32>
    %cst_25 = arith.constant dense<0.000000e+00> : vector<2x128xf32>
    %62 = tpu.matmul %2, %61, %cst_25 {dimension_numbers = #tpu.dot_dimension_numbers<[1], [0], [0], [1], [0, 0, 1, 1], [], []>} : vector<2x32xf32>, vector<32x128xf32>, vector<2x128xf32> -> vector<2x128xf32>
    %63 = arith.addf %60, %62 : vector<2x128xf32>
    %c163 = arith.constant 163 : index
    %c0_26 = arith.constant 0 : index
    %64 = vector.load %arg1[%c163, %c0_26] : memref<326x128xf32, #tpu.memory_space<vmem>>, vector<1x128xf32>
    %65 = vector.broadcast %64 : vector<1x128xf32> to vector<2x128xf32>
    %66 = arith.addf %63, %65 : vector<2x128xf32>
    %cst_27 = arith.constant 5.000000e-01 : f32
    %67 = vector.broadcast %cst_27 : f32 to vector<2x128xf32>
    %68 = arith.mulf %67, %66 : vector<2x128xf32>
    %69 = math.tanh %68 : vector<2x128xf32>
    %cst_28 = arith.constant 5.000000e-01 : f32
    %70 = vector.broadcast %cst_28 : f32 to vector<2x128xf32>
    %71 = arith.mulf %70, %69 : vector<2x128xf32>
    %cst_29 = arith.constant 5.000000e-01 : f32
    %72 = vector.broadcast %cst_29 : f32 to vector<2x128xf32>
    %73 = arith.addf %71, %72 : vector<2x128xf32>
    %74 = vector.extract_strided_slice %73 {offsets = [0, 0], sizes = [2, 32], strides = [1, 1]} : vector<2x128xf32> to vector<2x32xf32>
    %75 = vector.extract_strided_slice %73 {offsets = [0, 32], sizes = [2, 32], strides = [1, 1]} : vector<2x128xf32> to vector<2x32xf32>
    %76 = vector.extract_strided_slice %73 {offsets = [0, 96], sizes = [2, 32], strides = [1, 1]} : vector<2x128xf32> to vector<2x32xf32>
    %77 = vector.extract_strided_slice %66 {offsets = [0, 64], sizes = [2, 32], strides = [1, 1]} : vector<2x128xf32> to vector<2x32xf32>
    %78 = math.tanh %77 : vector<2x32xf32>
    %79 = arith.mulf %75, %5 : vector<2x32xf32>
    %80 = arith.mulf %74, %78 : vector<2x32xf32>
    %81 = arith.addf %79, %80 : vector<2x32xf32>
    %82 = math.tanh %81 : vector<2x32xf32>
    %83 = arith.mulf %76, %82 : vector<2x32xf32>
    %c0_30 = arith.constant 0 : index
    %c1_31 = arith.constant 1 : index
    %84 = vector.load %arg0[%c0_30, %c1_31] : memref<2x8xf32, #tpu.memory_space<vmem>>, vector<2x1xf32>
    %c0_32 = arith.constant 0 : index
    %c0_33 = arith.constant 0 : index
    %85 = vector.load %arg1[%c0_32, %c0_33] : memref<326x128xf32, #tpu.memory_space<vmem>>, vector<1x128xf32>
    %86 = vector.broadcast %84 : vector<2x1xf32> to vector<2x128xf32>
    %87 = vector.broadcast %85 : vector<1x128xf32> to vector<2x128xf32>
    %88 = arith.mulf %86, %87 : vector<2x128xf32>
    %c1_34 = arith.constant 1 : index
    %c0_35 = arith.constant 0 : index
    %89 = vector.load %arg1[%c1_34, %c0_35] : memref<326x128xf32, #tpu.memory_space<vmem>>, vector<32x128xf32>
    %cst_36 = arith.constant dense<0.000000e+00> : vector<2x128xf32>
    %90 = tpu.matmul %33, %89, %cst_36 {dimension_numbers = #tpu.dot_dimension_numbers<[1], [0], [0], [1], [0, 0, 1, 1], [], []>} : vector<2x32xf32>, vector<32x128xf32>, vector<2x128xf32> -> vector<2x128xf32>
    %91 = arith.addf %88, %90 : vector<2x128xf32>
    %c33_37 = arith.constant 33 : index
    %c0_38 = arith.constant 0 : index
    %92 = vector.load %arg1[%c33_37, %c0_38] : memref<326x128xf32, #tpu.memory_space<vmem>>, vector<1x128xf32>
    %93 = vector.broadcast %92 : vector<1x128xf32> to vector<2x128xf32>
    %94 = arith.addf %91, %93 : vector<2x128xf32>
    %cst_39 = arith.constant 5.000000e-01 : f32
    %95 = vector.broadcast %cst_39 : f32 to vector<2x128xf32>
    %96 = arith.mulf %95, %94 : vector<2x128xf32>
    %97 = math.tanh %96 : vector<2x128xf32>
    %cst_40 = arith.constant 5.000000e-01 : f32
    %98 = vector.broadcast %cst_40 : f32 to vector<2x128xf32>
    %99 = arith.mulf %98, %97 : vector<2x128xf32>
    %cst_41 = arith.constant 5.000000e-01 : f32
    %100 = vector.broadcast %cst_41 : f32 to vector<2x128xf32>
    %101 = arith.addf %99, %100 : vector<2x128xf32>
    %102 = vector.extract_strided_slice %101 {offsets = [0, 0], sizes = [2, 32], strides = [1, 1]} : vector<2x128xf32> to vector<2x32xf32>
    %103 = vector.extract_strided_slice %101 {offsets = [0, 32], sizes = [2, 32], strides = [1, 1]} : vector<2x128xf32> to vector<2x32xf32>
    %104 = vector.extract_strided_slice %101 {offsets = [0, 96], sizes = [2, 32], strides = [1, 1]} : vector<2x128xf32> to vector<2x32xf32>
    %105 = vector.extract_strided_slice %94 {offsets = [0, 64], sizes = [2, 32], strides = [1, 1]} : vector<2x128xf32> to vector<2x32xf32>
    %106 = math.tanh %105 : vector<2x32xf32>
    %107 = arith.mulf %103, %31 : vector<2x32xf32>
    %108 = arith.mulf %102, %106 : vector<2x32xf32>
    %109 = arith.addf %107, %108 : vector<2x32xf32>
    %110 = math.tanh %109 : vector<2x32xf32>
    %111 = arith.mulf %104, %110 : vector<2x32xf32>
    %c34_42 = arith.constant 34 : index
    %c0_43 = arith.constant 0 : index
    %112 = vector.load %arg1[%c34_42, %c0_43] : memref<326x128xf32, #tpu.memory_space<vmem>>, vector<32x128xf32>
    %cst_44 = arith.constant dense<0.000000e+00> : vector<2x128xf32>
    %113 = tpu.matmul %111, %112, %cst_44 {dimension_numbers = #tpu.dot_dimension_numbers<[1], [0], [0], [1], [0, 0, 1, 1], [], []>} : vector<2x32xf32>, vector<32x128xf32>, vector<2x128xf32> -> vector<2x128xf32>
    %c66_45 = arith.constant 66 : index
    %c0_46 = arith.constant 0 : index
    %114 = vector.load %arg1[%c66_45, %c0_46] : memref<326x128xf32, #tpu.memory_space<vmem>>, vector<32x128xf32>
    %cst_47 = arith.constant dense<0.000000e+00> : vector<2x128xf32>
    %115 = tpu.matmul %58, %114, %cst_47 {dimension_numbers = #tpu.dot_dimension_numbers<[1], [0], [0], [1], [0, 0, 1, 1], [], []>} : vector<2x32xf32>, vector<32x128xf32>, vector<2x128xf32> -> vector<2x128xf32>
    %116 = arith.addf %113, %115 : vector<2x128xf32>
    %c98_48 = arith.constant 98 : index
    %c0_49 = arith.constant 0 : index
    %117 = vector.load %arg1[%c98_48, %c0_49] : memref<326x128xf32, #tpu.memory_space<vmem>>, vector<1x128xf32>
    %118 = vector.broadcast %117 : vector<1x128xf32> to vector<2x128xf32>
    %119 = arith.addf %116, %118 : vector<2x128xf32>
    %cst_50 = arith.constant 5.000000e-01 : f32
    %120 = vector.broadcast %cst_50 : f32 to vector<2x128xf32>
    %121 = arith.mulf %120, %119 : vector<2x128xf32>
    %122 = math.tanh %121 : vector<2x128xf32>
    %cst_51 = arith.constant 5.000000e-01 : f32
    %123 = vector.broadcast %cst_51 : f32 to vector<2x128xf32>
    %124 = arith.mulf %123, %122 : vector<2x128xf32>
    %cst_52 = arith.constant 5.000000e-01 : f32
    %125 = vector.broadcast %cst_52 : f32 to vector<2x128xf32>
    %126 = arith.addf %124, %125 : vector<2x128xf32>
    %127 = vector.extract_strided_slice %126 {offsets = [0, 0], sizes = [2, 32], strides = [1, 1]} : vector<2x128xf32> to vector<2x32xf32>
    %128 = vector.extract_strided_slice %126 {offsets = [0, 32], sizes = [2, 32], strides = [1, 1]} : vector<2x128xf32> to vector<2x32xf32>
    %129 = vector.extract_strided_slice %126 {offsets = [0, 96], sizes = [2, 32], strides = [1, 1]} : vector<2x128xf32> to vector<2x32xf32>
    %130 = vector.extract_strided_slice %119 {offsets = [0, 64], sizes = [2, 32], strides = [1, 1]} : vector<2x128xf32> to vector<2x32xf32>
    %131 = math.tanh %130 : vector<2x32xf32>
    %132 = arith.mulf %128, %56 : vector<2x32xf32>
    %133 = arith.mulf %127, %131 : vector<2x32xf32>
    %134 = arith.addf %132, %133 : vector<2x32xf32>
    %135 = math.tanh %134 : vector<2x32xf32>
    %136 = arith.mulf %129, %135 : vector<2x32xf32>
    %c99_53 = arith.constant 99 : index
    %c0_54 = arith.constant 0 : index
    %137 = vector.load %arg1[%c99_53, %c0_54] : memref<326x128xf32, #tpu.memory_space<vmem>>, vector<32x128xf32>
    %cst_55 = arith.constant dense<0.000000e+00> : vector<2x128xf32>
    %138 = tpu.matmul %136, %137, %cst_55 {dimension_numbers = #tpu.dot_dimension_numbers<[1], [0], [0], [1], [0, 0, 1, 1], [], []>} : vector<2x32xf32>, vector<32x128xf32>, vector<2x128xf32> -> vector<2x128xf32>
    %c131_56 = arith.constant 131 : index
    %c0_57 = arith.constant 0 : index
    %139 = vector.load %arg1[%c131_56, %c0_57] : memref<326x128xf32, #tpu.memory_space<vmem>>, vector<32x128xf32>
    %cst_58 = arith.constant dense<0.000000e+00> : vector<2x128xf32>
    %140 = tpu.matmul %83, %139, %cst_58 {dimension_numbers = #tpu.dot_dimension_numbers<[1], [0], [0], [1], [0, 0, 1, 1], [], []>} : vector<2x32xf32>, vector<32x128xf32>, vector<2x128xf32> -> vector<2x128xf32>
    %141 = arith.addf %138, %140 : vector<2x128xf32>
    %c163_59 = arith.constant 163 : index
    %c0_60 = arith.constant 0 : index
    %142 = vector.load %arg1[%c163_59, %c0_60] : memref<326x128xf32, #tpu.memory_space<vmem>>, vector<1x128xf32>
    %143 = vector.broadcast %142 : vector<1x128xf32> to vector<2x128xf32>
    %144 = arith.addf %141, %143 : vector<2x128xf32>
    %cst_61 = arith.constant 5.000000e-01 : f32
    %145 = vector.broadcast %cst_61 : f32 to vector<2x128xf32>
    %146 = arith.mulf %145, %144 : vector<2x128xf32>
    %147 = math.tanh %146 : vector<2x128xf32>
    %cst_62 = arith.constant 5.000000e-01 : f32
    %148 = vector.broadcast %cst_62 : f32 to vector<2x128xf32>
    %149 = arith.mulf %148, %147 : vector<2x128xf32>
    %cst_63 = arith.constant 5.000000e-01 : f32
    %150 = vector.broadcast %cst_63 : f32 to vector<2x128xf32>
    %151 = arith.addf %149, %150 : vector<2x128xf32>
    %152 = vector.extract_strided_slice %151 {offsets = [0, 0], sizes = [2, 32], strides = [1, 1]} : vector<2x128xf32> to vector<2x32xf32>
    %153 = vector.extract_strided_slice %151 {offsets = [0, 32], sizes = [2, 32], strides = [1, 1]} : vector<2x128xf32> to vector<2x32xf32>
    %154 = vector.extract_strided_slice %151 {offsets = [0, 96], sizes = [2, 32], strides = [1, 1]} : vector<2x128xf32> to vector<2x32xf32>
    %155 = vector.extract_strided_slice %144 {offsets = [0, 64], sizes = [2, 32], strides = [1, 1]} : vector<2x128xf32> to vector<2x32xf32>
    %156 = math.tanh %155 : vector<2x32xf32>
    %157 = arith.mulf %153, %81 : vector<2x32xf32>
    %158 = arith.mulf %152, %156 : vector<2x32xf32>
    %159 = arith.addf %157, %158 : vector<2x32xf32>
    %160 = math.tanh %159 : vector<2x32xf32>
    %161 = arith.mulf %154, %160 : vector<2x32xf32>
    %c0_64 = arith.constant 0 : index
    %c2 = arith.constant 2 : index
    %162 = vector.load %arg0[%c0_64, %c2] : memref<2x8xf32, #tpu.memory_space<vmem>>, vector<2x1xf32>
    %c0_65 = arith.constant 0 : index
    %c0_66 = arith.constant 0 : index
    %163 = vector.load %arg1[%c0_65, %c0_66] : memref<326x128xf32, #tpu.memory_space<vmem>>, vector<1x128xf32>
    %164 = vector.broadcast %162 : vector<2x1xf32> to vector<2x128xf32>
    %165 = vector.broadcast %163 : vector<1x128xf32> to vector<2x128xf32>
    %166 = arith.mulf %164, %165 : vector<2x128xf32>
    %c1_67 = arith.constant 1 : index
    %c0_68 = arith.constant 0 : index
    %167 = vector.load %arg1[%c1_67, %c0_68] : memref<326x128xf32, #tpu.memory_space<vmem>>, vector<32x128xf32>
    %cst_69 = arith.constant dense<0.000000e+00> : vector<2x128xf32>
    %168 = tpu.matmul %111, %167, %cst_69 {dimension_numbers = #tpu.dot_dimension_numbers<[1], [0], [0], [1], [0, 0, 1, 1], [], []>} : vector<2x32xf32>, vector<32x128xf32>, vector<2x128xf32> -> vector<2x128xf32>
    %169 = arith.addf %166, %168 : vector<2x128xf32>
    %c33_70 = arith.constant 33 : index
    %c0_71 = arith.constant 0 : index
    %170 = vector.load %arg1[%c33_70, %c0_71] : memref<326x128xf32, #tpu.memory_space<vmem>>, vector<1x128xf32>
    %171 = vector.broadcast %170 : vector<1x128xf32> to vector<2x128xf32>
    %172 = arith.addf %169, %171 : vector<2x128xf32>
    %cst_72 = arith.constant 5.000000e-01 : f32
    %173 = vector.broadcast %cst_72 : f32 to vector<2x128xf32>
    %174 = arith.mulf %173, %172 : vector<2x128xf32>
    %175 = math.tanh %174 : vector<2x128xf32>
    %cst_73 = arith.constant 5.000000e-01 : f32
    %176 = vector.broadcast %cst_73 : f32 to vector<2x128xf32>
    %177 = arith.mulf %176, %175 : vector<2x128xf32>
    %cst_74 = arith.constant 5.000000e-01 : f32
    %178 = vector.broadcast %cst_74 : f32 to vector<2x128xf32>
    %179 = arith.addf %177, %178 : vector<2x128xf32>
    %180 = vector.extract_strided_slice %179 {offsets = [0, 0], sizes = [2, 32], strides = [1, 1]} : vector<2x128xf32> to vector<2x32xf32>
    %181 = vector.extract_strided_slice %179 {offsets = [0, 32], sizes = [2, 32], strides = [1, 1]} : vector<2x128xf32> to vector<2x32xf32>
    %182 = vector.extract_strided_slice %179 {offsets = [0, 96], sizes = [2, 32], strides = [1, 1]} : vector<2x128xf32> to vector<2x32xf32>
    %183 = vector.extract_strided_slice %172 {offsets = [0, 64], sizes = [2, 32], strides = [1, 1]} : vector<2x128xf32> to vector<2x32xf32>
    %184 = math.tanh %183 : vector<2x32xf32>
    %185 = arith.mulf %181, %109 : vector<2x32xf32>
    %186 = arith.mulf %180, %184 : vector<2x32xf32>
    %187 = arith.addf %185, %186 : vector<2x32xf32>
    %188 = math.tanh %187 : vector<2x32xf32>
    %189 = arith.mulf %182, %188 : vector<2x32xf32>
    %c34_75 = arith.constant 34 : index
    %c0_76 = arith.constant 0 : index
    %190 = vector.load %arg1[%c34_75, %c0_76] : memref<326x128xf32, #tpu.memory_space<vmem>>, vector<32x128xf32>
    %cst_77 = arith.constant dense<0.000000e+00> : vector<2x128xf32>
    %191 = tpu.matmul %189, %190, %cst_77 {dimension_numbers = #tpu.dot_dimension_numbers<[1], [0], [0], [1], [0, 0, 1, 1], [], []>} : vector<2x32xf32>, vector<32x128xf32>, vector<2x128xf32> -> vector<2x128xf32>
    %c66_78 = arith.constant 66 : index
    %c0_79 = arith.constant 0 : index
    %192 = vector.load %arg1[%c66_78, %c0_79] : memref<326x128xf32, #tpu.memory_space<vmem>>, vector<32x128xf32>
    %cst_80 = arith.constant dense<0.000000e+00> : vector<2x128xf32>
    %193 = tpu.matmul %136, %192, %cst_80 {dimension_numbers = #tpu.dot_dimension_numbers<[1], [0], [0], [1], [0, 0, 1, 1], [], []>} : vector<2x32xf32>, vector<32x128xf32>, vector<2x128xf32> -> vector<2x128xf32>
    %194 = arith.addf %191, %193 : vector<2x128xf32>
    %c98_81 = arith.constant 98 : index
    %c0_82 = arith.constant 0 : index
    %195 = vector.load %arg1[%c98_81, %c0_82] : memref<326x128xf32, #tpu.memory_space<vmem>>, vector<1x128xf32>
    %196 = vector.broadcast %195 : vector<1x128xf32> to vector<2x128xf32>
    %197 = arith.addf %194, %196 : vector<2x128xf32>
    %cst_83 = arith.constant 5.000000e-01 : f32
    %198 = vector.broadcast %cst_83 : f32 to vector<2x128xf32>
    %199 = arith.mulf %198, %197 : vector<2x128xf32>
    %200 = math.tanh %199 : vector<2x128xf32>
    %cst_84 = arith.constant 5.000000e-01 : f32
    %201 = vector.broadcast %cst_84 : f32 to vector<2x128xf32>
    %202 = arith.mulf %201, %200 : vector<2x128xf32>
    %cst_85 = arith.constant 5.000000e-01 : f32
    %203 = vector.broadcast %cst_85 : f32 to vector<2x128xf32>
    %204 = arith.addf %202, %203 : vector<2x128xf32>
    %205 = vector.extract_strided_slice %204 {offsets = [0, 0], sizes = [2, 32], strides = [1, 1]} : vector<2x128xf32> to vector<2x32xf32>
    %206 = vector.extract_strided_slice %204 {offsets = [0, 32], sizes = [2, 32], strides = [1, 1]} : vector<2x128xf32> to vector<2x32xf32>
    %207 = vector.extract_strided_slice %204 {offsets = [0, 96], sizes = [2, 32], strides = [1, 1]} : vector<2x128xf32> to vector<2x32xf32>
    %208 = vector.extract_strided_slice %197 {offsets = [0, 64], sizes = [2, 32], strides = [1, 1]} : vector<2x128xf32> to vector<2x32xf32>
    %209 = math.tanh %208 : vector<2x32xf32>
    %210 = arith.mulf %206, %134 : vector<2x32xf32>
    %211 = arith.mulf %205, %209 : vector<2x32xf32>
    %212 = arith.addf %210, %211 : vector<2x32xf32>
    %213 = math.tanh %212 : vector<2x32xf32>
    %214 = arith.mulf %207, %213 : vector<2x32xf32>
    %c99_86 = arith.constant 99 : index
    %c0_87 = arith.constant 0 : index
    %215 = vector.load %arg1[%c99_86, %c0_87] : memref<326x128xf32, #tpu.memory_space<vmem>>, vector<32x128xf32>
    %cst_88 = arith.constant dense<0.000000e+00> : vector<2x128xf32>
    %216 = tpu.matmul %214, %215, %cst_88 {dimension_numbers = #tpu.dot_dimension_numbers<[1], [0], [0], [1], [0, 0, 1, 1], [], []>} : vector<2x32xf32>, vector<32x128xf32>, vector<2x128xf32> -> vector<2x128xf32>
    %c131_89 = arith.constant 131 : index
    %c0_90 = arith.constant 0 : index
    %217 = vector.load %arg1[%c131_89, %c0_90] : memref<326x128xf32, #tpu.memory_space<vmem>>, vector<32x128xf32>
    %cst_91 = arith.constant dense<0.000000e+00> : vector<2x128xf32>
    %218 = tpu.matmul %161, %217, %cst_91 {dimension_numbers = #tpu.dot_dimension_numbers<[1], [0], [0], [1], [0, 0, 1, 1], [], []>} : vector<2x32xf32>, vector<32x128xf32>, vector<2x128xf32> -> vector<2x128xf32>
    %219 = arith.addf %216, %218 : vector<2x128xf32>
    %c163_92 = arith.constant 163 : index
    %c0_93 = arith.constant 0 : index
    %220 = vector.load %arg1[%c163_92, %c0_93] : memref<326x128xf32, #tpu.memory_space<vmem>>, vector<1x128xf32>
    %221 = vector.broadcast %220 : vector<1x128xf32> to vector<2x128xf32>
    %222 = arith.addf %219, %221 : vector<2x128xf32>
    %cst_94 = arith.constant 5.000000e-01 : f32
    %223 = vector.broadcast %cst_94 : f32 to vector<2x128xf32>
    %224 = arith.mulf %223, %222 : vector<2x128xf32>
    %225 = math.tanh %224 : vector<2x128xf32>
    %cst_95 = arith.constant 5.000000e-01 : f32
    %226 = vector.broadcast %cst_95 : f32 to vector<2x128xf32>
    %227 = arith.mulf %226, %225 : vector<2x128xf32>
    %cst_96 = arith.constant 5.000000e-01 : f32
    %228 = vector.broadcast %cst_96 : f32 to vector<2x128xf32>
    %229 = arith.addf %227, %228 : vector<2x128xf32>
    %230 = vector.extract_strided_slice %229 {offsets = [0, 0], sizes = [2, 32], strides = [1, 1]} : vector<2x128xf32> to vector<2x32xf32>
    %231 = vector.extract_strided_slice %229 {offsets = [0, 32], sizes = [2, 32], strides = [1, 1]} : vector<2x128xf32> to vector<2x32xf32>
    %232 = vector.extract_strided_slice %229 {offsets = [0, 96], sizes = [2, 32], strides = [1, 1]} : vector<2x128xf32> to vector<2x32xf32>
    %233 = vector.extract_strided_slice %222 {offsets = [0, 64], sizes = [2, 32], strides = [1, 1]} : vector<2x128xf32> to vector<2x32xf32>
    %234 = math.tanh %233 : vector<2x32xf32>
    %235 = arith.mulf %231, %159 : vector<2x32xf32>
    %236 = arith.mulf %230, %234 : vector<2x32xf32>
    %237 = arith.addf %235, %236 : vector<2x32xf32>
    %238 = math.tanh %237 : vector<2x32xf32>
    %239 = arith.mulf %232, %238 : vector<2x32xf32>
    %c0_97 = arith.constant 0 : index
    %c3 = arith.constant 3 : index
    %240 = vector.load %arg0[%c0_97, %c3] : memref<2x8xf32, #tpu.memory_space<vmem>>, vector<2x1xf32>
    %c0_98 = arith.constant 0 : index
    %c0_99 = arith.constant 0 : index
    %241 = vector.load %arg1[%c0_98, %c0_99] : memref<326x128xf32, #tpu.memory_space<vmem>>, vector<1x128xf32>
    %242 = vector.broadcast %240 : vector<2x1xf32> to vector<2x128xf32>
    %243 = vector.broadcast %241 : vector<1x128xf32> to vector<2x128xf32>
    %244 = arith.mulf %242, %243 : vector<2x128xf32>
    %c1_100 = arith.constant 1 : index
    %c0_101 = arith.constant 0 : index
    %245 = vector.load %arg1[%c1_100, %c0_101] : memref<326x128xf32, #tpu.memory_space<vmem>>, vector<32x128xf32>
    %cst_102 = arith.constant dense<0.000000e+00> : vector<2x128xf32>
    %246 = tpu.matmul %189, %245, %cst_102 {dimension_numbers = #tpu.dot_dimension_numbers<[1], [0], [0], [1], [0, 0, 1, 1], [], []>} : vector<2x32xf32>, vector<32x128xf32>, vector<2x128xf32> -> vector<2x128xf32>
    %247 = arith.addf %244, %246 : vector<2x128xf32>
    %c33_103 = arith.constant 33 : index
    %c0_104 = arith.constant 0 : index
    %248 = vector.load %arg1[%c33_103, %c0_104] : memref<326x128xf32, #tpu.memory_space<vmem>>, vector<1x128xf32>
    %249 = vector.broadcast %248 : vector<1x128xf32> to vector<2x128xf32>
    %250 = arith.addf %247, %249 : vector<2x128xf32>
    %cst_105 = arith.constant 5.000000e-01 : f32
    %251 = vector.broadcast %cst_105 : f32 to vector<2x128xf32>
    %252 = arith.mulf %251, %250 : vector<2x128xf32>
    %253 = math.tanh %252 : vector<2x128xf32>
    %cst_106 = arith.constant 5.000000e-01 : f32
    %254 = vector.broadcast %cst_106 : f32 to vector<2x128xf32>
    %255 = arith.mulf %254, %253 : vector<2x128xf32>
    %cst_107 = arith.constant 5.000000e-01 : f32
    %256 = vector.broadcast %cst_107 : f32 to vector<2x128xf32>
    %257 = arith.addf %255, %256 : vector<2x128xf32>
    %258 = vector.extract_strided_slice %257 {offsets = [0, 0], sizes = [2, 32], strides = [1, 1]} : vector<2x128xf32> to vector<2x32xf32>
    %259 = vector.extract_strided_slice %257 {offsets = [0, 32], sizes = [2, 32], strides = [1, 1]} : vector<2x128xf32> to vector<2x32xf32>
    %260 = vector.extract_strided_slice %257 {offsets = [0, 96], sizes = [2, 32], strides = [1, 1]} : vector<2x128xf32> to vector<2x32xf32>
    %261 = vector.extract_strided_slice %250 {offsets = [0, 64], sizes = [2, 32], strides = [1, 1]} : vector<2x128xf32> to vector<2x32xf32>
    %262 = math.tanh %261 : vector<2x32xf32>
    %263 = arith.mulf %259, %187 : vector<2x32xf32>
    %264 = arith.mulf %258, %262 : vector<2x32xf32>
    %265 = arith.addf %263, %264 : vector<2x32xf32>
    %266 = math.tanh %265 : vector<2x32xf32>
    %267 = arith.mulf %260, %266 : vector<2x32xf32>
    %c34_108 = arith.constant 34 : index
    %c0_109 = arith.constant 0 : index
    %268 = vector.load %arg1[%c34_108, %c0_109] : memref<326x128xf32, #tpu.memory_space<vmem>>, vector<32x128xf32>
    %cst_110 = arith.constant dense<0.000000e+00> : vector<2x128xf32>
    %269 = tpu.matmul %267, %268, %cst_110 {dimension_numbers = #tpu.dot_dimension_numbers<[1], [0], [0], [1], [0, 0, 1, 1], [], []>} : vector<2x32xf32>, vector<32x128xf32>, vector<2x128xf32> -> vector<2x128xf32>
    %c66_111 = arith.constant 66 : index
    %c0_112 = arith.constant 0 : index
    %270 = vector.load %arg1[%c66_111, %c0_112] : memref<326x128xf32, #tpu.memory_space<vmem>>, vector<32x128xf32>
    %cst_113 = arith.constant dense<0.000000e+00> : vector<2x128xf32>
    %271 = tpu.matmul %214, %270, %cst_113 {dimension_numbers = #tpu.dot_dimension_numbers<[1], [0], [0], [1], [0, 0, 1, 1], [], []>} : vector<2x32xf32>, vector<32x128xf32>, vector<2x128xf32> -> vector<2x128xf32>
    %272 = arith.addf %269, %271 : vector<2x128xf32>
    %c98_114 = arith.constant 98 : index
    %c0_115 = arith.constant 0 : index
    %273 = vector.load %arg1[%c98_114, %c0_115] : memref<326x128xf32, #tpu.memory_space<vmem>>, vector<1x128xf32>
    %274 = vector.broadcast %273 : vector<1x128xf32> to vector<2x128xf32>
    %275 = arith.addf %272, %274 : vector<2x128xf32>
    %cst_116 = arith.constant 5.000000e-01 : f32
    %276 = vector.broadcast %cst_116 : f32 to vector<2x128xf32>
    %277 = arith.mulf %276, %275 : vector<2x128xf32>
    %278 = math.tanh %277 : vector<2x128xf32>
    %cst_117 = arith.constant 5.000000e-01 : f32
    %279 = vector.broadcast %cst_117 : f32 to vector<2x128xf32>
    %280 = arith.mulf %279, %278 : vector<2x128xf32>
    %cst_118 = arith.constant 5.000000e-01 : f32
    %281 = vector.broadcast %cst_118 : f32 to vector<2x128xf32>
    %282 = arith.addf %280, %281 : vector<2x128xf32>
    %283 = vector.extract_strided_slice %282 {offsets = [0, 0], sizes = [2, 32], strides = [1, 1]} : vector<2x128xf32> to vector<2x32xf32>
    %284 = vector.extract_strided_slice %282 {offsets = [0, 32], sizes = [2, 32], strides = [1, 1]} : vector<2x128xf32> to vector<2x32xf32>
    %285 = vector.extract_strided_slice %282 {offsets = [0, 96], sizes = [2, 32], strides = [1, 1]} : vector<2x128xf32> to vector<2x32xf32>
    %286 = vector.extract_strided_slice %275 {offsets = [0, 64], sizes = [2, 32], strides = [1, 1]} : vector<2x128xf32> to vector<2x32xf32>
    %287 = math.tanh %286 : vector<2x32xf32>
    %288 = arith.mulf %284, %212 : vector<2x32xf32>
    %289 = arith.mulf %283, %287 : vector<2x32xf32>
    %290 = arith.addf %288, %289 : vector<2x32xf32>
    %291 = math.tanh %290 : vector<2x32xf32>
    %292 = arith.mulf %285, %291 : vector<2x32xf32>
    %c99_119 = arith.constant 99 : index
    %c0_120 = arith.constant 0 : index
    %293 = vector.load %arg1[%c99_119, %c0_120] : memref<326x128xf32, #tpu.memory_space<vmem>>, vector<32x128xf32>
    %cst_121 = arith.constant dense<0.000000e+00> : vector<2x128xf32>
    %294 = tpu.matmul %292, %293, %cst_121 {dimension_numbers = #tpu.dot_dimension_numbers<[1], [0], [0], [1], [0, 0, 1, 1], [], []>} : vector<2x32xf32>, vector<32x128xf32>, vector<2x128xf32> -> vector<2x128xf32>
    %c131_122 = arith.constant 131 : index
    %c0_123 = arith.constant 0 : index
    %295 = vector.load %arg1[%c131_122, %c0_123] : memref<326x128xf32, #tpu.memory_space<vmem>>, vector<32x128xf32>
    %cst_124 = arith.constant dense<0.000000e+00> : vector<2x128xf32>
    %296 = tpu.matmul %239, %295, %cst_124 {dimension_numbers = #tpu.dot_dimension_numbers<[1], [0], [0], [1], [0, 0, 1, 1], [], []>} : vector<2x32xf32>, vector<32x128xf32>, vector<2x128xf32> -> vector<2x128xf32>
    %297 = arith.addf %294, %296 : vector<2x128xf32>
    %c163_125 = arith.constant 163 : index
    %c0_126 = arith.constant 0 : index
    %298 = vector.load %arg1[%c163_125, %c0_126] : memref<326x128xf32, #tpu.memory_space<vmem>>, vector<1x128xf32>
    %299 = vector.broadcast %298 : vector<1x128xf32> to vector<2x128xf32>
    %300 = arith.addf %297, %299 : vector<2x128xf32>
    %cst_127 = arith.constant 5.000000e-01 : f32
    %301 = vector.broadcast %cst_127 : f32 to vector<2x128xf32>
    %302 = arith.mulf %301, %300 : vector<2x128xf32>
    %303 = math.tanh %302 : vector<2x128xf32>
    %cst_128 = arith.constant 5.000000e-01 : f32
    %304 = vector.broadcast %cst_128 : f32 to vector<2x128xf32>
    %305 = arith.mulf %304, %303 : vector<2x128xf32>
    %cst_129 = arith.constant 5.000000e-01 : f32
    %306 = vector.broadcast %cst_129 : f32 to vector<2x128xf32>
    %307 = arith.addf %305, %306 : vector<2x128xf32>
    %308 = vector.extract_strided_slice %307 {offsets = [0, 0], sizes = [2, 32], strides = [1, 1]} : vector<2x128xf32> to vector<2x32xf32>
    %309 = vector.extract_strided_slice %307 {offsets = [0, 32], sizes = [2, 32], strides = [1, 1]} : vector<2x128xf32> to vector<2x32xf32>
    %310 = vector.extract_strided_slice %307 {offsets = [0, 96], sizes = [2, 32], strides = [1, 1]} : vector<2x128xf32> to vector<2x32xf32>
    %311 = vector.extract_strided_slice %300 {offsets = [0, 64], sizes = [2, 32], strides = [1, 1]} : vector<2x128xf32> to vector<2x32xf32>
    %312 = math.tanh %311 : vector<2x32xf32>
    %313 = arith.mulf %309, %237 : vector<2x32xf32>
    %314 = arith.mulf %308, %312 : vector<2x32xf32>
    %315 = arith.addf %313, %314 : vector<2x32xf32>
    %316 = math.tanh %315 : vector<2x32xf32>
    %317 = arith.mulf %310, %316 : vector<2x32xf32>
    %c0_130 = arith.constant 0 : index
    %c4 = arith.constant 4 : index
    %318 = vector.load %arg0[%c0_130, %c4] : memref<2x8xf32, #tpu.memory_space<vmem>>, vector<2x1xf32>
    %c0_131 = arith.constant 0 : index
    %c0_132 = arith.constant 0 : index
    %319 = vector.load %arg1[%c0_131, %c0_132] : memref<326x128xf32, #tpu.memory_space<vmem>>, vector<1x128xf32>
    %320 = vector.broadcast %318 : vector<2x1xf32> to vector<2x128xf32>
    %321 = vector.broadcast %319 : vector<1x128xf32> to vector<2x128xf32>
    %322 = arith.mulf %320, %321 : vector<2x128xf32>
    %c1_133 = arith.constant 1 : index
    %c0_134 = arith.constant 0 : index
    %323 = vector.load %arg1[%c1_133, %c0_134] : memref<326x128xf32, #tpu.memory_space<vmem>>, vector<32x128xf32>
    %cst_135 = arith.constant dense<0.000000e+00> : vector<2x128xf32>
    %324 = tpu.matmul %267, %323, %cst_135 {dimension_numbers = #tpu.dot_dimension_numbers<[1], [0], [0], [1], [0, 0, 1, 1], [], []>} : vector<2x32xf32>, vector<32x128xf32>, vector<2x128xf32> -> vector<2x128xf32>
    %325 = arith.addf %322, %324 : vector<2x128xf32>
    %c33_136 = arith.constant 33 : index
    %c0_137 = arith.constant 0 : index
    %326 = vector.load %arg1[%c33_136, %c0_137] : memref<326x128xf32, #tpu.memory_space<vmem>>, vector<1x128xf32>
    %327 = vector.broadcast %326 : vector<1x128xf32> to vector<2x128xf32>
    %328 = arith.addf %325, %327 : vector<2x128xf32>
    %cst_138 = arith.constant 5.000000e-01 : f32
    %329 = vector.broadcast %cst_138 : f32 to vector<2x128xf32>
    %330 = arith.mulf %329, %328 : vector<2x128xf32>
    %331 = math.tanh %330 : vector<2x128xf32>
    %cst_139 = arith.constant 5.000000e-01 : f32
    %332 = vector.broadcast %cst_139 : f32 to vector<2x128xf32>
    %333 = arith.mulf %332, %331 : vector<2x128xf32>
    %cst_140 = arith.constant 5.000000e-01 : f32
    %334 = vector.broadcast %cst_140 : f32 to vector<2x128xf32>
    %335 = arith.addf %333, %334 : vector<2x128xf32>
    %336 = vector.extract_strided_slice %335 {offsets = [0, 0], sizes = [2, 32], strides = [1, 1]} : vector<2x128xf32> to vector<2x32xf32>
    %337 = vector.extract_strided_slice %335 {offsets = [0, 32], sizes = [2, 32], strides = [1, 1]} : vector<2x128xf32> to vector<2x32xf32>
    %338 = vector.extract_strided_slice %335 {offsets = [0, 96], sizes = [2, 32], strides = [1, 1]} : vector<2x128xf32> to vector<2x32xf32>
    %339 = vector.extract_strided_slice %328 {offsets = [0, 64], sizes = [2, 32], strides = [1, 1]} : vector<2x128xf32> to vector<2x32xf32>
    %340 = math.tanh %339 : vector<2x32xf32>
    %341 = arith.mulf %337, %265 : vector<2x32xf32>
    %342 = arith.mulf %336, %340 : vector<2x32xf32>
    %343 = arith.addf %341, %342 : vector<2x32xf32>
    %344 = math.tanh %343 : vector<2x32xf32>
    %345 = arith.mulf %338, %344 : vector<2x32xf32>
    %c34_141 = arith.constant 34 : index
    %c0_142 = arith.constant 0 : index
    %346 = vector.load %arg1[%c34_141, %c0_142] : memref<326x128xf32, #tpu.memory_space<vmem>>, vector<32x128xf32>
    %cst_143 = arith.constant dense<0.000000e+00> : vector<2x128xf32>
    %347 = tpu.matmul %345, %346, %cst_143 {dimension_numbers = #tpu.dot_dimension_numbers<[1], [0], [0], [1], [0, 0, 1, 1], [], []>} : vector<2x32xf32>, vector<32x128xf32>, vector<2x128xf32> -> vector<2x128xf32>
    %c66_144 = arith.constant 66 : index
    %c0_145 = arith.constant 0 : index
    %348 = vector.load %arg1[%c66_144, %c0_145] : memref<326x128xf32, #tpu.memory_space<vmem>>, vector<32x128xf32>
    %cst_146 = arith.constant dense<0.000000e+00> : vector<2x128xf32>
    %349 = tpu.matmul %292, %348, %cst_146 {dimension_numbers = #tpu.dot_dimension_numbers<[1], [0], [0], [1], [0, 0, 1, 1], [], []>} : vector<2x32xf32>, vector<32x128xf32>, vector<2x128xf32> -> vector<2x128xf32>
    %350 = arith.addf %347, %349 : vector<2x128xf32>
    %c98_147 = arith.constant 98 : index
    %c0_148 = arith.constant 0 : index
    %351 = vector.load %arg1[%c98_147, %c0_148] : memref<326x128xf32, #tpu.memory_space<vmem>>, vector<1x128xf32>
    %352 = vector.broadcast %351 : vector<1x128xf32> to vector<2x128xf32>
    %353 = arith.addf %350, %352 : vector<2x128xf32>
    %cst_149 = arith.constant 5.000000e-01 : f32
    %354 = vector.broadcast %cst_149 : f32 to vector<2x128xf32>
    %355 = arith.mulf %354, %353 : vector<2x128xf32>
    %356 = math.tanh %355 : vector<2x128xf32>
    %cst_150 = arith.constant 5.000000e-01 : f32
    %357 = vector.broadcast %cst_150 : f32 to vector<2x128xf32>
    %358 = arith.mulf %357, %356 : vector<2x128xf32>
    %cst_151 = arith.constant 5.000000e-01 : f32
    %359 = vector.broadcast %cst_151 : f32 to vector<2x128xf32>
    %360 = arith.addf %358, %359 : vector<2x128xf32>
    %361 = vector.extract_strided_slice %360 {offsets = [0, 0], sizes = [2, 32], strides = [1, 1]} : vector<2x128xf32> to vector<2x32xf32>
    %362 = vector.extract_strided_slice %360 {offsets = [0, 32], sizes = [2, 32], strides = [1, 1]} : vector<2x128xf32> to vector<2x32xf32>
    %363 = vector.extract_strided_slice %360 {offsets = [0, 96], sizes = [2, 32], strides = [1, 1]} : vector<2x128xf32> to vector<2x32xf32>
    %364 = vector.extract_strided_slice %353 {offsets = [0, 64], sizes = [2, 32], strides = [1, 1]} : vector<2x128xf32> to vector<2x32xf32>
    %365 = math.tanh %364 : vector<2x32xf32>
    %366 = arith.mulf %362, %290 : vector<2x32xf32>
    %367 = arith.mulf %361, %365 : vector<2x32xf32>
    %368 = arith.addf %366, %367 : vector<2x32xf32>
    %369 = math.tanh %368 : vector<2x32xf32>
    %370 = arith.mulf %363, %369 : vector<2x32xf32>
    %c99_152 = arith.constant 99 : index
    %c0_153 = arith.constant 0 : index
    %371 = vector.load %arg1[%c99_152, %c0_153] : memref<326x128xf32, #tpu.memory_space<vmem>>, vector<32x128xf32>
    %cst_154 = arith.constant dense<0.000000e+00> : vector<2x128xf32>
    %372 = tpu.matmul %370, %371, %cst_154 {dimension_numbers = #tpu.dot_dimension_numbers<[1], [0], [0], [1], [0, 0, 1, 1], [], []>} : vector<2x32xf32>, vector<32x128xf32>, vector<2x128xf32> -> vector<2x128xf32>
    %c131_155 = arith.constant 131 : index
    %c0_156 = arith.constant 0 : index
    %373 = vector.load %arg1[%c131_155, %c0_156] : memref<326x128xf32, #tpu.memory_space<vmem>>, vector<32x128xf32>
    %cst_157 = arith.constant dense<0.000000e+00> : vector<2x128xf32>
    %374 = tpu.matmul %317, %373, %cst_157 {dimension_numbers = #tpu.dot_dimension_numbers<[1], [0], [0], [1], [0, 0, 1, 1], [], []>} : vector<2x32xf32>, vector<32x128xf32>, vector<2x128xf32> -> vector<2x128xf32>
    %375 = arith.addf %372, %374 : vector<2x128xf32>
    %c163_158 = arith.constant 163 : index
    %c0_159 = arith.constant 0 : index
    %376 = vector.load %arg1[%c163_158, %c0_159] : memref<326x128xf32, #tpu.memory_space<vmem>>, vector<1x128xf32>
    %377 = vector.broadcast %376 : vector<1x128xf32> to vector<2x128xf32>
    %378 = arith.addf %375, %377 : vector<2x128xf32>
    %cst_160 = arith.constant 5.000000e-01 : f32
    %379 = vector.broadcast %cst_160 : f32 to vector<2x128xf32>
    %380 = arith.mulf %379, %378 : vector<2x128xf32>
    %381 = math.tanh %380 : vector<2x128xf32>
    %cst_161 = arith.constant 5.000000e-01 : f32
    %382 = vector.broadcast %cst_161 : f32 to vector<2x128xf32>
    %383 = arith.mulf %382, %381 : vector<2x128xf32>
    %cst_162 = arith.constant 5.000000e-01 : f32
    %384 = vector.broadcast %cst_162 : f32 to vector<2x128xf32>
    %385 = arith.addf %383, %384 : vector<2x128xf32>
    %386 = vector.extract_strided_slice %385 {offsets = [0, 0], sizes = [2, 32], strides = [1, 1]} : vector<2x128xf32> to vector<2x32xf32>
    %387 = vector.extract_strided_slice %385 {offsets = [0, 32], sizes = [2, 32], strides = [1, 1]} : vector<2x128xf32> to vector<2x32xf32>
    %388 = vector.extract_strided_slice %385 {offsets = [0, 96], sizes = [2, 32], strides = [1, 1]} : vector<2x128xf32> to vector<2x32xf32>
    %389 = vector.extract_strided_slice %378 {offsets = [0, 64], sizes = [2, 32], strides = [1, 1]} : vector<2x128xf32> to vector<2x32xf32>
    %390 = math.tanh %389 : vector<2x32xf32>
    %391 = arith.mulf %387, %315 : vector<2x32xf32>
    %392 = arith.mulf %386, %390 : vector<2x32xf32>
    %393 = arith.addf %391, %392 : vector<2x32xf32>
    %394 = math.tanh %393 : vector<2x32xf32>
    %395 = arith.mulf %388, %394 : vector<2x32xf32>
    %c0_163 = arith.constant 0 : index
    %c5 = arith.constant 5 : index
    %396 = vector.load %arg0[%c0_163, %c5] : memref<2x8xf32, #tpu.memory_space<vmem>>, vector<2x1xf32>
    %c0_164 = arith.constant 0 : index
    %c0_165 = arith.constant 0 : index
    %397 = vector.load %arg1[%c0_164, %c0_165] : memref<326x128xf32, #tpu.memory_space<vmem>>, vector<1x128xf32>
    %398 = vector.broadcast %396 : vector<2x1xf32> to vector<2x128xf32>
    %399 = vector.broadcast %397 : vector<1x128xf32> to vector<2x128xf32>
    %400 = arith.mulf %398, %399 : vector<2x128xf32>
    %c1_166 = arith.constant 1 : index
    %c0_167 = arith.constant 0 : index
    %401 = vector.load %arg1[%c1_166, %c0_167] : memref<326x128xf32, #tpu.memory_space<vmem>>, vector<32x128xf32>
    %cst_168 = arith.constant dense<0.000000e+00> : vector<2x128xf32>
    %402 = tpu.matmul %345, %401, %cst_168 {dimension_numbers = #tpu.dot_dimension_numbers<[1], [0], [0], [1], [0, 0, 1, 1], [], []>} : vector<2x32xf32>, vector<32x128xf32>, vector<2x128xf32> -> vector<2x128xf32>
    %403 = arith.addf %400, %402 : vector<2x128xf32>
    %c33_169 = arith.constant 33 : index
    %c0_170 = arith.constant 0 : index
    %404 = vector.load %arg1[%c33_169, %c0_170] : memref<326x128xf32, #tpu.memory_space<vmem>>, vector<1x128xf32>
    %405 = vector.broadcast %404 : vector<1x128xf32> to vector<2x128xf32>
    %406 = arith.addf %403, %405 : vector<2x128xf32>
    %cst_171 = arith.constant 5.000000e-01 : f32
    %407 = vector.broadcast %cst_171 : f32 to vector<2x128xf32>
    %408 = arith.mulf %407, %406 : vector<2x128xf32>
    %409 = math.tanh %408 : vector<2x128xf32>
    %cst_172 = arith.constant 5.000000e-01 : f32
    %410 = vector.broadcast %cst_172 : f32 to vector<2x128xf32>
    %411 = arith.mulf %410, %409 : vector<2x128xf32>
    %cst_173 = arith.constant 5.000000e-01 : f32
    %412 = vector.broadcast %cst_173 : f32 to vector<2x128xf32>
    %413 = arith.addf %411, %412 : vector<2x128xf32>
    %414 = vector.extract_strided_slice %413 {offsets = [0, 0], sizes = [2, 32], strides = [1, 1]} : vector<2x128xf32> to vector<2x32xf32>
    %415 = vector.extract_strided_slice %413 {offsets = [0, 32], sizes = [2, 32], strides = [1, 1]} : vector<2x128xf32> to vector<2x32xf32>
    %416 = vector.extract_strided_slice %413 {offsets = [0, 96], sizes = [2, 32], strides = [1, 1]} : vector<2x128xf32> to vector<2x32xf32>
    %417 = vector.extract_strided_slice %406 {offsets = [0, 64], sizes = [2, 32], strides = [1, 1]} : vector<2x128xf32> to vector<2x32xf32>
    %418 = math.tanh %417 : vector<2x32xf32>
    %419 = arith.mulf %415, %343 : vector<2x32xf32>
    %420 = arith.mulf %414, %418 : vector<2x32xf32>
    %421 = arith.addf %419, %420 : vector<2x32xf32>
    %422 = math.tanh %421 : vector<2x32xf32>
    %423 = arith.mulf %416, %422 : vector<2x32xf32>
    %c34_174 = arith.constant 34 : index
    %c0_175 = arith.constant 0 : index
    %424 = vector.load %arg1[%c34_174, %c0_175] : memref<326x128xf32, #tpu.memory_space<vmem>>, vector<32x128xf32>
    %cst_176 = arith.constant dense<0.000000e+00> : vector<2x128xf32>
    %425 = tpu.matmul %423, %424, %cst_176 {dimension_numbers = #tpu.dot_dimension_numbers<[1], [0], [0], [1], [0, 0, 1, 1], [], []>} : vector<2x32xf32>, vector<32x128xf32>, vector<2x128xf32> -> vector<2x128xf32>
    %c66_177 = arith.constant 66 : index
    %c0_178 = arith.constant 0 : index
    %426 = vector.load %arg1[%c66_177, %c0_178] : memref<326x128xf32, #tpu.memory_space<vmem>>, vector<32x128xf32>
    %cst_179 = arith.constant dense<0.000000e+00> : vector<2x128xf32>
    %427 = tpu.matmul %370, %426, %cst_179 {dimension_numbers = #tpu.dot_dimension_numbers<[1], [0], [0], [1], [0, 0, 1, 1], [], []>} : vector<2x32xf32>, vector<32x128xf32>, vector<2x128xf32> -> vector<2x128xf32>
    %428 = arith.addf %425, %427 : vector<2x128xf32>
    %c98_180 = arith.constant 98 : index
    %c0_181 = arith.constant 0 : index
    %429 = vector.load %arg1[%c98_180, %c0_181] : memref<326x128xf32, #tpu.memory_space<vmem>>, vector<1x128xf32>
    %430 = vector.broadcast %429 : vector<1x128xf32> to vector<2x128xf32>
    %431 = arith.addf %428, %430 : vector<2x128xf32>
    %cst_182 = arith.constant 5.000000e-01 : f32
    %432 = vector.broadcast %cst_182 : f32 to vector<2x128xf32>
    %433 = arith.mulf %432, %431 : vector<2x128xf32>
    %434 = math.tanh %433 : vector<2x128xf32>
    %cst_183 = arith.constant 5.000000e-01 : f32
    %435 = vector.broadcast %cst_183 : f32 to vector<2x128xf32>
    %436 = arith.mulf %435, %434 : vector<2x128xf32>
    %cst_184 = arith.constant 5.000000e-01 : f32
    %437 = vector.broadcast %cst_184 : f32 to vector<2x128xf32>
    %438 = arith.addf %436, %437 : vector<2x128xf32>
    %439 = vector.extract_strided_slice %438 {offsets = [0, 0], sizes = [2, 32], strides = [1, 1]} : vector<2x128xf32> to vector<2x32xf32>
    %440 = vector.extract_strided_slice %438 {offsets = [0, 32], sizes = [2, 32], strides = [1, 1]} : vector<2x128xf32> to vector<2x32xf32>
    %441 = vector.extract_strided_slice %438 {offsets = [0, 96], sizes = [2, 32], strides = [1, 1]} : vector<2x128xf32> to vector<2x32xf32>
    %442 = vector.extract_strided_slice %431 {offsets = [0, 64], sizes = [2, 32], strides = [1, 1]} : vector<2x128xf32> to vector<2x32xf32>
    %443 = math.tanh %442 : vector<2x32xf32>
    %444 = arith.mulf %440, %368 : vector<2x32xf32>
    %445 = arith.mulf %439, %443 : vector<2x32xf32>
    %446 = arith.addf %444, %445 : vector<2x32xf32>
    %447 = math.tanh %446 : vector<2x32xf32>
    %448 = arith.mulf %441, %447 : vector<2x32xf32>
    %c99_185 = arith.constant 99 : index
    %c0_186 = arith.constant 0 : index
    %449 = vector.load %arg1[%c99_185, %c0_186] : memref<326x128xf32, #tpu.memory_space<vmem>>, vector<32x128xf32>
    %cst_187 = arith.constant dense<0.000000e+00> : vector<2x128xf32>
    %450 = tpu.matmul %448, %449, %cst_187 {dimension_numbers = #tpu.dot_dimension_numbers<[1], [0], [0], [1], [0, 0, 1, 1], [], []>} : vector<2x32xf32>, vector<32x128xf32>, vector<2x128xf32> -> vector<2x128xf32>
    %c131_188 = arith.constant 131 : index
    %c0_189 = arith.constant 0 : index
    %451 = vector.load %arg1[%c131_188, %c0_189] : memref<326x128xf32, #tpu.memory_space<vmem>>, vector<32x128xf32>
    %cst_190 = arith.constant dense<0.000000e+00> : vector<2x128xf32>
    %452 = tpu.matmul %395, %451, %cst_190 {dimension_numbers = #tpu.dot_dimension_numbers<[1], [0], [0], [1], [0, 0, 1, 1], [], []>} : vector<2x32xf32>, vector<32x128xf32>, vector<2x128xf32> -> vector<2x128xf32>
    %453 = arith.addf %450, %452 : vector<2x128xf32>
    %c163_191 = arith.constant 163 : index
    %c0_192 = arith.constant 0 : index
    %454 = vector.load %arg1[%c163_191, %c0_192] : memref<326x128xf32, #tpu.memory_space<vmem>>, vector<1x128xf32>
    %455 = vector.broadcast %454 : vector<1x128xf32> to vector<2x128xf32>
    %456 = arith.addf %453, %455 : vector<2x128xf32>
    %cst_193 = arith.constant 5.000000e-01 : f32
    %457 = vector.broadcast %cst_193 : f32 to vector<2x128xf32>
    %458 = arith.mulf %457, %456 : vector<2x128xf32>
    %459 = math.tanh %458 : vector<2x128xf32>
    %cst_194 = arith.constant 5.000000e-01 : f32
    %460 = vector.broadcast %cst_194 : f32 to vector<2x128xf32>
    %461 = arith.mulf %460, %459 : vector<2x128xf32>
    %cst_195 = arith.constant 5.000000e-01 : f32
    %462 = vector.broadcast %cst_195 : f32 to vector<2x128xf32>
    %463 = arith.addf %461, %462 : vector<2x128xf32>
    %464 = vector.extract_strided_slice %463 {offsets = [0, 0], sizes = [2, 32], strides = [1, 1]} : vector<2x128xf32> to vector<2x32xf32>
    %465 = vector.extract_strided_slice %463 {offsets = [0, 32], sizes = [2, 32], strides = [1, 1]} : vector<2x128xf32> to vector<2x32xf32>
    %466 = vector.extract_strided_slice %463 {offsets = [0, 96], sizes = [2, 32], strides = [1, 1]} : vector<2x128xf32> to vector<2x32xf32>
    %467 = vector.extract_strided_slice %456 {offsets = [0, 64], sizes = [2, 32], strides = [1, 1]} : vector<2x128xf32> to vector<2x32xf32>
    %468 = math.tanh %467 : vector<2x32xf32>
    %469 = arith.mulf %465, %393 : vector<2x32xf32>
    %470 = arith.mulf %464, %468 : vector<2x32xf32>
    %471 = arith.addf %469, %470 : vector<2x32xf32>
    %472 = math.tanh %471 : vector<2x32xf32>
    %473 = arith.mulf %466, %472 : vector<2x32xf32>
    %c0_196 = arith.constant 0 : index
    %c6 = arith.constant 6 : index
    %474 = vector.load %arg0[%c0_196, %c6] : memref<2x8xf32, #tpu.memory_space<vmem>>, vector<2x1xf32>
    %c0_197 = arith.constant 0 : index
    %c0_198 = arith.constant 0 : index
    %475 = vector.load %arg1[%c0_197, %c0_198] : memref<326x128xf32, #tpu.memory_space<vmem>>, vector<1x128xf32>
    %476 = vector.broadcast %474 : vector<2x1xf32> to vector<2x128xf32>
    %477 = vector.broadcast %475 : vector<1x128xf32> to vector<2x128xf32>
    %478 = arith.mulf %476, %477 : vector<2x128xf32>
    %c1_199 = arith.constant 1 : index
    %c0_200 = arith.constant 0 : index
    %479 = vector.load %arg1[%c1_199, %c0_200] : memref<326x128xf32, #tpu.memory_space<vmem>>, vector<32x128xf32>
    %cst_201 = arith.constant dense<0.000000e+00> : vector<2x128xf32>
    %480 = tpu.matmul %423, %479, %cst_201 {dimension_numbers = #tpu.dot_dimension_numbers<[1], [0], [0], [1], [0, 0, 1, 1], [], []>} : vector<2x32xf32>, vector<32x128xf32>, vector<2x128xf32> -> vector<2x128xf32>
    %481 = arith.addf %478, %480 : vector<2x128xf32>
    %c33_202 = arith.constant 33 : index
    %c0_203 = arith.constant 0 : index
    %482 = vector.load %arg1[%c33_202, %c0_203] : memref<326x128xf32, #tpu.memory_space<vmem>>, vector<1x128xf32>
    %483 = vector.broadcast %482 : vector<1x128xf32> to vector<2x128xf32>
    %484 = arith.addf %481, %483 : vector<2x128xf32>
    %cst_204 = arith.constant 5.000000e-01 : f32
    %485 = vector.broadcast %cst_204 : f32 to vector<2x128xf32>
    %486 = arith.mulf %485, %484 : vector<2x128xf32>
    %487 = math.tanh %486 : vector<2x128xf32>
    %cst_205 = arith.constant 5.000000e-01 : f32
    %488 = vector.broadcast %cst_205 : f32 to vector<2x128xf32>
    %489 = arith.mulf %488, %487 : vector<2x128xf32>
    %cst_206 = arith.constant 5.000000e-01 : f32
    %490 = vector.broadcast %cst_206 : f32 to vector<2x128xf32>
    %491 = arith.addf %489, %490 : vector<2x128xf32>
    %492 = vector.extract_strided_slice %491 {offsets = [0, 0], sizes = [2, 32], strides = [1, 1]} : vector<2x128xf32> to vector<2x32xf32>
    %493 = vector.extract_strided_slice %491 {offsets = [0, 32], sizes = [2, 32], strides = [1, 1]} : vector<2x128xf32> to vector<2x32xf32>
    %494 = vector.extract_strided_slice %491 {offsets = [0, 96], sizes = [2, 32], strides = [1, 1]} : vector<2x128xf32> to vector<2x32xf32>
    %495 = vector.extract_strided_slice %484 {offsets = [0, 64], sizes = [2, 32], strides = [1, 1]} : vector<2x128xf32> to vector<2x32xf32>
    %496 = math.tanh %495 : vector<2x32xf32>
    %497 = arith.mulf %493, %421 : vector<2x32xf32>
    %498 = arith.mulf %492, %496 : vector<2x32xf32>
    %499 = arith.addf %497, %498 : vector<2x32xf32>
    %500 = math.tanh %499 : vector<2x32xf32>
    %501 = arith.mulf %494, %500 : vector<2x32xf32>
    %c34_207 = arith.constant 34 : index
    %c0_208 = arith.constant 0 : index
    %502 = vector.load %arg1[%c34_207, %c0_208] : memref<326x128xf32, #tpu.memory_space<vmem>>, vector<32x128xf32>
    %cst_209 = arith.constant dense<0.000000e+00> : vector<2x128xf32>
    %503 = tpu.matmul %501, %502, %cst_209 {dimension_numbers = #tpu.dot_dimension_numbers<[1], [0], [0], [1], [0, 0, 1, 1], [], []>} : vector<2x32xf32>, vector<32x128xf32>, vector<2x128xf32> -> vector<2x128xf32>
    %c66_210 = arith.constant 66 : index
    %c0_211 = arith.constant 0 : index
    %504 = vector.load %arg1[%c66_210, %c0_211] : memref<326x128xf32, #tpu.memory_space<vmem>>, vector<32x128xf32>
    %cst_212 = arith.constant dense<0.000000e+00> : vector<2x128xf32>
    %505 = tpu.matmul %448, %504, %cst_212 {dimension_numbers = #tpu.dot_dimension_numbers<[1], [0], [0], [1], [0, 0, 1, 1], [], []>} : vector<2x32xf32>, vector<32x128xf32>, vector<2x128xf32> -> vector<2x128xf32>
    %506 = arith.addf %503, %505 : vector<2x128xf32>
    %c98_213 = arith.constant 98 : index
    %c0_214 = arith.constant 0 : index
    %507 = vector.load %arg1[%c98_213, %c0_214] : memref<326x128xf32, #tpu.memory_space<vmem>>, vector<1x128xf32>
    %508 = vector.broadcast %507 : vector<1x128xf32> to vector<2x128xf32>
    %509 = arith.addf %506, %508 : vector<2x128xf32>
    %cst_215 = arith.constant 5.000000e-01 : f32
    %510 = vector.broadcast %cst_215 : f32 to vector<2x128xf32>
    %511 = arith.mulf %510, %509 : vector<2x128xf32>
    %512 = math.tanh %511 : vector<2x128xf32>
    %cst_216 = arith.constant 5.000000e-01 : f32
    %513 = vector.broadcast %cst_216 : f32 to vector<2x128xf32>
    %514 = arith.mulf %513, %512 : vector<2x128xf32>
    %cst_217 = arith.constant 5.000000e-01 : f32
    %515 = vector.broadcast %cst_217 : f32 to vector<2x128xf32>
    %516 = arith.addf %514, %515 : vector<2x128xf32>
    %517 = vector.extract_strided_slice %516 {offsets = [0, 0], sizes = [2, 32], strides = [1, 1]} : vector<2x128xf32> to vector<2x32xf32>
    %518 = vector.extract_strided_slice %516 {offsets = [0, 32], sizes = [2, 32], strides = [1, 1]} : vector<2x128xf32> to vector<2x32xf32>
    %519 = vector.extract_strided_slice %516 {offsets = [0, 96], sizes = [2, 32], strides = [1, 1]} : vector<2x128xf32> to vector<2x32xf32>
    %520 = vector.extract_strided_slice %509 {offsets = [0, 64], sizes = [2, 32], strides = [1, 1]} : vector<2x128xf32> to vector<2x32xf32>
    %521 = math.tanh %520 : vector<2x32xf32>
    %522 = arith.mulf %518, %446 : vector<2x32xf32>
    %523 = arith.mulf %517, %521 : vector<2x32xf32>
    %524 = arith.addf %522, %523 : vector<2x32xf32>
    %525 = math.tanh %524 : vector<2x32xf32>
    %526 = arith.mulf %519, %525 : vector<2x32xf32>
    %c99_218 = arith.constant 99 : index
    %c0_219 = arith.constant 0 : index
    %527 = vector.load %arg1[%c99_218, %c0_219] : memref<326x128xf32, #tpu.memory_space<vmem>>, vector<32x128xf32>
    %cst_220 = arith.constant dense<0.000000e+00> : vector<2x128xf32>
    %528 = tpu.matmul %526, %527, %cst_220 {dimension_numbers = #tpu.dot_dimension_numbers<[1], [0], [0], [1], [0, 0, 1, 1], [], []>} : vector<2x32xf32>, vector<32x128xf32>, vector<2x128xf32> -> vector<2x128xf32>
    %c131_221 = arith.constant 131 : index
    %c0_222 = arith.constant 0 : index
    %529 = vector.load %arg1[%c131_221, %c0_222] : memref<326x128xf32, #tpu.memory_space<vmem>>, vector<32x128xf32>
    %cst_223 = arith.constant dense<0.000000e+00> : vector<2x128xf32>
    %530 = tpu.matmul %473, %529, %cst_223 {dimension_numbers = #tpu.dot_dimension_numbers<[1], [0], [0], [1], [0, 0, 1, 1], [], []>} : vector<2x32xf32>, vector<32x128xf32>, vector<2x128xf32> -> vector<2x128xf32>
    %531 = arith.addf %528, %530 : vector<2x128xf32>
    %c163_224 = arith.constant 163 : index
    %c0_225 = arith.constant 0 : index
    %532 = vector.load %arg1[%c163_224, %c0_225] : memref<326x128xf32, #tpu.memory_space<vmem>>, vector<1x128xf32>
    %533 = vector.broadcast %532 : vector<1x128xf32> to vector<2x128xf32>
    %534 = arith.addf %531, %533 : vector<2x128xf32>
    %cst_226 = arith.constant 5.000000e-01 : f32
    %535 = vector.broadcast %cst_226 : f32 to vector<2x128xf32>
    %536 = arith.mulf %535, %534 : vector<2x128xf32>
    %537 = math.tanh %536 : vector<2x128xf32>
    %cst_227 = arith.constant 5.000000e-01 : f32
    %538 = vector.broadcast %cst_227 : f32 to vector<2x128xf32>
    %539 = arith.mulf %538, %537 : vector<2x128xf32>
    %cst_228 = arith.constant 5.000000e-01 : f32
    %540 = vector.broadcast %cst_228 : f32 to vector<2x128xf32>
    %541 = arith.addf %539, %540 : vector<2x128xf32>
    %542 = vector.extract_strided_slice %541 {offsets = [0, 0], sizes = [2, 32], strides = [1, 1]} : vector<2x128xf32> to vector<2x32xf32>
    %543 = vector.extract_strided_slice %541 {offsets = [0, 32], sizes = [2, 32], strides = [1, 1]} : vector<2x128xf32> to vector<2x32xf32>
    %544 = vector.extract_strided_slice %541 {offsets = [0, 96], sizes = [2, 32], strides = [1, 1]} : vector<2x128xf32> to vector<2x32xf32>
    %545 = vector.extract_strided_slice %534 {offsets = [0, 64], sizes = [2, 32], strides = [1, 1]} : vector<2x128xf32> to vector<2x32xf32>
    %546 = math.tanh %545 : vector<2x32xf32>
    %547 = arith.mulf %543, %471 : vector<2x32xf32>
    %548 = arith.mulf %542, %546 : vector<2x32xf32>
    %549 = arith.addf %547, %548 : vector<2x32xf32>
    %550 = math.tanh %549 : vector<2x32xf32>
    %551 = arith.mulf %544, %550 : vector<2x32xf32>
    %c0_229 = arith.constant 0 : index
    %c7 = arith.constant 7 : index
    %552 = vector.load %arg0[%c0_229, %c7] : memref<2x8xf32, #tpu.memory_space<vmem>>, vector<2x1xf32>
    %c0_230 = arith.constant 0 : index
    %c0_231 = arith.constant 0 : index
    %553 = vector.load %arg1[%c0_230, %c0_231] : memref<326x128xf32, #tpu.memory_space<vmem>>, vector<1x128xf32>
    %554 = vector.broadcast %552 : vector<2x1xf32> to vector<2x128xf32>
    %555 = vector.broadcast %553 : vector<1x128xf32> to vector<2x128xf32>
    %556 = arith.mulf %554, %555 : vector<2x128xf32>
    %c1_232 = arith.constant 1 : index
    %c0_233 = arith.constant 0 : index
    %557 = vector.load %arg1[%c1_232, %c0_233] : memref<326x128xf32, #tpu.memory_space<vmem>>, vector<32x128xf32>
    %cst_234 = arith.constant dense<0.000000e+00> : vector<2x128xf32>
    %558 = tpu.matmul %501, %557, %cst_234 {dimension_numbers = #tpu.dot_dimension_numbers<[1], [0], [0], [1], [0, 0, 1, 1], [], []>} : vector<2x32xf32>, vector<32x128xf32>, vector<2x128xf32> -> vector<2x128xf32>
    %559 = arith.addf %556, %558 : vector<2x128xf32>
    %c33_235 = arith.constant 33 : index
    %c0_236 = arith.constant 0 : index
    %560 = vector.load %arg1[%c33_235, %c0_236] : memref<326x128xf32, #tpu.memory_space<vmem>>, vector<1x128xf32>
    %561 = vector.broadcast %560 : vector<1x128xf32> to vector<2x128xf32>
    %562 = arith.addf %559, %561 : vector<2x128xf32>
    %cst_237 = arith.constant 5.000000e-01 : f32
    %563 = vector.broadcast %cst_237 : f32 to vector<2x128xf32>
    %564 = arith.mulf %563, %562 : vector<2x128xf32>
    %565 = math.tanh %564 : vector<2x128xf32>
    %cst_238 = arith.constant 5.000000e-01 : f32
    %566 = vector.broadcast %cst_238 : f32 to vector<2x128xf32>
    %567 = arith.mulf %566, %565 : vector<2x128xf32>
    %cst_239 = arith.constant 5.000000e-01 : f32
    %568 = vector.broadcast %cst_239 : f32 to vector<2x128xf32>
    %569 = arith.addf %567, %568 : vector<2x128xf32>
    %570 = vector.extract_strided_slice %569 {offsets = [0, 0], sizes = [2, 32], strides = [1, 1]} : vector<2x128xf32> to vector<2x32xf32>
    %571 = vector.extract_strided_slice %569 {offsets = [0, 32], sizes = [2, 32], strides = [1, 1]} : vector<2x128xf32> to vector<2x32xf32>
    %572 = vector.extract_strided_slice %569 {offsets = [0, 96], sizes = [2, 32], strides = [1, 1]} : vector<2x128xf32> to vector<2x32xf32>
    %573 = vector.extract_strided_slice %562 {offsets = [0, 64], sizes = [2, 32], strides = [1, 1]} : vector<2x128xf32> to vector<2x32xf32>
    %574 = math.tanh %573 : vector<2x32xf32>
    %575 = arith.mulf %571, %499 : vector<2x32xf32>
    %576 = arith.mulf %570, %574 : vector<2x32xf32>
    %577 = arith.addf %575, %576 : vector<2x32xf32>
    %578 = math.tanh %577 : vector<2x32xf32>
    %579 = arith.mulf %572, %578 : vector<2x32xf32>
    %c34_240 = arith.constant 34 : index
    %c0_241 = arith.constant 0 : index
    %580 = vector.load %arg1[%c34_240, %c0_241] : memref<326x128xf32, #tpu.memory_space<vmem>>, vector<32x128xf32>
    %cst_242 = arith.constant dense<0.000000e+00> : vector<2x128xf32>
    %581 = tpu.matmul %579, %580, %cst_242 {dimension_numbers = #tpu.dot_dimension_numbers<[1], [0], [0], [1], [0, 0, 1, 1], [], []>} : vector<2x32xf32>, vector<32x128xf32>, vector<2x128xf32> -> vector<2x128xf32>
    %c66_243 = arith.constant 66 : index
    %c0_244 = arith.constant 0 : index
    %582 = vector.load %arg1[%c66_243, %c0_244] : memref<326x128xf32, #tpu.memory_space<vmem>>, vector<32x128xf32>
    %cst_245 = arith.constant dense<0.000000e+00> : vector<2x128xf32>
    %583 = tpu.matmul %526, %582, %cst_245 {dimension_numbers = #tpu.dot_dimension_numbers<[1], [0], [0], [1], [0, 0, 1, 1], [], []>} : vector<2x32xf32>, vector<32x128xf32>, vector<2x128xf32> -> vector<2x128xf32>
    %584 = arith.addf %581, %583 : vector<2x128xf32>
    %c98_246 = arith.constant 98 : index
    %c0_247 = arith.constant 0 : index
    %585 = vector.load %arg1[%c98_246, %c0_247] : memref<326x128xf32, #tpu.memory_space<vmem>>, vector<1x128xf32>
    %586 = vector.broadcast %585 : vector<1x128xf32> to vector<2x128xf32>
    %587 = arith.addf %584, %586 : vector<2x128xf32>
    %cst_248 = arith.constant 5.000000e-01 : f32
    %588 = vector.broadcast %cst_248 : f32 to vector<2x128xf32>
    %589 = arith.mulf %588, %587 : vector<2x128xf32>
    %590 = math.tanh %589 : vector<2x128xf32>
    %cst_249 = arith.constant 5.000000e-01 : f32
    %591 = vector.broadcast %cst_249 : f32 to vector<2x128xf32>
    %592 = arith.mulf %591, %590 : vector<2x128xf32>
    %cst_250 = arith.constant 5.000000e-01 : f32
    %593 = vector.broadcast %cst_250 : f32 to vector<2x128xf32>
    %594 = arith.addf %592, %593 : vector<2x128xf32>
    %595 = vector.extract_strided_slice %594 {offsets = [0, 0], sizes = [2, 32], strides = [1, 1]} : vector<2x128xf32> to vector<2x32xf32>
    %596 = vector.extract_strided_slice %594 {offsets = [0, 32], sizes = [2, 32], strides = [1, 1]} : vector<2x128xf32> to vector<2x32xf32>
    %597 = vector.extract_strided_slice %594 {offsets = [0, 96], sizes = [2, 32], strides = [1, 1]} : vector<2x128xf32> to vector<2x32xf32>
    %598 = vector.extract_strided_slice %587 {offsets = [0, 64], sizes = [2, 32], strides = [1, 1]} : vector<2x128xf32> to vector<2x32xf32>
    %599 = math.tanh %598 : vector<2x32xf32>
    %600 = arith.mulf %596, %524 : vector<2x32xf32>
    %601 = arith.mulf %595, %599 : vector<2x32xf32>
    %602 = arith.addf %600, %601 : vector<2x32xf32>
    %603 = math.tanh %602 : vector<2x32xf32>
    %604 = arith.mulf %597, %603 : vector<2x32xf32>
    %c99_251 = arith.constant 99 : index
    %c0_252 = arith.constant 0 : index
    %605 = vector.load %arg1[%c99_251, %c0_252] : memref<326x128xf32, #tpu.memory_space<vmem>>, vector<32x128xf32>
    %cst_253 = arith.constant dense<0.000000e+00> : vector<2x128xf32>
    %606 = tpu.matmul %604, %605, %cst_253 {dimension_numbers = #tpu.dot_dimension_numbers<[1], [0], [0], [1], [0, 0, 1, 1], [], []>} : vector<2x32xf32>, vector<32x128xf32>, vector<2x128xf32> -> vector<2x128xf32>
    %c131_254 = arith.constant 131 : index
    %c0_255 = arith.constant 0 : index
    %607 = vector.load %arg1[%c131_254, %c0_255] : memref<326x128xf32, #tpu.memory_space<vmem>>, vector<32x128xf32>
    %cst_256 = arith.constant dense<0.000000e+00> : vector<2x128xf32>
    %608 = tpu.matmul %551, %607, %cst_256 {dimension_numbers = #tpu.dot_dimension_numbers<[1], [0], [0], [1], [0, 0, 1, 1], [], []>} : vector<2x32xf32>, vector<32x128xf32>, vector<2x128xf32> -> vector<2x128xf32>
    %609 = arith.addf %606, %608 : vector<2x128xf32>
    %c163_257 = arith.constant 163 : index
    %c0_258 = arith.constant 0 : index
    %610 = vector.load %arg1[%c163_257, %c0_258] : memref<326x128xf32, #tpu.memory_space<vmem>>, vector<1x128xf32>
    %611 = vector.broadcast %610 : vector<1x128xf32> to vector<2x128xf32>
    %612 = arith.addf %609, %611 : vector<2x128xf32>
    %cst_259 = arith.constant 5.000000e-01 : f32
    %613 = vector.broadcast %cst_259 : f32 to vector<2x128xf32>
    %614 = arith.mulf %613, %612 : vector<2x128xf32>
    %615 = math.tanh %614 : vector<2x128xf32>
    %cst_260 = arith.constant 5.000000e-01 : f32
    %616 = vector.broadcast %cst_260 : f32 to vector<2x128xf32>
    %617 = arith.mulf %616, %615 : vector<2x128xf32>
    %cst_261 = arith.constant 5.000000e-01 : f32
    %618 = vector.broadcast %cst_261 : f32 to vector<2x128xf32>
    %619 = arith.addf %617, %618 : vector<2x128xf32>
    %620 = vector.extract_strided_slice %619 {offsets = [0, 0], sizes = [2, 32], strides = [1, 1]} : vector<2x128xf32> to vector<2x32xf32>
    %621 = vector.extract_strided_slice %619 {offsets = [0, 32], sizes = [2, 32], strides = [1, 1]} : vector<2x128xf32> to vector<2x32xf32>
    %622 = vector.extract_strided_slice %619 {offsets = [0, 96], sizes = [2, 32], strides = [1, 1]} : vector<2x128xf32> to vector<2x32xf32>
    %623 = vector.extract_strided_slice %612 {offsets = [0, 64], sizes = [2, 32], strides = [1, 1]} : vector<2x128xf32> to vector<2x32xf32>
    %624 = math.tanh %623 : vector<2x32xf32>
    %625 = arith.mulf %621, %549 : vector<2x32xf32>
    %626 = arith.mulf %620, %624 : vector<2x32xf32>
    %627 = arith.addf %625, %626 : vector<2x32xf32>
    %628 = math.tanh %627 : vector<2x32xf32>
    %629 = arith.mulf %622, %628 : vector<2x32xf32>
    %c164 = arith.constant 164 : index
    %c0_262 = arith.constant 0 : index
    %630 = vector.load %arg1[%c164, %c0_262] : memref<326x128xf32, #tpu.memory_space<vmem>>, vector<32x128xf32>
    %cst_263 = arith.constant dense<0.000000e+00> : vector<2x128xf32>
    %631 = tpu.matmul %629, %630, %cst_263 {dimension_numbers = #tpu.dot_dimension_numbers<[1], [0], [0], [1], [0, 0, 1, 1], [], []>} : vector<2x32xf32>, vector<32x128xf32>, vector<2x128xf32> -> vector<2x128xf32>
    %c196 = arith.constant 196 : index
    %c0_264 = arith.constant 0 : index
    %632 = vector.load %arg1[%c196, %c0_264] : memref<326x128xf32, #tpu.memory_space<vmem>>, vector<1x128xf32>
    %633 = vector.broadcast %632 : vector<1x128xf32> to vector<2x128xf32>
    %634 = arith.addf %631, %633 : vector<2x128xf32>
    %cst_265 = arith.constant 0.000000e+00 : f32
    %635 = vector.broadcast %cst_265 : f32 to vector<2x128xf32>
    %636 = arith.maximumf %634, %635 : vector<2x128xf32>
    %c197 = arith.constant 197 : index
    %c0_266 = arith.constant 0 : index
    %637 = vector.load %arg1[%c197, %c0_266] : memref<326x128xf32, #tpu.memory_space<vmem>>, vector<128x128xf32>
    %cst_267 = arith.constant dense<0.000000e+00> : vector<2x128xf32>
    %638 = tpu.matmul %636, %637, %cst_267 {dimension_numbers = #tpu.dot_dimension_numbers<[1], [0], [0], [1], [0, 0, 1, 1], [], []>} : vector<2x128xf32>, vector<128x128xf32>, vector<2x128xf32> -> vector<2x128xf32>
    %c325 = arith.constant 325 : index
    %c0_268 = arith.constant 0 : index
    %639 = vector.load %arg1[%c325, %c0_268] : memref<326x128xf32, #tpu.memory_space<vmem>>, vector<1x128xf32>
    %640 = vector.broadcast %639 : vector<1x128xf32> to vector<2x128xf32>
    %641 = arith.addf %638, %640 : vector<2x128xf32>
    %c0_269 = arith.constant 0 : index
    %c0_270 = arith.constant 0 : index
    %642 = vector.load %arg2[%c0_269, %c0_270] : memref<2x128xf32, #tpu.memory_space<vmem>>, vector<2x128xf32>
    tpu.vector_store %arg2[%c0_269, %c0_270], %641 {strides = array<i32>} : memref<2x128xf32, #tpu.memory_space<vmem>>, vector<2x128xf32>,
    return
  }
}

</mosaic_0001>

<bundles_post_ra>
// kernel: lstm_predictor_forward.1
= control target key start
LH: loop header
LB: loop body
LE: loop exit
PB: predicated region body
PF: predicated region fallthrough
CT: control target
= control target key end

     0   :  { %7 = vsyncpa [#allocation3], 0  ;;  %s5664_s0 = inlined_call_operand.hbm [shape: f32[2,8], index: 0, kind: input, shape index: {}]   ;;  %s5665_s1 = inlined_call_operand.hbm [shape: f32[326,128], index: 1, kind: input, shape index: {}]   ;;  %s5666_s2 = inlined_call_operand.hbm [shape: f32[2,128], index: 2, kind: output, shape index: {}]  }
   0x1   :  { %8 = vsyncpa [#allocation6], 0 }
   0x2   :  { %9 = vsyncpa [#allocation4], 0  ;;  %s4804_s9 = smov [#allocation2]   ;;  %s4805_s11 = smov [#allocation5]  }
   0x3   :  { %s16_s10 = sshll.u32 %s4804_s9, 4  ;;  %s25_s12 = sshll.u32 %s4805_s11, 4  ;;  %s17_s10 = int_to_ptr.vmem [resolvable:$true] %s16_s10  ;;  %s26_s12 = int_to_ptr.vmem [resolvable:$true] %s25_s12 }
   0x4   :  { %s4746_s13 = scalar_lea.vmem %s17_s10, 32  ;;  %p4751_p1 = scmp.lt.s32.totalorder %s17_s10, %s17_s10 }
   0x5   :  { %p4747_p0 = scmp.ne.s32.totalorder %s17_s10, %s4746_s13  ;;  %p4752_p2 = scmp.lt.s32.totalorder %s4746_s13, %s4746_s13 }
   0x7   :  { %p4753_p3 = por %p4752_p2, %p4751_p1 }
   0x9   :  { %p4754_p4 = pnand %p4753_p3, %p4747_p0 }
   0xb   :  { %4757 = shalt.err (!%p4754_p4)
}
   0xc   :  { %19 = dma.hbm_to_vmem [thread:$0]  %s5664_s0, 32, %s17_s10, [#allocation3]  }
   0xd   :  { %s4766_s16 = scalar_lea.vmem %s26_s12, 5248  ;;  %p4771_p6 = scmp.lt.s32.totalorder %s26_s12, %s26_s12 }
   0xe   :  { %p4767_p5 = scmp.ne.s32.totalorder %s26_s12, %s4766_s16  ;;  %p4772_p7 = scmp.lt.s32.totalorder %s4766_s16, %s4766_s16 }
  0x10   :  { %p4773_p8 = por %p4772_p7, %p4771_p6 }
  0x12   :  { %p4774_p9 = pnand %p4773_p8, %p4767_p5 }
  0x14   :  { %4777 = shalt.err (!%p4774_p9)
}
  0x15   :  { %s4806_s17 = smov 128   ;;  %s4807_s18 = smov 8  }
  0x16   :  { %31 = dma.hbm_to_vmem [thread:$0]  %s5665_s1, 5248, %s26_s12, [#allocation6], %s4806_s17, %s4806_s17, %s4807_s18  }
  0x17   :  { %4798 = dma.done.wait [#allocation3], 32  }
  0x18   :  { %4799 = vsyncadd [#allocation3], 4294967264 }
  0x19   :  { %4800 = dma.done.wait [#allocation6], 5248  }
  0x1a   :  { %4801 = vsyncadd [#allocation6], 4294962048  ;;  %v4808_v0 = vmov 0.0   ;;  %vm4809_vm0 = vmmov 0   ;;  %v4810_v1 = vmov 0   ;;  %v4848_v2 = vld [vmem:[#allocation5 + $0x19] sm:$0xff] }
  0x1b   :  { %4058 = vmatprep.subr.mxu0 %v4808_v0  ;;  %4066 = vmatprep.mubr.msk.f32.mxu0 %vm4809_vm0, %v4808_v0  ;;  %v4850_v3 = vld [vmem:[#allocation5 + $0x11] sm:$0xff]  ;;  %v4853_v4 = vld [vmem:[#allocation2] sm:$0x3]  ;;  %v4856_v5 = vld [vmem:[#allocation5 + $0x9] sm:$0xff]  ;;  %s4811_s0 = smov 64   ;;  %s4812_s1 = smov 32  }
  0x1c   :  { %4561 = vset.pattern.permute.xlu0 %v4810_v1  ;;  %4091 = vmatprep.subr.mxu1 %v4808_v0  ;;  %v4861_v6 = vld [vmem:[#allocation5 + $0x1] sm:$0xff]  ;;  %v4870_v7 = vld [vmem:[#allocation5] ss:$0 sm:$0xff]  ;;  %v4889_v27 = vld [vmem:[#allocation5 + $0x52] sm:$0xff]  ;;  %v4813_v38 = vmov 1   ;;  %vm54_vm1 = vcmask 261120  }
  0x1d   :  { %4099 = vmatprep.mubr.msk.f32.mxu1 %vm4809_vm0, %v4808_v0  ;;  %4059 = vmatpush3.msra.mxu0 %v4848_v2  ;;  %v4873_v11 = vld [vmem:[#allocation5 + $0x21] ss:$0 sm:$0xff]  ;;  %v4893_v28 = vld [vmem:[#allocation5 + $0x93] sm:$0xff]  ;;  %v4897_v29 = vld [vmem:[#allocation5 + $0x4a] sm:$0xff]  ;;  %s4820_s21 = smov [#allocation7]  }
  0x1e   :  { %4060 = vmatprep.subr.mxu0 %v4808_v0  ;;  %42 = vperm.xlu0 %4561, %v4853_v4   ;;  %v4885_v25 = vld [vmem:[#allocation5 + $0x5a] sm:$0xff]  ;;  %v4899_v30 = vld [vmem:[#allocation5 + $0x8b] sm:$0xff]  ;;  %v4905_v31 = vld [vmem:[#allocation5 + $0x42] sm:$0xff]  ;;  %s3782_s22 = sshll.u32 %s4820_s21, 4  ;;  %s3783_s22 = int_to_ptr.vmem [resolvable:$true] %s3782_s22 }
  0x1f   :  { %4061 = vmatpush3.msra.mxu0 %v4850_v3  ;;  %v4887_v26 = vld [vmem:[#allocation5 + $0x9b] sm:$0xff]  ;;  %v4907_v32 = vld [vmem:[#allocation5 + $0x83] sm:$0xff]  ;;  %v4921_v34 = vld [vmem:[#allocation5 + $0x32] sm:$0xff]  ;;  %4562 = vset.pattern.permute.xlu1 %v4813_v38  ;;  %s4778_s23 = scalar_lea.vmem %s3783_s22, 32  ;;  %p4783_p11 = scmp.lt.s32.totalorder %s3783_s22, %s3783_s22 }
  0x20   :  { %4062 = vmatprep.subr.mxu0 %v4808_v0  ;;  %4092 = vmatpush3.msra.mxu1 %v4887_v26  ;;  %v4913_v33 = vld [vmem:[#allocation5 + $0x3a] sm:$0xff]  ;;  %v4927_v36 = vld [vmem:[#allocation5 + $0x2a] sm:$0xff]  ;;  %v4933_v37 = vld [vmem:[#allocation5 + $0x22] sm:$0xff]  ;;  %p4779_p10 = scmp.ne.s32.totalorder %s3783_s22, %s4778_s23  ;;  %p4784_p12 = scmp.lt.s32.totalorder %s4778_s23, %s4778_s23 }
  0x21   :  { %4063 = vmatpush3.msra.mxu0 %v4856_v5  ;;  %4093 = vmatprep.subr.mxu1 %v4808_v0  ;;  %v4968_v49 = vld [vmem:[#allocation5 + $0x62] ss:$0 sm:$0xff] }
  0x22   :  { %4064 = vmatprep.subr.mxu0 %v4808_v0  ;;  %4094 = vmatpush3.msra.mxu1 %v4893_v28  ;;  %p4785_p13 = por %p4784_p12, %p4783_p11 }
  0x23   :  { %4065 = vmatpush3.msra.mxu0 %v4861_v6  ;;  %4095 = vmatprep.subr.mxu1 %v4808_v0 }
  0x24   :  { %4067 = vmatmul.mubr.f32.vlgmr.msra.gmra.mxu0 %v4808_v0  ;;  %4069 = vmatprep.subr.mxu0 %v4808_v0  ;;  %p4786_p0 = pnand %p4785_p13, %p4779_p10 }
  0x25   :  { %4077 = vmatprep.mubr.msk.f32.mxu0 %vm4809_vm0, %v4808_v0  ;;  %4070 = vmatpush3.msra.mxu0 %v4885_v25 }
  0x26   :  { %4071 = vmatprep.subr.mxu0 %v4808_v0  ;;  %4096 = vmatpush3.msra.mxu1 %v4899_v30 }
  0x27   :  { %4072 = vmatpush3.msra.mxu0 %v4889_v27  ;;  %4097 = vmatprep.subr.mxu1 %v4808_v0 }
  0x28   :  { %4073 = vmatprep.subr.mxu0 %v4808_v0  ;;  %4098 = vmatpush3.msra.mxu1 %v4907_v32 }
  0x29   :  { %4074 = vmatpush3.msra.mxu0 %v4897_v29  ;;  %4113 = vmatprep.subr.mxu1 %v4808_v0 }
  0x2a   :  { %4075 = vmatprep.subr.mxu0 %v4808_v0  ;;  %4100 = vmatmul.mubr.f32.vlgmr.msra.gmra.mxu1 %v4808_v0 }
  0x2b   :  { %4076 = vmatpush3.msra.mxu0 %v4905_v31  ;;  %4114 = vmatpush3.msra.mxu1 %v4848_v2 }
  0x2c   :  { %4078 = vmatmul.mubr.f32.vlgmr.msra.gmra.mxu0 %v4808_v0  ;;  %4080 = vmatprep.subr.mxu0 %v4808_v0 }
  0x2d   :  { %4081 = vmatpush3.msra.mxu0 %v4913_v33  ;;  %4115 = vmatprep.subr.mxu1 %v4808_v0 }
  0x2e   :  { %4082 = vmatprep.subr.mxu0 %v4808_v0  ;;  %4116 = vmatpush3.msra.mxu1 %v4850_v3 }
  0x2f   :  { %4083 = vmatpush3.msra.mxu0 %v4921_v34  ;;  %4117 = vmatprep.subr.mxu1 %v4808_v0 }
  0x30   :  { %4084 = vmatprep.subr.mxu0 %v4808_v0  ;;  %4118 = vmatpush3.msra.mxu1 %v4856_v5 }
  0x31   :  { %4085 = vmatpush3.msra.mxu0 %v4927_v36  ;;  %4119 = vmatprep.subr.mxu1 %v4808_v0 }
  0x32   :  { %4086 = vmatprep.subr.mxu0 %v4808_v0  ;;  %4088 = vmatprep.mubr.msk.f32.mxu0 %vm4809_vm0, %v4808_v0 }
  0x33   :  { %4087 = vmatpush3.msra.mxu0 %v4933_v37  ;;  %4120 = vmatpush3.msra.mxu1 %v4861_v6 }
  0x34   :  { %4121 = vmatprep.mubr.msk.f32.mxu1 %vm4809_vm0, %v4808_v0  ;;  %4102 = vmatprep.subr.mxu0 %v4808_v0 }
  0x35   :  { %4135 = vmatprep.subr.mxu1 %v4808_v0 }
  0x99   :  { %v43_v8 = vpop.permute.xlu0 %42 }
  0x9a   :  { %v49_v9 = vmul.f32 %v4870_v7, %v43_v8 }
  0xe4   :  { %v124_v10 = vpop.f32.mrf.mxu0 }
  0xe5   :  { %v128_v12 = vadd.f32 %v124_v10, %v49_v9 }
  0xe6   :  { %v4068_v13 = vpop.f32.mrf.mxu0 }
  0xe7   :  { %v134_v14 = vadd.f32 %v4873_v11, %v128_v12 }
  0xe9   :  { %4569 = vtanh.f32 %v134_v14  ;;  %v135_v16 = vmul.f32 0.5, %v134_v14 }
  0xea   :  { %v4951_v43 = vpop.f32.mrf.mxu1 }
  0xeb   :  { %4571 = vtanh.f32 %v135_v16 }
  0xec   :  { %v231_v41 = vpop.f32.mrf.mxu0  ;;  %v4101_v44 = vpop.f32.mrf.mxu1 }
  0xee   :  { %v4079_v42 = vpop.f32.mrf.mxu0 }
  0xf6   :  { %v4570_v15 = vpop.eup %4569 }
  0xf7   :  { %142 = vrot.lane.b32.xlu0 %v4570_v15, %s4811_s0 }
  0xf8   :  { %v4572_v17 = vpop.eup %4571 }
  0xf9   :  { %v137_v18 = vmul.f32 0.5, %v4572_v17 }
  0xfb   :  { %v4877_v19 = vadd.f32 0.5, %v137_v18 }
  0xfd   :  { %v140_v22 = vmul.f32 0.0, %v4877_v19 }
 0x169   :  { %v143_v20 = vpop.permute.xlu0 %142 }
 0x16a   :  { %v145_v21 = vmul.f32 %v143_v20, %v4877_v19 }
 0x16c   :  { %147 = vrot.lane.b32.xlu1 %v145_v21, %s4812_s1  ;;  %v4983_v21 = vld [vmem:[#allocation5 + $0x7b] sm:$0xff] }
 0x1de   :  { %v148_v23 = vpop.permute.xlu1 %147 }
 0x1df   :  { %v4882_v24 = vadd.f32 %v148_v23, %v140_v22  ;;  %v4985_v22 = vld [vmem:[#allocation5 + $0x73] sm:$0xff]  ;;  %v4989_v23 = vld [vmem:[#allocation5 + $0x6b] sm:$0xff] }
 0x1e1   :  { %4573 = vtanh.f32 %v4882_v24 }
 0x1ee   :  { %v4574_v35 = vpop.eup %4573 }
 0x1ef   :  { %153 = vrot.lane.b32.xlu1 %v4574_v35, %s4811_s0 }
 0x1f3   :  { %520 = vperm.xlu1 %4562, %v4853_v4  }
 0x261   :  { %v154_v39 = vpop.permute.xlu1 %153 }
 0x262   :  { %v156_v40 = vmul.f32 %v154_v39, %v4877_v19 }
 0x264   :  { %236 = vrot.lane.b32.xlu0 %v156_v40, %s4812_s1 }
 0x26e   :  { %v521_v46 = vpop.permute.xlu1 %520 }
 0x26f   :  { %v523_v47 = vmul.f32 %v4870_v7, %v521_v46 }
 0x2d6   :  { %v237_v45 = vpop.permute.xlu0 %236 }
 0x2d7   :  { %4089 = vmatmul.mubr.msk.f32.vlgmr.msra.gmra.mxu0 %vm54_vm1, %v237_v45  ;;  %4122 = vmatmul.mubr.msk.f32.vlgmr.msra.gmra.mxu1 %vm54_vm1, %v237_v45 }
 0x2d8   :  { %4136 = vmatpush3.msra.mxu1 %v4913_v33  ;;  %4110 = vmatprep.mubr.msk.f32.mxu0 %vm4809_vm0, %v4808_v0 }
 0x2d9   :  { %4137 = vmatprep.subr.mxu1 %v4808_v0  ;;  %4143 = vmatprep.mubr.msk.f32.mxu1 %vm4809_vm0, %v4808_v0 }
 0x2da   :  { %4138 = vmatpush3.msra.mxu1 %v4921_v34  ;;  %4103 = vmatpush3.msra.mxu0 %v4983_v21 }
 0x2db   :  { %4139 = vmatprep.subr.mxu1 %v4808_v0  ;;  %4104 = vmatprep.subr.mxu0 %v4808_v0 }
 0x2dc   :  { %4140 = vmatpush3.msra.mxu1 %v4927_v36  ;;  %4105 = vmatpush3.msra.mxu0 %v4985_v22 }
 0x2dd   :  { %4141 = vmatprep.subr.mxu1 %v4808_v0  ;;  %4106 = vmatprep.subr.mxu0 %v4808_v0 }
 0x2de   :  { %4142 = vmatpush3.msra.mxu1 %v4933_v37  ;;  %4107 = vmatpush3.msra.mxu0 %v4989_v23 }
 0x2df   :  { %4157 = vmatprep.subr.mxu1 %v4808_v0  ;;  %4108 = vmatprep.subr.mxu0 %v4808_v0 }
 0x397   :  { %v306_v48 = vpop.f32.mrf.mxu0  ;;  %v590_v50 = vpop.f32.mrf.mxu1 }
 0x398   :  { %v307_v51 = vadd.f32 %v306_v48, %v231_v41  ;;  %v594_v52 = vadd.f32 %v590_v50, %v523_v47  ;;  %v5039_v47 = vld [vmem:[#allocation5 + $0xa3] ss:$0 sm:$0xff] }
 0x399   :  { %v4090_v53 = vpop.f32.mrf.mxu0  ;;  %v4123_v54 = vpop.f32.mrf.mxu1 }
 0x39a   :  { %v315_v55 = vadd.f32 %v4968_v49, %v307_v51  ;;  %v595_v56 = vadd.f32 %v4873_v11, %v594_v52 }
 0x39c   :  { %4575 = vtanh.f32 %v315_v55  ;;  %v316_v59 = vmul.f32 0.5, %v315_v55  ;;  %v596_v60 = vmul.f32 0.5, %v595_v56 }
 0x39d   :  { %4577 = vtanh.f32 %v595_v56 }
 0x39e   :  { %4579 = vtanh.f32 %v316_v59 }
 0x39f   :  { %4581 = vtanh.f32 %v596_v60 }
 0x3a9   :  { %v4576_v57 = vpop.eup %4575 }
 0x3aa   :  { %v4578_v58 = vpop.eup %4577  ;;  %323 = vrot.lane.b32.xlu0 %v4576_v57, %s4811_s0 }
 0x3ab   :  { %603 = vrot.lane.b32.xlu1 %v4578_v58, %s4811_s0  ;;  %v4580_v61 = vpop.eup %4579 }
 0x3ac   :  { %v4582_v62 = vpop.eup %4581  ;;  %v318_v63 = vmul.f32 0.5, %v4580_v61 }
 0x3ad   :  { %v598_v1 = vmul.f32 0.5, %v4582_v62 }
 0x3ae   :  { %v319_v8 = vadd.f32 0.5, %v318_v63 }
 0x3af   :  { %v599_v10 = vadd.f32 0.5, %v598_v1 }
 0x3b0   :  { %v321_v15 = vmul.f32 0.0, %v319_v8 }
 0x3b1   :  { %v601_v17 = vmul.f32 %v599_v10, %v4882_v24  ;;  %v4993_v24 = vld [vmem:[#allocation5 + $0x63] sm:$0xff] }
 0x3b2   :  { %4109 = vmatpush3.msra.mxu0 %v4993_v24 }
 0x3b3   :  { %4124 = vmatprep.subr.mxu0 %v4808_v0 }
 0x41c   :  { %v324_v9 = vpop.permute.xlu0 %323 }
 0x41d   :  { %v326_v12 = vmul.f32 %v324_v9, %v319_v8  ;;  %v604_v13 = vpop.permute.xlu1 %603 }
 0x41e   :  { %v606_v14 = vmul.f32 %v604_v13, %v599_v10 }
 0x41f   :  { %328 = vrot.lane.b32.xlu0 %v326_v12, %s4812_s1 }
 0x420   :  { %608 = vrot.lane.b32.xlu1 %v606_v14, %s4812_s1 }
 0x491   :  { %v329_v16 = vpop.permute.xlu0 %328 }
 0x492   :  { %v4977_v18 = vadd.f32 %v329_v16, %v321_v15  ;;  %v609_v19 = vpop.permute.xlu1 %608 }
 0x493   :  { %v4979_v20 = vadd.f32 %v609_v19, %v601_v17 }
 0x494   :  { %4583 = vtanh.f32 %v4977_v18 }
 0x495   :  { %4585 = vtanh.f32 %v4979_v20 }
 0x4a1   :  { %v4584_v35 = vpop.eup %4583 }
 0x4a2   :  { %v4586_v38 = vpop.eup %4585  ;;  %334 = vrot.lane.b32.xlu0 %v4584_v35, %s4811_s0 }
 0x4a3   :  { %614 = vrot.lane.b32.xlu1 %v4586_v38, %s4811_s0 }
 0x514   :  { %v335_v39 = vpop.permute.xlu0 %334 }
 0x515   :  { %v337_v40 = vmul.f32 %v335_v39, %v319_v8  ;;  %v615_v41 = vpop.permute.xlu1 %614 }
 0x516   :  { %v617_v42 = vmul.f32 %v615_v41, %v599_v10 }
 0x517   :  { %417 = vrot.lane.b32.xlu0 %v337_v40, %s4812_s1 }
 0x518   :  { %689 = vrot.lane.b32.xlu1 %v617_v42, %s4812_s1 }
 0x589   :  { %v418_v44 = vpop.permute.xlu0 %417 }
 0x58a   :  { %v5003_v45 = vpop.permute.xlu1 %689  ;;  %4111 = vmatmul.mubr.msk.f32.vlgmr.msra.gmra.mxu0 %vm54_vm1, %v418_v44 }
 0x58b   :  { %4125 = vmatpush3.msra.mxu0 %v4885_v25  ;;  %4144 = vmatmul.mubr.msk.f32.vlgmr.msra.gmra.mxu1 %vm54_vm1, %v5003_v45 }
 0x58c   :  { %4126 = vmatprep.subr.mxu0 %v4808_v0  ;;  %4132 = vmatprep.mubr.msk.f32.mxu0 %vm4809_vm0, %v4808_v0 }
 0x58d   :  { %4127 = vmatpush3.msra.mxu0 %v4889_v27  ;;  %4158 = vmatpush3.msra.mxu1 %v4983_v21 }
 0x58e   :  { %4128 = vmatprep.subr.mxu0 %v4808_v0  ;;  %4159 = vmatprep.subr.mxu1 %v4808_v0 }
 0x58f   :  { %4129 = vmatpush3.msra.mxu0 %v4897_v29  ;;  %4160 = vmatpush3.msra.mxu1 %v4985_v22 }
 0x590   :  { %4130 = vmatprep.subr.mxu0 %v4808_v0  ;;  %4161 = vmatprep.subr.mxu1 %v4808_v0 }
 0x591   :  { %4131 = vmatpush3.msra.mxu0 %v4905_v31  ;;  %4162 = vmatpush3.msra.mxu1 %v4989_v23 }
 0x592   :  { %4133 = vmatmul.mubr.msk.f32.vlgmr.msra.gmra.mxu0 %vm54_vm1, %v418_v44  ;;  %4146 = vmatprep.subr.mxu0 %v4808_v0  ;;  %v4814_v44 = vmov 2  }
 0x593   :  { %4147 = vmatpush3.msra.mxu0 %v4887_v26  ;;  %4154 = vmatprep.mubr.msk.f32.mxu0 %vm4809_vm0, %v4808_v0 }
 0x594   :  { %4148 = vmatprep.subr.mxu0 %v4808_v0  ;;  %4163 = vmatprep.subr.mxu1 %v4808_v0 }
 0x595   :  { %4149 = vmatpush3.msra.mxu0 %v4893_v28  ;;  %4164 = vmatpush3.msra.mxu1 %v4993_v24 }
 0x596   :  { %4150 = vmatprep.subr.mxu0 %v4808_v0  ;;  %4165 = vmatprep.mubr.msk.f32.mxu1 %vm4809_vm0, %v4808_v0 }
 0x597   :  { %4151 = vmatpush3.msra.mxu0 %v4899_v30  ;;  %4179 = vmatprep.subr.mxu1 %v4808_v0 }
 0x598   :  { %4152 = vmatprep.subr.mxu0 %v4808_v0  ;;  %4563 = vset.pattern.permute.xlu0 %v4814_v44 }
 0x599   :  { %4153 = vmatpush3.msra.mxu0 %v4907_v32 }
 0x59a   :  { %4168 = vmatprep.subr.mxu0 %v4808_v0 }
 0x64a   :  { %v487_v46 = vpop.f32.mrf.mxu0 }
 0x64b   :  { %v488_v48 = vadd.f32 %v487_v46, %v4951_v43  ;;  %v759_v50 = vpop.f32.mrf.mxu1 }
 0x64c   :  { %v4112_v51 = vpop.f32.mrf.mxu0 }
 0x64d   :  { %v496_v52 = vadd.f32 %v5039_v47, %v488_v48  ;;  %v4145_v53 = vpop.f32.mrf.mxu1 }
 0x64f   :  { %4587 = vtanh.f32 %v496_v52  ;;  %v497_v60 = vmul.f32 0.5, %v496_v52 }
 0x652   :  { %v684_v54 = vpop.f32.mrf.mxu0 }
 0x653   :  { %v760_v55 = vadd.f32 %v759_v50, %v684_v54 }
 0x654   :  { %v4134_v56 = vpop.f32.mrf.mxu0 }
 0x655   :  { %v763_v57 = vadd.f32 %v4968_v49, %v760_v55 }
 0x657   :  { %4589 = vtanh.f32 %v763_v57  ;;  %v764_v43 = vmul.f32 0.5, %v763_v57 }
 0x658   :  { %4591 = vtanh.f32 %v497_v60 }
 0x659   :  { %4593 = vtanh.f32 %v764_v43 }
 0x65c   :  { %v4588_v58 = vpop.eup %4587 }
 0x65d   :  { %504 = vrot.lane.b32.xlu0 %v4588_v58, %s4811_s0 }
 0x664   :  { %v4590_v59 = vpop.eup %4589 }
 0x665   :  { %771 = vrot.lane.b32.xlu1 %v4590_v59, %s4811_s0  ;;  %v4592_v61 = vpop.eup %4591 }
 0x666   :  { %v499_v62 = vmul.f32 0.5, %v4592_v61  ;;  %v4594_v1 = vpop.eup %4593 }
 0x667   :  { %v766_v10 = vmul.f32 0.5, %v4594_v1 }
 0x668   :  { %v500_v63 = vadd.f32 0.5, %v499_v62 }
 0x669   :  { %v767_v12 = vadd.f32 0.5, %v766_v10 }
 0x66a   :  { %v502_v15 = vmul.f32 0.0, %v500_v63 }
 0x66b   :  { %v769_v19 = vmul.f32 %v767_v12, %v4977_v18 }
 0x6cf   :  { %v505_v8 = vpop.permute.xlu0 %504 }
 0x6d0   :  { %v507_v9 = vmul.f32 %v505_v8, %v500_v63 }
 0x6d2   :  { %509 = vrot.lane.b32.xlu0 %v507_v9, %s4812_s1 }
 0x6d7   :  { %v772_v13 = vpop.permute.xlu1 %771 }
 0x6d8   :  { %v774_v14 = vmul.f32 %v772_v13, %v767_v12 }
 0x6da   :  { %776 = vrot.lane.b32.xlu1 %v774_v14, %s4812_s1 }
 0x744   :  { %v510_v16 = vpop.permute.xlu0 %509 }
 0x745   :  { %v5048_v17 = vadd.f32 %v510_v16, %v502_v15 }
 0x747   :  { %4595 = vtanh.f32 %v5048_v17 }
 0x74c   :  { %v777_v35 = vpop.permute.xlu1 %776 }
 0x74d   :  { %v5052_v38 = vadd.f32 %v777_v35, %v769_v19 }
 0x74f   :  { %4597 = vtanh.f32 %v5052_v38 }
 0x754   :  { %v4596_v39 = vpop.eup %4595 }
 0x755   :  { %515 = vrot.lane.b32.xlu0 %v4596_v39, %s4811_s0 }
 0x75c   :  { %v4598_v40 = vpop.eup %4597 }
 0x75d   :  { %782 = vrot.lane.b32.xlu1 %v4598_v40, %s4811_s0 }
 0x7c7   :  { %v516_v41 = vpop.permute.xlu0 %515 }
 0x7c8   :  { %v518_v42 = vmul.f32 %v516_v41, %v500_v63 }
 0x7ca   :  { %787 = vrot.lane.b32.xlu0 %v518_v42, %s4812_s1 }
 0x7ce   :  { %960 = vperm.xlu0 %4563, %v4853_v4  }
 0x7cf   :  { %v783_v46 = vpop.permute.xlu1 %782 }
 0x7d0   :  { %v785_v18 = vmul.f32 %v783_v46, %v767_v12 }
 0x7d2   :  { %862 = vrot.lane.b32.xlu1 %v785_v18, %s4812_s1 }
 0x83c   :  { %v788_v48 = vpop.permute.xlu0 %787 }
 0x83d   :  { %4155 = vmatmul.mubr.msk.f32.vlgmr.msra.gmra.mxu0 %vm54_vm1, %v788_v48 }
 0x83e   :  { %4169 = vmatpush3.msra.mxu0 %v4848_v2  ;;  %4176 = vmatprep.mubr.msk.f32.mxu0 %vm4809_vm0, %v4808_v0 }
 0x83f   :  { %4170 = vmatprep.subr.mxu0 %v4808_v0 }
 0x840   :  { %4171 = vmatpush3.msra.mxu0 %v4850_v3 }
 0x841   :  { %4172 = vmatprep.subr.mxu0 %v4808_v0 }
 0x842   :  { %4173 = vmatpush3.msra.mxu0 %v4856_v5 }
 0x843   :  { %4174 = vmatprep.subr.mxu0 %v4808_v0 }
 0x844   :  { %4175 = vmatpush3.msra.mxu0 %v4861_v6  ;;  %v863_v50 = vpop.permute.xlu1 %862 }
 0x845   :  { %4166 = vmatmul.mubr.msk.f32.vlgmr.msra.gmra.mxu1 %vm54_vm1, %v863_v50  ;;  %4177 = vmatmul.mubr.msk.f32.vlgmr.msra.gmra.mxu0 %vm54_vm1, %v5003_v45 }
 0x846   :  { %4180 = vmatpush3.msra.mxu1 %v4885_v25  ;;  %4187 = vmatprep.mubr.msk.f32.mxu1 %vm4809_vm0, %v4808_v0 }
 0x847   :  { %4181 = vmatprep.subr.mxu1 %v4808_v0  ;;  %4190 = vmatprep.subr.mxu0 %v4808_v0 }
 0x848   :  { %4182 = vmatpush3.msra.mxu1 %v4889_v27  ;;  %4191 = vmatpush3.msra.mxu0 %v4913_v33 }
 0x849   :  { %4183 = vmatprep.subr.mxu1 %v4808_v0  ;;  %4192 = vmatprep.subr.mxu0 %v4808_v0  ;;  %v961_v52 = vpop.permute.xlu0 %960 }
 0x84a   :  { %4184 = vmatpush3.msra.mxu1 %v4897_v29  ;;  %4193 = vmatpush3.msra.mxu0 %v4921_v34  ;;  %v963_v53 = vmul.f32 %v4870_v7, %v961_v52 }
 0x84b   :  { %4185 = vmatprep.subr.mxu1 %v4808_v0  ;;  %4194 = vmatprep.subr.mxu0 %v4808_v0 }
 0x84c   :  { %4186 = vmatpush3.msra.mxu1 %v4905_v31  ;;  %4195 = vmatpush3.msra.mxu0 %v4927_v36 }
 0x84d   :  { %4188 = vmatmul.mubr.msk.f32.vlgmr.msra.gmra.mxu1 %vm54_vm1, %v863_v50  ;;  %4201 = vmatprep.subr.mxu1 %v4808_v0 }
 0x84e   :  { %4202 = vmatpush3.msra.mxu1 %v4887_v26  ;;  %4209 = vmatprep.mubr.msk.f32.mxu1 %vm4809_vm0, %v4808_v0 }
 0x84f   :  { %4203 = vmatprep.subr.mxu1 %v4808_v0  ;;  %4196 = vmatprep.subr.mxu0 %v4808_v0 }
 0x850   :  { %4204 = vmatpush3.msra.mxu1 %v4893_v28  ;;  %4197 = vmatpush3.msra.mxu0 %v4933_v37 }
 0x851   :  { %4205 = vmatprep.subr.mxu1 %v4808_v0  ;;  %4198 = vmatprep.mubr.msk.f32.mxu0 %vm4809_vm0, %v4808_v0 }
 0x852   :  { %4206 = vmatpush3.msra.mxu1 %v4899_v30  ;;  %4212 = vmatprep.subr.mxu0 %v4808_v0 }
 0x853   :  { %4207 = vmatprep.subr.mxu1 %v4808_v0 }
 0x854   :  { %4208 = vmatpush3.msra.mxu1 %v4907_v32 }
 0x855   :  { %4223 = vmatprep.subr.mxu1 %v4808_v0 }
 0x8fd   :  { %v857_v45 = vpop.f32.mrf.mxu0 }
 0x8ff   :  { %v4156_v51 = vpop.f32.mrf.mxu0 }
 0x900   :  { %v4815_v51 = vmov 3  }
 0x901   :  { %4564 = vset.pattern.permute.xlu0 %v4815_v51 }
 0x905   :  { %v932_v54 = vpop.f32.mrf.mxu1  ;;  %v1030_v55 = vpop.f32.mrf.mxu0 }
 0x906   :  { %v933_v56 = vadd.f32 %v932_v54, %v857_v45  ;;  %v1034_v57 = vadd.f32 %v1030_v55, %v963_v53 }
 0x907   :  { %v4167_v58 = vpop.f32.mrf.mxu1  ;;  %v4178_v59 = vpop.f32.mrf.mxu0 }
 0x908   :  { %v936_v60 = vadd.f32 %v5039_v47, %v933_v56  ;;  %v1035_v43 = vadd.f32 %v4873_v11, %v1034_v57 }
 0x90a   :  { %4599 = vtanh.f32 %v936_v60  ;;  %v937_v8 = vmul.f32 0.5, %v936_v60  ;;  %v1036_v9 = vmul.f32 0.5, %v1035_v43 }
 0x90b   :  { %4601 = vtanh.f32 %v1035_v43 }
 0x90c   :  { %4603 = vtanh.f32 %v937_v8 }
 0x90d   :  { %v5108_v61 = vpop.f32.mrf.mxu1  ;;  %4605 = vtanh.f32 %v1036_v9 }
 0x90f   :  { %v4189_v62 = vpop.f32.mrf.mxu1 }
 0x917   :  { %v4600_v63 = vpop.eup %4599 }
 0x918   :  { %944 = vrot.lane.b32.xlu1 %v4600_v63, %s4811_s0  ;;  %v4602_v1 = vpop.eup %4601 }
 0x919   :  { %v4604_v10 = vpop.eup %4603 }
 0x91a   :  { %v939_v12 = vmul.f32 0.5, %v4604_v10  ;;  %v4606_v13 = vpop.eup %4605 }
 0x91b   :  { %v1038_v15 = vmul.f32 0.5, %v4606_v13 }
 0x91c   :  { %1043 = vrot.lane.b32.xlu1 %v4602_v1, %s4811_s0  ;;  %v940_v14 = vadd.f32 0.5, %v939_v12 }
 0x91d   :  { %v1039_v35 = vadd.f32 0.5, %v1038_v15 }
 0x91e   :  { %v942_v41 = vmul.f32 %v940_v14, %v5048_v17 }
 0x91f   :  { %v1041_v46 = vmul.f32 %v1039_v35, %v4979_v20 }
 0x98a   :  { %v945_v16 = vpop.permute.xlu1 %944 }
 0x98b   :  { %v947_v19 = vmul.f32 %v945_v16, %v940_v14 }
 0x98d   :  { %949 = vrot.lane.b32.xlu0 %v947_v19, %s4812_s1 }
 0x98e   :  { %v1044_v39 = vpop.permute.xlu1 %1043 }
 0x98f   :  { %v1046_v40 = vmul.f32 %v1044_v39, %v1039_v35 }
 0x991   :  { %1048 = vrot.lane.b32.xlu1 %v1046_v40, %s4812_s1 }
 0x9ff   :  { %v950_v42 = vpop.permute.xlu0 %949 }
 0xa00   :  { %v5115_v44 = vadd.f32 %v950_v42, %v942_v41 }
 0xa02   :  { %4607 = vtanh.f32 %v5115_v44 }
 0xa03   :  { %v1049_v18 = vpop.permute.xlu1 %1048 }
 0xa04   :  { %v5119_v48 = vadd.f32 %v1049_v18, %v1041_v46 }
 0xa06   :  { %4609 = vtanh.f32 %v5119_v48 }
 0xa0f   :  { %v4608_v50 = vpop.eup %4607 }
 0xa10   :  { %955 = vrot.lane.b32.xlu0 %v4608_v50, %s4811_s0 }
 0xa13   :  { %v4610_v45 = vpop.eup %4609 }
 0xa14   :  { %1054 = vrot.lane.b32.xlu1 %v4610_v45, %s4811_s0 }
 0xa82   :  { %v956_v17 = vpop.permute.xlu0 %955 }
 0xa83   :  { %v958_v52 = vmul.f32 %v956_v17, %v940_v14 }
 0xa85   :  { %1227 = vrot.lane.b32.xlu1 %v958_v52, %s4812_s1 }
 0xa86   :  { %v1055_v53 = vpop.permute.xlu1 %1054 }
 0xa87   :  { %v1057_v54 = vmul.f32 %v1055_v53, %v1039_v35 }
 0xa89   :  { %1129 = vrot.lane.b32.xlu0 %v1057_v54, %s4812_s1 }
 0xa8d   :  { %1400 = vperm.xlu0 %4564, %v4853_v4  }
 0xaf7   :  { %v1228_v20 = vpop.permute.xlu1 %1227 }
 0xaf8   :  { %4210 = vmatmul.mubr.msk.f32.vlgmr.msra.gmra.mxu1 %vm54_vm1, %v1228_v20 }
 0xaf9   :  { %4224 = vmatpush3.msra.mxu1 %v4848_v2  ;;  %4231 = vmatprep.mubr.msk.f32.mxu1 %vm4809_vm0, %v4808_v0 }
 0xafa   :  { %4225 = vmatprep.subr.mxu1 %v4808_v0 }
 0xafb   :  { %4226 = vmatpush3.msra.mxu1 %v4850_v3  ;;  %v1130_v55 = vpop.permute.xlu0 %1129 }
 0xafc   :  { %4227 = vmatprep.subr.mxu1 %v4808_v0  ;;  %4199 = vmatmul.mubr.msk.f32.vlgmr.msra.gmra.mxu0 %vm54_vm1, %v1130_v55 }
 0xafd   :  { %4228 = vmatpush3.msra.mxu1 %v4856_v5  ;;  %4213 = vmatpush3.msra.mxu0 %v4983_v21 }
 0xafe   :  { %4229 = vmatprep.subr.mxu1 %v4808_v0  ;;  %4214 = vmatprep.subr.mxu0 %v4808_v0 }
 0xaff   :  { %4230 = vmatpush3.msra.mxu1 %v4861_v6  ;;  %4215 = vmatpush3.msra.mxu0 %v4985_v22 }
 0xb00   :  { %4232 = vmatmul.mubr.msk.f32.vlgmr.msra.gmra.mxu1 %vm54_vm1, %v1130_v55  ;;  %4216 = vmatprep.subr.mxu0 %v4808_v0 }
 0xb01   :  { %4217 = vmatpush3.msra.mxu0 %v4989_v23  ;;  %4245 = vmatprep.subr.mxu1 %v4808_v0 }
 0xb02   :  { %4218 = vmatprep.subr.mxu0 %v4808_v0  ;;  %4246 = vmatpush3.msra.mxu1 %v4913_v33 }
 0xb03   :  { %4219 = vmatpush3.msra.mxu0 %v4993_v24  ;;  %4247 = vmatprep.subr.mxu1 %v4808_v0 }
 0xb04   :  { %4220 = vmatprep.mubr.msk.f32.mxu0 %vm4809_vm0, %v4808_v0  ;;  %4234 = vmatprep.subr.mxu0 %v4808_v0 }
 0xb05   :  { %4248 = vmatpush3.msra.mxu1 %v4921_v34  ;;  %4253 = vmatprep.mubr.msk.f32.mxu1 %vm4809_vm0, %v4808_v0 }
 0xb06   :  { %4249 = vmatprep.subr.mxu1 %v4808_v0 }
 0xb07   :  { %4250 = vmatpush3.msra.mxu1 %v4927_v36 }
 0xb08   :  { %4251 = vmatprep.subr.mxu1 %v4808_v0  ;;  %v1401_v4 = vpop.permute.xlu0 %1400 }
 0xb09   :  { %4252 = vmatpush3.msra.mxu1 %v4933_v37  ;;  %v1403_v56 = vmul.f32 %v4870_v7, %v1401_v4 }
 0xb0a   :  { %4267 = vmatprep.subr.mxu1 %v4808_v0 }
 0xbb8   :  { %v5160_v2 = vpop.f32.mrf.mxu1 }
 0xbba   :  { %v4211_v3 = vpop.f32.mrf.mxu1 }
 0xbbc   :  { %v1199_v5 = vpop.f32.mrf.mxu0 }
 0xbbd   :  { %v1200_v6 = vadd.f32 %v1199_v5, %v5108_v61 }
 0xbbe   :  { %v4200_v57 = vpop.f32.mrf.mxu0 }
 0xbbf   :  { %v1203_v58 = vadd.f32 %v4968_v49, %v1200_v6 }
 0xbc0   :  { %v1470_v59 = vpop.f32.mrf.mxu1 }
 0xbc1   :  { %4611 = vtanh.f32 %v1203_v58  ;;  %v1474_v60 = vadd.f32 %v1470_v59, %v1403_v56  ;;  %v1204_v8 = vmul.f32 0.5, %v1203_v58 }
 0xbc2   :  { %v4233_v43 = vpop.f32.mrf.mxu1 }
 0xbc3   :  { %v1475_v62 = vadd.f32 %v4873_v11, %v1474_v60 }
 0xbc5   :  { %4613 = vtanh.f32 %v1475_v62  ;;  %v1476_v61 = vmul.f32 0.5, %v1475_v62 }
 0xbc6   :  { %4615 = vtanh.f32 %v1204_v8 }
 0xbc7   :  { %4617 = vtanh.f32 %v1476_v61 }
 0xbce   :  { %v4612_v63 = vpop.eup %4611 }
 0xbcf   :  { %1211 = vrot.lane.b32.xlu1 %v4612_v63, %s4811_s0 }
 0xbd2   :  { %v4614_v1 = vpop.eup %4613 }
 0xbd3   :  { %1483 = vrot.lane.b32.xlu1 %v4614_v1, %s4811_s0  ;;  %v4616_v7 = vpop.eup %4615 }
 0xbd4   :  { %v1206_v9 = vmul.f32 0.5, %v4616_v7  ;;  %v4618_v10 = vpop.eup %4617 }
 0xbd5   :  { %v1478_v13 = vmul.f32 0.5, %v4618_v10 }
 0xbd6   :  { %v1207_v12 = vadd.f32 0.5, %v1206_v9 }
 0xbd7   :  { %v1479_v11 = vadd.f32 0.5, %v1478_v13 }
 0xbd8   :  { %v1209_v35 = vmul.f32 %v1207_v12, %v5052_v38 }
 0xbd9   :  { %v1481_v41 = vmul.f32 %v1479_v11, %v5119_v48 }
 0xc41   :  { %v1212_v14 = vpop.permute.xlu1 %1211 }
 0xc42   :  { %v1214_v15 = vmul.f32 %v1212_v14, %v1207_v12 }
 0xc44   :  { %1216 = vrot.lane.b32.xlu0 %v1214_v15, %s4812_s1 }
 0xc45   :  { %v1484_v16 = vpop.permute.xlu1 %1483 }
 0xc46   :  { %v1486_v19 = vmul.f32 %v1484_v16, %v1479_v11  ;;  %v4816_v16 = vmov 4  }
 0xc47   :  { %4565 = vset.pattern.permute.xlu0 %v4816_v16 }
 0xc48   :  { %1488 = vrot.lane.b32.xlu1 %v1486_v19, %s4812_s1 }
 0xcb6   :  { %v1217_v39 = vpop.permute.xlu0 %1216 }
 0xcb7   :  { %v5171_v40 = vadd.f32 %v1217_v39, %v1209_v35  ;;  %v5236_v35 = vld [vmem:[#allocation2] sm:$0x3] }
 0xcb9   :  { %4619 = vtanh.f32 %v5171_v40 }
 0xcba   :  { %v1489_v42 = vpop.permute.xlu1 %1488 }
 0xcbb   :  { %v5175_v46 = vadd.f32 %v1489_v42, %v1481_v41  ;;  %v5241_v41 = vld [vmem:[#allocation5 + $0x19] sm:$0xff]  ;;  %v5247_v42 = vld [vmem:[#allocation5 + $0x11] sm:$0xff] }
 0xcbd   :  { %4621 = vtanh.f32 %v5175_v46 }
 0xcc6   :  { %v4620_v18 = vpop.eup %4619 }
 0xcc7   :  { %1222 = vrot.lane.b32.xlu0 %v4620_v18, %s4811_s0  ;;  %v5251_v18 = vld [vmem:[#allocation5 + $0x9] sm:$0xff] }
 0xcca   :  { %v4622_v50 = vpop.eup %4621 }
 0xccb   :  { %1494 = vrot.lane.b32.xlu1 %v4622_v50, %s4811_s0  ;;  %v5255_v50 = vld [vmem:[#allocation5 + $0x1] sm:$0xff] }
 0xd39   :  { %v1223_v45 = vpop.permute.xlu0 %1222 }
 0xd3a   :  { %v1225_v38 = vmul.f32 %v1223_v45, %v1207_v12 }
 0xd3c   :  { %1302 = vrot.lane.b32.xlu0 %v1225_v38, %s4812_s1 }
 0xd3d   :  { %v1495_v51 = vpop.permute.xlu1 %1494 }
 0xd3e   :  { %v1497_v17 = vmul.f32 %v1495_v51, %v1479_v11 }
 0xd40   :  { %1569 = vrot.lane.b32.xlu1 %v1497_v17, %s4812_s1 }
 0xdae   :  { %v1303_v48 = vpop.permute.xlu0 %1302 }
 0xdaf   :  { %4221 = vmatmul.mubr.msk.f32.vlgmr.msra.gmra.mxu0 %vm54_vm1, %v1303_v48 }
 0xdb0   :  { %4235 = vmatpush3.msra.mxu0 %v4885_v25  ;;  %4242 = vmatprep.mubr.msk.f32.mxu0 %vm4809_vm0, %v4808_v0 }
 0xdb1   :  { %4236 = vmatprep.subr.mxu0 %v4808_v0 }
 0xdb2   :  { %4237 = vmatpush3.msra.mxu0 %v4889_v27  ;;  %v5188_v52 = vpop.permute.xlu1 %1569 }
 0xdb3   :  { %4238 = vmatprep.subr.mxu0 %v4808_v0  ;;  %4254 = vmatmul.mubr.msk.f32.vlgmr.msra.gmra.mxu1 %vm54_vm1, %v5188_v52 }
 0xdb4   :  { %4239 = vmatpush3.msra.mxu0 %v4897_v29  ;;  %4268 = vmatpush3.msra.mxu1 %v4983_v21 }
 0xdb5   :  { %4240 = vmatprep.subr.mxu0 %v4808_v0  ;;  %4269 = vmatprep.subr.mxu1 %v4808_v0 }
 0xdb6   :  { %4241 = vmatpush3.msra.mxu0 %v4905_v31  ;;  %4270 = vmatpush3.msra.mxu1 %v4985_v22 }
 0xdb7   :  { %4243 = vmatmul.mubr.msk.f32.vlgmr.msra.gmra.mxu0 %vm54_vm1, %v1303_v48  ;;  %4256 = vmatprep.subr.mxu0 %v4808_v0 }
 0xdb8   :  { %4257 = vmatpush3.msra.mxu0 %v4887_v26  ;;  %4264 = vmatprep.mubr.msk.f32.mxu0 %vm4809_vm0, %v4808_v0 }
 0xdb9   :  { %4258 = vmatprep.subr.mxu0 %v4808_v0  ;;  %4271 = vmatprep.subr.mxu1 %v4808_v0 }
 0xdba   :  { %4259 = vmatpush3.msra.mxu0 %v4893_v28  ;;  %4272 = vmatpush3.msra.mxu1 %v4989_v23 }
 0xdbb   :  { %4260 = vmatprep.subr.mxu0 %v4808_v0  ;;  %4273 = vmatprep.subr.mxu1 %v4808_v0 }
 0xdbc   :  { %4261 = vmatpush3.msra.mxu0 %v4899_v30  ;;  %4274 = vmatpush3.msra.mxu1 %v4993_v24 }
 0xdbd   :  { %4262 = vmatprep.subr.mxu0 %v4808_v0  ;;  %4275 = vmatprep.mubr.msk.f32.mxu1 %vm4809_vm0, %v4808_v0 }
 0xdbe   :  { %4263 = vmatpush3.msra.mxu0 %v4907_v32  ;;  %4289 = vmatprep.subr.mxu1 %v4808_v0 }
 0xdbf   :  { %4278 = vmatprep.subr.mxu0 %v4808_v0 }
 0xe6f   :  { %v1372_v26 = vpop.f32.mrf.mxu0 }
 0xe70   :  { %v1373_v28 = vadd.f32 %v1372_v26, %v5160_v2 }
 0xe71   :  { %v4222_v53 = vpop.f32.mrf.mxu0 }
 0xe72   :  { %v1376_v54 = vadd.f32 %v5039_v47, %v1373_v28 }
 0xe73   :  { %v1639_v30 = vpop.f32.mrf.mxu1 }
 0xe74   :  { %4623 = vtanh.f32 %v1376_v54  ;;  %v1377_v56 = vmul.f32 0.5, %v1376_v54  ;;  %v5305_v54 = vld [vmem:[#allocation5 + $0x21] ss:$0 sm:$0xff] }
 0xe75   :  { %v4255_v20 = vpop.f32.mrf.mxu1 }
 0xe77   :  { %v1564_v55 = vpop.f32.mrf.mxu0 }
 0xe78   :  { %v1640_v3 = vadd.f32 %v1639_v30, %v1564_v55 }
 0xe79   :  { %v4244_v4 = vpop.f32.mrf.mxu0 }
 0xe7a   :  { %v1643_v5 = vadd.f32 %v4968_v49, %v1640_v3 }
 0xe7c   :  { %4625 = vtanh.f32 %v1643_v5  ;;  %v1644_v2 = vmul.f32 0.5, %v1643_v5 }
 0xe7d   :  { %4627 = vtanh.f32 %v1377_v56 }
 0xe7e   :  { %4629 = vtanh.f32 %v1644_v2 }
 0xe81   :  { %v4624_v32 = vpop.eup %4623 }
 0xe82   :  { %1384 = vrot.lane.b32.xlu0 %v4624_v32, %s4811_s0 }
 0xe89   :  { %v4626_v6 = vpop.eup %4625 }
 0xe8a   :  { %1651 = vrot.lane.b32.xlu1 %v4626_v6, %s4811_s0  ;;  %v4628_v57 = vpop.eup %4627 }
 0xe8b   :  { %v1379_v58 = vmul.f32 0.5, %v4628_v57  ;;  %v4630_v60 = vpop.eup %4629 }
 0xe8c   :  { %v1646_v49 = vmul.f32 0.5, %v4630_v60 }
 0xe8d   :  { %v1380_v59 = vadd.f32 0.5, %v1379_v58 }
 0xe8e   :  { %v1647_v63 = vadd.f32 0.5, %v1646_v49 }
 0xe8f   :  { %v1382_v61 = vmul.f32 %v1380_v59, %v5115_v44 }
 0xe90   :  { %v1649_v10 = vmul.f32 %v1647_v63, %v5171_v40 }
 0xef4   :  { %v1385_v43 = vpop.permute.xlu0 %1384 }
 0xef5   :  { %v1387_v62 = vmul.f32 %v1385_v43, %v1380_v59 }
 0xef7   :  { %1389 = vrot.lane.b32.xlu0 %v1387_v62, %s4812_s1 }
 0xefc   :  { %v1652_v1 = vpop.permute.xlu1 %1651 }
 0xefd   :  { %v1654_v8 = vmul.f32 %v1652_v1, %v1647_v63 }
 0xeff   :  { %1656 = vrot.lane.b32.xlu1 %v1654_v8, %s4812_s1 }
 0xf69   :  { %v1390_v7 = vpop.permute.xlu0 %1389 }
 0xf6a   :  { %v5226_v9 = vadd.f32 %v1390_v7, %v1382_v61 }
 0xf6c   :  { %4631 = vtanh.f32 %v5226_v9 }
 0xf71   :  { %v1657_v12 = vpop.permute.xlu1 %1656 }
 0xf72   :  { %v5230_v13 = vadd.f32 %v1657_v12, %v1649_v10 }
 0xf74   :  { %4633 = vtanh.f32 %v5230_v13 }
 0xf79   :  { %v4632_v14 = vpop.eup %4631 }
 0xf7a   :  { %1395 = vrot.lane.b32.xlu0 %v4632_v14, %s4811_s0  ;;  %v4817_v14 = vmov 5  }
 0xf81   :  { %v4634_v15 = vpop.eup %4633 }
 0xf82   :  { %1662 = vrot.lane.b32.xlu1 %v4634_v15, %s4811_s0 }
 0xfec   :  { %v1396_v11 = vpop.permute.xlu0 %1395 }
 0xfed   :  { %v1398_v44 = vmul.f32 %v1396_v11, %v1380_v59 }
 0xfef   :  { %1667 = vrot.lane.b32.xlu0 %v1398_v44, %s4812_s1 }
 0xff3   :  { %1840 = vperm.xlu0 %4565, %v5236_v35  }
 0xff4   :  { %v1663_v19 = vpop.permute.xlu1 %1662 }
 0xff5   :  { %v1665_v39 = vmul.f32 %v1663_v19, %v1647_v63  ;;  %v5346_v19 = vld [vmem:[#allocation5 + $0x3a] sm:$0xff] }
 0xff7   :  { %1742 = vrot.lane.b32.xlu1 %v1665_v39, %s4812_s1  ;;  %4566 = vset.pattern.permute.xlu0 %v4817_v14  ;;  %v5393_v14 = vld [vmem:[#allocation5 + $0x5a] sm:$0xff] }
0x1061   :  { %v1668_v40 = vpop.permute.xlu0 %1667 }
0x1062   :  { %4265 = vmatmul.mubr.msk.f32.vlgmr.msra.gmra.mxu0 %vm54_vm1, %v1668_v40 }
0x1063   :  { %4279 = vmatpush3.msra.mxu0 %v5241_v41  ;;  %4286 = vmatprep.mubr.msk.f32.mxu0 %vm4809_vm0, %v4808_v0 }
0x1064   :  { %4280 = vmatprep.subr.mxu0 %v4808_v0 }
0x1065   :  { %4281 = vmatpush3.msra.mxu0 %v5247_v42 }
0x1066   :  { %4282 = vmatprep.subr.mxu0 %v4808_v0 }
0x1067   :  { %4283 = vmatpush3.msra.mxu0 %v5251_v18 }
0x1068   :  { %4284 = vmatprep.subr.mxu0 %v4808_v0 }
0x1069   :  { %4285 = vmatpush3.msra.mxu0 %v5255_v50  ;;  %v1743_v45 = vpop.permute.xlu1 %1742 }
0x106a   :  { %4276 = vmatmul.mubr.msk.f32.vlgmr.msra.gmra.mxu1 %vm54_vm1, %v1743_v45  ;;  %4287 = vmatmul.mubr.msk.f32.vlgmr.msra.gmra.mxu0 %vm54_vm1, %v5188_v52 }
0x106b   :  { %4290 = vmatpush3.msra.mxu1 %v4885_v25  ;;  %4297 = vmatprep.mubr.msk.f32.mxu1 %vm4809_vm0, %v4808_v0  ;;  %v5278_v25 = vld [vmem:[#allocation5 + $0x9b] sm:$0xff] }
0x106c   :  { %4291 = vmatprep.subr.mxu1 %v4808_v0  ;;  %4300 = vmatprep.subr.mxu0 %v4808_v0 }
0x106d   :  { %4292 = vmatpush3.msra.mxu1 %v4889_v27  ;;  %4301 = vmatpush3.msra.mxu0 %v4913_v33  ;;  %v5285_v27 = vld [vmem:[#allocation5 + $0x93] sm:$0xff] }
0x106e   :  { %4293 = vmatprep.subr.mxu1 %v4808_v0  ;;  %4302 = vmatprep.subr.mxu0 %v4808_v0 }
0x106f   :  { %4294 = vmatpush3.msra.mxu1 %v4897_v29  ;;  %4303 = vmatpush3.msra.mxu0 %v4921_v34  ;;  %v5292_v29 = vld [vmem:[#allocation5 + $0x8b] sm:$0xff] }
0x1070   :  { %4295 = vmatprep.subr.mxu1 %v4808_v0  ;;  %4304 = vmatprep.subr.mxu0 %v4808_v0 }
0x1071   :  { %4296 = vmatpush3.msra.mxu1 %v4905_v31  ;;  %4305 = vmatpush3.msra.mxu0 %v4927_v36  ;;  %v5297_v31 = vld [vmem:[#allocation5 + $0x83] sm:$0xff]  ;;  %v1841_v36 = vpop.permute.xlu0 %1840 }
0x1072   :  { %4298 = vmatmul.mubr.msk.f32.vlgmr.msra.gmra.mxu1 %vm54_vm1, %v1743_v45  ;;  %4311 = vmatprep.subr.mxu1 %v4808_v0 }
0x1073   :  { %4312 = vmatpush3.msra.mxu1 %v5278_v25  ;;  %4319 = vmatprep.mubr.msk.f32.mxu1 %vm4809_vm0, %v4808_v0 }
0x1074   :  { %4313 = vmatprep.subr.mxu1 %v4808_v0  ;;  %4306 = vmatprep.subr.mxu0 %v4808_v0 }
0x1075   :  { %4314 = vmatpush3.msra.mxu1 %v5285_v27  ;;  %4307 = vmatpush3.msra.mxu0 %v4933_v37  ;;  %v5301_v37 = vld [vmem:[#allocation5] ss:$0 sm:$0xff] }
0x1076   :  { %4315 = vmatprep.subr.mxu1 %v4808_v0  ;;  %4308 = vmatprep.mubr.msk.f32.mxu0 %vm4809_vm0, %v4808_v0  ;;  %v1843_v38 = vmul.f32 %v5301_v37, %v1841_v36 }
0x1077   :  { %4316 = vmatpush3.msra.mxu1 %v5292_v29  ;;  %4322 = vmatprep.subr.mxu0 %v4808_v0 }
0x1078   :  { %4317 = vmatprep.subr.mxu1 %v4808_v0 }
0x1079   :  { %4318 = vmatpush3.msra.mxu1 %v5297_v31 }
0x107a   :  { %4333 = vmatprep.subr.mxu1 %v4808_v0 }
0x1122   :  { %v1737_v33 = vpop.f32.mrf.mxu0 }
0x1124   :  { %v4266_v34 = vpop.f32.mrf.mxu0 }
0x112a   :  { %v1812_v51 = vpop.f32.mrf.mxu1  ;;  %v1910_v17 = vpop.f32.mrf.mxu0 }
0x112b   :  { %v1813_v48 = vadd.f32 %v1812_v51, %v1737_v33  ;;  %v1914_v52 = vadd.f32 %v1910_v17, %v1843_v38  ;;  %v5372_v38 = vld [vmem:[#allocation5 + $0x62] ss:$0 sm:$0xff] }
0x112c   :  { %v4277_v26 = vpop.f32.mrf.mxu1  ;;  %v4288_v28 = vpop.f32.mrf.mxu0 }
0x112d   :  { %v1816_v53 = vadd.f32 %v5039_v47, %v1813_v48  ;;  %v1915_v30 = vadd.f32 %v5305_v54, %v1914_v52 }
0x112f   :  { %4635 = vtanh.f32 %v1816_v53  ;;  %v1817_v5 = vmul.f32 0.5, %v1816_v53  ;;  %v1916_v32 = vmul.f32 0.5, %v1915_v30 }
0x1130   :  { %4637 = vtanh.f32 %v1915_v30 }
0x1131   :  { %4639 = vtanh.f32 %v1817_v5 }
0x1132   :  { %v5308_v20 = vpop.f32.mrf.mxu1  ;;  %4641 = vtanh.f32 %v1916_v32 }
0x1134   :  { %v4299_v55 = vpop.f32.mrf.mxu1 }
0x113c   :  { %v4636_v3 = vpop.eup %4635 }
0x113d   :  { %1824 = vrot.lane.b32.xlu1 %v4636_v3, %s4811_s0  ;;  %v4638_v4 = vpop.eup %4637 }
0x113e   :  { %v4640_v47 = vpop.eup %4639 }
0x113f   :  { %v1819_v6 = vmul.f32 0.5, %v4640_v47  ;;  %v4642_v56 = vpop.eup %4641 }
0x1140   :  { %v1918_v57 = vmul.f32 0.5, %v4642_v56 }
0x1141   :  { %1923 = vrot.lane.b32.xlu1 %v4638_v4, %s4811_s0  ;;  %v1820_v2 = vadd.f32 0.5, %v1819_v6 }
0x1142   :  { %v1919_v60 = vadd.f32 0.5, %v1918_v57 }
0x1143   :  { %v1822_v49 = vmul.f32 %v1820_v2, %v5226_v9 }
0x1144   :  { %v1921_v8 = vmul.f32 %v1919_v60, %v5175_v46 }
0x11af   :  { %v1825_v58 = vpop.permute.xlu1 %1824 }
0x11b0   :  { %v1827_v59 = vmul.f32 %v1825_v58, %v1820_v2 }
0x11b2   :  { %1829 = vrot.lane.b32.xlu0 %v1827_v59, %s4812_s1 }
0x11b3   :  { %v1924_v43 = vpop.permute.xlu1 %1923 }
0x11b4   :  { %v1926_v62 = vmul.f32 %v1924_v43, %v1919_v60 }
0x11b6   :  { %1928 = vrot.lane.b32.xlu1 %v1926_v62, %s4812_s1 }
0x1224   :  { %v1830_v63 = vpop.permute.xlu0 %1829 }
0x1225   :  { %v5315_v1 = vadd.f32 %v1830_v63, %v1822_v49 }
0x1227   :  { %4643 = vtanh.f32 %v5315_v1 }
0x1228   :  { %v1929_v61 = vpop.permute.xlu1 %1928 }
0x1229   :  { %v5319_v7 = vadd.f32 %v1929_v61, %v1921_v8 }
0x122b   :  { %4645 = vtanh.f32 %v5319_v7 }
0x1234   :  { %v4644_v10 = vpop.eup %4643 }
0x1235   :  { %1835 = vrot.lane.b32.xlu0 %v4644_v10, %s4811_s0 }
0x1238   :  { %v4646_v12 = vpop.eup %4645 }
0x1239   :  { %1934 = vrot.lane.b32.xlu1 %v4646_v12, %s4811_s0 }
0x12a7   :  { %v1836_v9 = vpop.permute.xlu0 %1835 }
0x12a8   :  { %v1838_v15 = vmul.f32 %v1836_v9, %v1820_v2  ;;  %v5399_v9 = vld [vmem:[#allocation5 + $0x52] sm:$0xff] }
0x12aa   :  { %2107 = vrot.lane.b32.xlu1 %v1838_v15, %s4812_s1 }
0x12ab   :  { %v1935_v11 = vpop.permute.xlu1 %1934 }
0x12ac   :  { %v1937_v44 = vmul.f32 %v1935_v11, %v1919_v60  ;;  %v5407_v11 = vld [vmem:[#allocation5 + $0x4a] sm:$0xff] }
0x12ae   :  { %2009 = vrot.lane.b32.xlu0 %v1937_v44, %s4812_s1  ;;  %v5410_v44 = vld [vmem:[#allocation5 + $0x7b] sm:$0xff] }
0x12b2   :  { %2280 = vperm.xlu0 %4566, %v5236_v35  }
0x131c   :  { %v2108_v46 = vpop.permute.xlu1 %2107 }
0x131d   :  { %4320 = vmatmul.mubr.msk.f32.vlgmr.msra.gmra.mxu1 %vm54_vm1, %v2108_v46  ;;  %v5415_v46 = vld [vmem:[#allocation5 + $0x42] sm:$0xff] }
0x131e   :  { %4334 = vmatpush3.msra.mxu1 %v5241_v41  ;;  %4341 = vmatprep.mubr.msk.f32.mxu1 %vm4809_vm0, %v4808_v0 }
0x131f   :  { %4335 = vmatprep.subr.mxu1 %v4808_v0 }
0x1320   :  { %4336 = vmatpush3.msra.mxu1 %v5247_v42  ;;  %v2010_v16 = vpop.permute.xlu0 %2009 }
0x1321   :  { %4337 = vmatprep.subr.mxu1 %v4808_v0  ;;  %4309 = vmatmul.mubr.msk.f32.vlgmr.msra.gmra.mxu0 %vm54_vm1, %v2010_v16 }
0x1322   :  { %4338 = vmatpush3.msra.mxu1 %v5251_v18  ;;  %4323 = vmatpush3.msra.mxu0 %v4983_v21  ;;  %v5354_v21 = vld [vmem:[#allocation5 + $0x32] sm:$0xff] }
0x1323   :  { %4339 = vmatprep.subr.mxu1 %v4808_v0  ;;  %4324 = vmatprep.subr.mxu0 %v4808_v0 }
0x1324   :  { %4340 = vmatpush3.msra.mxu1 %v5255_v50  ;;  %4325 = vmatpush3.msra.mxu0 %v4985_v22  ;;  %v5360_v22 = vld [vmem:[#allocation5 + $0x2a] sm:$0xff] }
0x1325   :  { %4342 = vmatmul.mubr.msk.f32.vlgmr.msra.gmra.mxu1 %vm54_vm1, %v2010_v16  ;;  %4326 = vmatprep.subr.mxu0 %v4808_v0  ;;  %v5418_v16 = vld [vmem:[#allocation5 + $0x73] sm:$0xff] }
0x1326   :  { %4327 = vmatpush3.msra.mxu0 %v4989_v23  ;;  %4355 = vmatprep.subr.mxu1 %v4808_v0  ;;  %v5364_v23 = vld [vmem:[#allocation5 + $0x22] sm:$0xff] }
0x1327   :  { %4328 = vmatprep.subr.mxu0 %v4808_v0  ;;  %4356 = vmatpush3.msra.mxu1 %v5346_v19 }
0x1328   :  { %4329 = vmatpush3.msra.mxu0 %v4993_v24  ;;  %4357 = vmatprep.subr.mxu1 %v4808_v0 }
0x1329   :  { %4330 = vmatprep.mubr.msk.f32.mxu0 %vm4809_vm0, %v4808_v0  ;;  %4344 = vmatprep.subr.mxu0 %v4808_v0 }
0x132a   :  { %4358 = vmatpush3.msra.mxu1 %v5354_v21  ;;  %4363 = vmatprep.mubr.msk.f32.mxu1 %vm4809_vm0, %v4808_v0 }
0x132b   :  { %4359 = vmatprep.subr.mxu1 %v4808_v0 }
0x132c   :  { %4360 = vmatpush3.msra.mxu1 %v5360_v22 }
0x132d   :  { %4361 = vmatprep.subr.mxu1 %v4808_v0  ;;  %v2281_v40 = vpop.permute.xlu0 %2280 }
0x132e   :  { %4362 = vmatpush3.msra.mxu1 %v5364_v23  ;;  %v2283_v34 = vmul.f32 %v5301_v37, %v2281_v40  ;;  %v5435_v40 = vld [vmem:[#allocation5 + $0x63] sm:$0xff] }
0x132f   :  { %4377 = vmatprep.subr.mxu1 %v4808_v0 }
0x13dd   :  { %v5368_v24 = vpop.f32.mrf.mxu1 }
0x13df   :  { %v4321_v39 = vpop.f32.mrf.mxu1 }
0x13e0   :  { %v5429_v39 = vld [vmem:[#allocation5 + $0x6b] sm:$0xff] }
0x13e1   :  { %v2079_v45 = vpop.f32.mrf.mxu0 }
0x13e2   :  { %v2080_v33 = vadd.f32 %v2079_v45, %v5308_v20 }
0x13e3   :  { %v4310_v36 = vpop.f32.mrf.mxu0 }
0x13e4   :  { %v2083_v51 = vadd.f32 %v5372_v38, %v2080_v33  ;;  %v5445_v36 = vld [vmem:[#allocation5 + $0xa3] ss:$0 sm:$0xff] }
0x13e5   :  { %v2350_v17 = vpop.f32.mrf.mxu1 }
0x13e6   :  { %4647 = vtanh.f32 %v2083_v51  ;;  %v2354_v48 = vadd.f32 %v2350_v17, %v2283_v34  ;;  %v2084_v30 = vmul.f32 0.5, %v2083_v51 }
0x13e7   :  { %v4343_v52 = vpop.f32.mrf.mxu1 }
0x13e8   :  { %v2355_v26 = vadd.f32 %v5305_v54, %v2354_v48 }
0x13ea   :  { %4649 = vtanh.f32 %v2355_v26  ;;  %v2356_v20 = vmul.f32 0.5, %v2355_v26 }
0x13eb   :  { %4651 = vtanh.f32 %v2084_v30 }
0x13ec   :  { %4653 = vtanh.f32 %v2356_v20 }
0x13f3   :  { %v4648_v28 = vpop.eup %4647 }
0x13f4   :  { %2091 = vrot.lane.b32.xlu1 %v4648_v28, %s4811_s0 }
0x13f7   :  { %v4650_v53 = vpop.eup %4649 }
0x13f8   :  { %2363 = vrot.lane.b32.xlu1 %v4650_v53, %s4811_s0  ;;  %v4652_v55 = vpop.eup %4651 }
0x13f9   :  { %v2086_v3 = vmul.f32 0.5, %v4652_v55  ;;  %v4654_v4 = vpop.eup %4653 }
0x13fa   :  { %v2358_v32 = vmul.f32 0.5, %v4654_v4 }
0x13fb   :  { %v2087_v5 = vadd.f32 0.5, %v2086_v3 }
0x13fc   :  { %v2359_v56 = vadd.f32 0.5, %v2358_v32 }
0x13fd   :  { %v2089_v58 = vmul.f32 %v2087_v5, %v5230_v13 }
0x13fe   :  { %v2361_v43 = vmul.f32 %v2359_v56, %v5319_v7 }
0x1466   :  { %v2092_v47 = vpop.permute.xlu1 %2091 }
0x1467   :  { %v2094_v6 = vmul.f32 %v2092_v47, %v2087_v5 }
0x1469   :  { %2096 = vrot.lane.b32.xlu0 %v2094_v6, %s4812_s1 }
0x146a   :  { %v2364_v2 = vpop.permute.xlu1 %2363 }
0x146b   :  { %v2366_v57 = vmul.f32 %v2364_v2, %v2359_v56 }
0x146d   :  { %2368 = vrot.lane.b32.xlu1 %v2366_v57, %s4812_s1 }
0x14db   :  { %v2097_v59 = vpop.permute.xlu0 %2096 }
0x14dc   :  { %v5381_v60 = vadd.f32 %v2097_v59, %v2089_v58 }
0x14de   :  { %4655 = vtanh.f32 %v5381_v60 }
0x14df   :  { %v2369_v62 = vpop.permute.xlu1 %2368 }
0x14e0   :  { %v5385_v49 = vadd.f32 %v2369_v62, %v2361_v43 }
0x14e2   :  { %4657 = vtanh.f32 %v5385_v49 }
0x14eb   :  { %v4656_v63 = vpop.eup %4655 }
0x14ec   :  { %2102 = vrot.lane.b32.xlu0 %v4656_v63, %s4811_s0 }
0x14ef   :  { %v4658_v8 = vpop.eup %4657 }
0x14f0   :  { %2374 = vrot.lane.b32.xlu1 %v4658_v8, %s4811_s0 }
0x155e   :  { %v2103_v61 = vpop.permute.xlu0 %2102 }
0x155f   :  { %v2105_v13 = vmul.f32 %v2103_v61, %v2087_v5 }
0x1561   :  { %2182 = vrot.lane.b32.xlu0 %v2105_v13, %s4812_s1 }
0x1562   :  { %v2375_v10 = vpop.permute.xlu1 %2374 }
0x1563   :  { %v2377_v12 = vmul.f32 %v2375_v10, %v2359_v56 }
0x1565   :  { %2449 = vrot.lane.b32.xlu1 %v2377_v12, %s4812_s1 }
0x15d3   :  { %v2183_v7 = vpop.permute.xlu0 %2182 }
0x15d4   :  { %4331 = vmatmul.mubr.msk.f32.vlgmr.msra.gmra.mxu0 %vm54_vm1, %v2183_v7 }
0x15d5   :  { %4345 = vmatpush3.msra.mxu0 %v5393_v14  ;;  %4352 = vmatprep.mubr.msk.f32.mxu0 %vm4809_vm0, %v4808_v0 }
0x15d6   :  { %4346 = vmatprep.subr.mxu0 %v4808_v0 }
0x15d7   :  { %4347 = vmatpush3.msra.mxu0 %v5399_v9  ;;  %v5402_v15 = vpop.permute.xlu1 %2449 }
0x15d8   :  { %4348 = vmatprep.subr.mxu0 %v4808_v0  ;;  %4364 = vmatmul.mubr.msk.f32.vlgmr.msra.gmra.mxu1 %vm54_vm1, %v5402_v15 }
0x15d9   :  { %4349 = vmatpush3.msra.mxu0 %v5407_v11  ;;  %4378 = vmatpush3.msra.mxu1 %v5410_v44 }
0x15da   :  { %4350 = vmatprep.subr.mxu0 %v4808_v0  ;;  %4379 = vmatprep.subr.mxu1 %v4808_v0 }
0x15db   :  { %4351 = vmatpush3.msra.mxu0 %v5415_v46  ;;  %4380 = vmatpush3.msra.mxu1 %v5418_v16 }
0x15dc   :  { %4353 = vmatmul.mubr.msk.f32.vlgmr.msra.gmra.mxu0 %vm54_vm1, %v2183_v7  ;;  %4366 = vmatprep.subr.mxu0 %v4808_v0  ;;  %v4818_v7 = vmov 6  }
0x15dd   :  { %4367 = vmatpush3.msra.mxu0 %v5278_v25  ;;  %4374 = vmatprep.mubr.msk.f32.mxu0 %vm4809_vm0, %v4808_v0 }
0x15de   :  { %4368 = vmatprep.subr.mxu0 %v4808_v0  ;;  %4381 = vmatprep.subr.mxu1 %v4808_v0 }
0x15df   :  { %4369 = vmatpush3.msra.mxu0 %v5285_v27  ;;  %4382 = vmatpush3.msra.mxu1 %v5429_v39 }
0x15e0   :  { %4370 = vmatprep.subr.mxu0 %v4808_v0  ;;  %4383 = vmatprep.subr.mxu1 %v4808_v0 }
0x15e1   :  { %4371 = vmatpush3.msra.mxu0 %v5292_v29  ;;  %4384 = vmatpush3.msra.mxu1 %v5435_v40 }
0x15e2   :  { %4372 = vmatprep.subr.mxu0 %v4808_v0  ;;  %4385 = vmatprep.mubr.msk.f32.mxu1 %vm4809_vm0, %v4808_v0 }
0x15e3   :  { %4373 = vmatpush3.msra.mxu0 %v5297_v31  ;;  %4399 = vmatprep.subr.mxu1 %v4808_v0 }
0x15e4   :  { %4388 = vmatprep.subr.mxu0 %v4808_v0  ;;  %4567 = vset.pattern.permute.xlu0 %v4818_v7 }
0x1694   :  { %v2252_v45 = vpop.f32.mrf.mxu0 }
0x1695   :  { %v2253_v33 = vadd.f32 %v2252_v45, %v5368_v24 }
0x1696   :  { %v4332_v34 = vpop.f32.mrf.mxu0 }
0x1697   :  { %v2256_v51 = vadd.f32 %v5445_v36, %v2253_v33 }
0x1698   :  { %v2519_v17 = vpop.f32.mrf.mxu1 }
0x1699   :  { %4659 = vtanh.f32 %v2256_v51  ;;  %v2257_v24 = vmul.f32 0.5, %v2256_v51 }
0x169a   :  { %v4365_v48 = vpop.f32.mrf.mxu1 }
0x169c   :  { %v2444_v52 = vpop.f32.mrf.mxu0 }
0x169d   :  { %v2520_v26 = vadd.f32 %v2519_v17, %v2444_v52 }
0x169e   :  { %v4354_v28 = vpop.f32.mrf.mxu0 }
0x169f   :  { %v2523_v53 = vadd.f32 %v5372_v38, %v2520_v26 }
0x16a1   :  { %4661 = vtanh.f32 %v2523_v53  ;;  %v2524_v55 = vmul.f32 0.5, %v2523_v53 }
0x16a2   :  { %4663 = vtanh.f32 %v2257_v24 }
0x16a3   :  { %4665 = vtanh.f32 %v2524_v55 }
0x16a6   :  { %v4660_v30 = vpop.eup %4659 }
0x16a7   :  { %2264 = vrot.lane.b32.xlu0 %v4660_v30, %s4811_s0 }
0x16ae   :  { %v4662_v20 = vpop.eup %4661 }
0x16af   :  { %2531 = vrot.lane.b32.xlu1 %v4662_v20, %s4811_s0  ;;  %v4664_v3 = vpop.eup %4663 }
0x16b0   :  { %v2259_v4 = vmul.f32 0.5, %v4664_v3  ;;  %v4666_v32 = vpop.eup %4665 }
0x16b1   :  { %v2526_v56 = vmul.f32 0.5, %v4666_v32 }
0x16b2   :  { %v2260_v5 = vadd.f32 0.5, %v2259_v4 }
0x16b3   :  { %v2527_v2 = vadd.f32 0.5, %v2526_v56 }
0x16b4   :  { %v2262_v59 = vmul.f32 %v2260_v5, %v5315_v1 }
0x16b5   :  { %v2529_v63 = vmul.f32 %v2527_v2, %v5381_v60 }
0x1719   :  { %v2265_v47 = vpop.permute.xlu0 %2264 }
0x171a   :  { %v2267_v6 = vmul.f32 %v2265_v47, %v2260_v5 }
0x171c   :  { %2269 = vrot.lane.b32.xlu0 %v2267_v6, %s4812_s1 }
0x1721   :  { %v2532_v57 = vpop.permute.xlu1 %2531 }
0x1722   :  { %v2534_v58 = vmul.f32 %v2532_v57, %v2527_v2 }
0x1724   :  { %2536 = vrot.lane.b32.xlu1 %v2534_v58, %s4812_s1 }
0x178e   :  { %v2270_v43 = vpop.permute.xlu0 %2269 }
0x178f   :  { %v5454_v62 = vadd.f32 %v2270_v43, %v2262_v59 }
0x1791   :  { %4667 = vtanh.f32 %v5454_v62 }
0x1796   :  { %v2537_v8 = vpop.permute.xlu1 %2536 }
0x1797   :  { %v5458_v61 = vadd.f32 %v2537_v8, %v2529_v63 }
0x1799   :  { %4669 = vtanh.f32 %v5458_v61 }
0x179e   :  { %v4668_v13 = vpop.eup %4667 }
0x179f   :  { %2275 = vrot.lane.b32.xlu0 %v4668_v13, %s4811_s0 }
0x17a6   :  { %v4670_v10 = vpop.eup %4669 }
0x17a7   :  { %2542 = vrot.lane.b32.xlu1 %v4670_v10, %s4811_s0 }
0x1811   :  { %v2276_v12 = vpop.permute.xlu0 %2275 }
0x1812   :  { %v2278_v1 = vmul.f32 %v2276_v12, %v2260_v5 }
0x1814   :  { %2547 = vrot.lane.b32.xlu0 %v2278_v1, %s4812_s1 }
0x1818   :  { %2720 = vperm.xlu0 %4567, %v5236_v35  }
0x1819   :  { %v2543_v45 = vpop.permute.xlu1 %2542 }
0x181a   :  { %v2545_v60 = vmul.f32 %v2543_v45, %v2527_v2 }
0x181c   :  { %2622 = vrot.lane.b32.xlu1 %v2545_v60, %s4812_s1 }
0x1886   :  { %v2548_v33 = vpop.permute.xlu0 %2547 }
0x1887   :  { %4375 = vmatmul.mubr.msk.f32.vlgmr.msra.gmra.mxu0 %vm54_vm1, %v2548_v33 }
0x1888   :  { %4389 = vmatpush3.msra.mxu0 %v5241_v41  ;;  %4396 = vmatprep.mubr.msk.f32.mxu0 %vm4809_vm0, %v4808_v0 }
0x1889   :  { %4390 = vmatprep.subr.mxu0 %v4808_v0 }
0x188a   :  { %4391 = vmatpush3.msra.mxu0 %v5247_v42 }
0x188b   :  { %4392 = vmatprep.subr.mxu0 %v4808_v0 }
0x188c   :  { %4393 = vmatpush3.msra.mxu0 %v5251_v18 }
0x188d   :  { %4394 = vmatprep.subr.mxu0 %v4808_v0 }
0x188e   :  { %4395 = vmatpush3.msra.mxu0 %v5255_v50  ;;  %v2623_v34 = vpop.permute.xlu1 %2622 }
0x188f   :  { %4386 = vmatmul.mubr.msk.f32.vlgmr.msra.gmra.mxu1 %vm54_vm1, %v2623_v34  ;;  %4397 = vmatmul.mubr.msk.f32.vlgmr.msra.gmra.mxu0 %vm54_vm1, %v5402_v15 }
0x1890   :  { %4400 = vmatpush3.msra.mxu1 %v5393_v14  ;;  %4407 = vmatprep.mubr.msk.f32.mxu1 %vm4809_vm0, %v4808_v0 }
0x1891   :  { %4401 = vmatprep.subr.mxu1 %v4808_v0  ;;  %4410 = vmatprep.subr.mxu0 %v4808_v0 }
0x1892   :  { %4402 = vmatpush3.msra.mxu1 %v5399_v9  ;;  %4411 = vmatpush3.msra.mxu0 %v5346_v19 }
0x1893   :  { %4403 = vmatprep.subr.mxu1 %v4808_v0  ;;  %4412 = vmatprep.subr.mxu0 %v4808_v0  ;;  %v2721_v17 = vpop.permute.xlu0 %2720 }
0x1894   :  { %4404 = vmatpush3.msra.mxu1 %v5407_v11  ;;  %4413 = vmatpush3.msra.mxu0 %v5354_v21  ;;  %v2723_v48 = vmul.f32 %v5301_v37, %v2721_v17 }
0x1895   :  { %4405 = vmatprep.subr.mxu1 %v4808_v0  ;;  %4414 = vmatprep.subr.mxu0 %v4808_v0 }
0x1896   :  { %4406 = vmatpush3.msra.mxu1 %v5415_v46  ;;  %4415 = vmatpush3.msra.mxu0 %v5360_v22 }
0x1897   :  { %4408 = vmatmul.mubr.msk.f32.vlgmr.msra.gmra.mxu1 %vm54_vm1, %v2623_v34  ;;  %4421 = vmatprep.subr.mxu1 %v4808_v0 }
0x1898   :  { %4422 = vmatpush3.msra.mxu1 %v5278_v25  ;;  %4429 = vmatprep.mubr.msk.f32.mxu1 %vm4809_vm0, %v4808_v0 }
0x1899   :  { %4423 = vmatprep.subr.mxu1 %v4808_v0  ;;  %4416 = vmatprep.subr.mxu0 %v4808_v0 }
0x189a   :  { %4424 = vmatpush3.msra.mxu1 %v5285_v27  ;;  %4417 = vmatpush3.msra.mxu0 %v5364_v23 }
0x189b   :  { %4425 = vmatprep.subr.mxu1 %v4808_v0  ;;  %4418 = vmatprep.mubr.msk.f32.mxu0 %vm4809_vm0, %v4808_v0 }
0x189c   :  { %4426 = vmatpush3.msra.mxu1 %v5292_v29  ;;  %4432 = vmatprep.subr.mxu0 %v4808_v0 }
0x189d   :  { %4427 = vmatprep.subr.mxu1 %v4808_v0 }
0x189e   :  { %4428 = vmatpush3.msra.mxu1 %v5297_v31 }
0x189f   :  { %4443 = vmatprep.subr.mxu1 %v4808_v0 }
0x1947   :  { %v2617_v15 = vpop.f32.mrf.mxu0 }
0x1949   :  { %v4376_v51 = vpop.f32.mrf.mxu0 }
0x194a   :  { %v4819_v51 = vmov 7  }
0x194b   :  { %4568 = vset.pattern.permute.xlu0 %v4819_v51 }
0x194f   :  { %v2692_v52 = vpop.f32.mrf.mxu1  ;;  %v2790_v26 = vpop.f32.mrf.mxu0 }
0x1950   :  { %v2693_v28 = vadd.f32 %v2692_v52, %v2617_v15  ;;  %v2794_v53 = vadd.f32 %v2790_v26, %v2723_v48 }
0x1951   :  { %v4387_v30 = vpop.f32.mrf.mxu1  ;;  %v4398_v20 = vpop.f32.mrf.mxu0 }
0x1952   :  { %v2696_v24 = vadd.f32 %v5445_v36, %v2693_v28  ;;  %v2795_v55 = vadd.f32 %v5305_v54, %v2794_v53 }
0x1954   :  { %4671 = vtanh.f32 %v2696_v24  ;;  %v2697_v47 = vmul.f32 0.5, %v2696_v24  ;;  %v2796_v6 = vmul.f32 0.5, %v2795_v55 }
0x1955   :  { %4673 = vtanh.f32 %v2795_v55 }
0x1956   :  { %4675 = vtanh.f32 %v2697_v47 }
0x1957   :  { %v5514_v3 = vpop.f32.mrf.mxu1  ;;  %4677 = vtanh.f32 %v2796_v6 }
0x1959   :  { %v4409_v4 = vpop.f32.mrf.mxu1 }
0x1961   :  { %v4672_v5 = vpop.eup %4671 }
0x1962   :  { %2704 = vrot.lane.b32.xlu1 %v4672_v5, %s4811_s0  ;;  %v4674_v32 = vpop.eup %4673 }
0x1963   :  { %v4676_v56 = vpop.eup %4675 }
0x1964   :  { %v2699_v2 = vmul.f32 0.5, %v4676_v56  ;;  %v4678_v57 = vpop.eup %4677 }
0x1965   :  { %v2798_v59 = vmul.f32 0.5, %v4678_v57 }
0x1966   :  { %2803 = vrot.lane.b32.xlu1 %v4674_v32, %s4811_s0  ;;  %v2700_v58 = vadd.f32 0.5, %v2699_v2 }
0x1967   :  { %v2799_v8 = vadd.f32 0.5, %v2798_v59 }
0x1968   :  { %v2702_v12 = vmul.f32 %v2700_v58, %v5454_v62 }
0x1969   :  { %v2801_v45 = vmul.f32 %v2799_v8, %v5385_v49 }
0x19d4   :  { %v2705_v43 = vpop.permute.xlu1 %2704 }
0x19d5   :  { %v2707_v63 = vmul.f32 %v2705_v43, %v2700_v58 }
0x19d7   :  { %2709 = vrot.lane.b32.xlu0 %v2707_v63, %s4812_s1 }
0x19d8   :  { %v2804_v13 = vpop.permute.xlu1 %2803 }
0x19d9   :  { %v2806_v10 = vmul.f32 %v2804_v13, %v2799_v8 }
0x19db   :  { %2808 = vrot.lane.b32.xlu1 %v2806_v10, %s4812_s1 }
0x1a49   :  { %v2710_v1 = vpop.permute.xlu0 %2709 }
0x1a4a   :  { %v5521_v7 = vadd.f32 %v2710_v1, %v2702_v12 }
0x1a4c   :  { %4679 = vtanh.f32 %v5521_v7 }
0x1a4d   :  { %v2809_v60 = vpop.permute.xlu1 %2808 }
0x1a4e   :  { %v5525_v33 = vadd.f32 %v2809_v60, %v2801_v45 }
0x1a50   :  { %4681 = vtanh.f32 %v5525_v33 }
0x1a59   :  { %v4680_v34 = vpop.eup %4679 }
0x1a5a   :  { %2715 = vrot.lane.b32.xlu0 %v4680_v34, %s4811_s0 }
0x1a5d   :  { %v4682_v15 = vpop.eup %4681 }
0x1a5e   :  { %2814 = vrot.lane.b32.xlu1 %v4682_v15, %s4811_s0 }
0x1acc   :  { %v2716_v62 = vpop.permute.xlu0 %2715 }
0x1acd   :  { %v2718_v17 = vmul.f32 %v2716_v62, %v2700_v58 }
0x1acf   :  { %2987 = vrot.lane.b32.xlu1 %v2718_v17, %s4812_s1 }
0x1ad0   :  { %v2815_v48 = vpop.permute.xlu1 %2814 }
0x1ad1   :  { %v2817_v52 = vmul.f32 %v2815_v48, %v2799_v8 }
0x1ad3   :  { %2889 = vrot.lane.b32.xlu0 %v2817_v52, %s4812_s1 }
0x1ad7   :  { %3160 = vperm.xlu0 %4568, %v5236_v35  }
0x1b41   :  { %v2988_v49 = vpop.permute.xlu1 %2987 }
0x1b42   :  { %4430 = vmatmul.mubr.msk.f32.vlgmr.msra.gmra.mxu1 %vm54_vm1, %v2988_v49 }
0x1b43   :  { %4444 = vmatpush3.msra.mxu1 %v5241_v41  ;;  %4451 = vmatprep.mubr.msk.f32.mxu1 %vm4809_vm0, %v4808_v0 }
0x1b44   :  { %4445 = vmatprep.subr.mxu1 %v4808_v0 }
0x1b45   :  { %4446 = vmatpush3.msra.mxu1 %v5247_v42  ;;  %v2890_v26 = vpop.permute.xlu0 %2889 }
0x1b46   :  { %4447 = vmatprep.subr.mxu1 %v4808_v0  ;;  %4419 = vmatmul.mubr.msk.f32.vlgmr.msra.gmra.mxu0 %vm54_vm1, %v2890_v26 }
0x1b47   :  { %4448 = vmatpush3.msra.mxu1 %v5251_v18  ;;  %4433 = vmatpush3.msra.mxu0 %v5410_v44 }
0x1b48   :  { %4449 = vmatprep.subr.mxu1 %v4808_v0  ;;  %4434 = vmatprep.subr.mxu0 %v4808_v0 }
0x1b49   :  { %4450 = vmatpush3.msra.mxu1 %v5255_v50  ;;  %4435 = vmatpush3.msra.mxu0 %v5418_v16 }
0x1b4a   :  { %4452 = vmatmul.mubr.msk.f32.vlgmr.msra.gmra.mxu1 %vm54_vm1, %v2890_v26  ;;  %4436 = vmatprep.subr.mxu0 %v4808_v0 }
0x1b4b   :  { %4437 = vmatpush3.msra.mxu0 %v5429_v39  ;;  %4465 = vmatprep.subr.mxu1 %v4808_v0 }
0x1b4c   :  { %4438 = vmatprep.subr.mxu0 %v4808_v0  ;;  %4466 = vmatpush3.msra.mxu1 %v5346_v19 }
0x1b4d   :  { %4439 = vmatpush3.msra.mxu0 %v5435_v40  ;;  %4467 = vmatprep.subr.mxu1 %v4808_v0 }
0x1b4e   :  { %4440 = vmatprep.mubr.msk.f32.mxu0 %vm4809_vm0, %v4808_v0  ;;  %4454 = vmatprep.subr.mxu0 %v4808_v0 }
0x1b4f   :  { %4468 = vmatpush3.msra.mxu1 %v5354_v21  ;;  %4473 = vmatprep.mubr.msk.f32.mxu1 %vm4809_vm0, %v4808_v0 }
0x1b50   :  { %4469 = vmatprep.subr.mxu1 %v4808_v0 }
0x1b51   :  { %4470 = vmatpush3.msra.mxu1 %v5360_v22 }
0x1b52   :  { %4471 = vmatprep.subr.mxu1 %v4808_v0  ;;  %v3161_v42 = vpop.permute.xlu0 %3160 }
0x1b53   :  { %4472 = vmatpush3.msra.mxu1 %v5364_v23  ;;  %v3163_v19 = vmul.f32 %v5301_v37, %v3161_v42 }
0x1b54   :  { %4487 = vmatprep.subr.mxu1 %v4808_v0 }
0x1c02   :  { %v5566_v35 = vpop.f32.mrf.mxu1 }
0x1c04   :  { %v4431_v41 = vpop.f32.mrf.mxu1 }
0x1c06   :  { %v2959_v18 = vpop.f32.mrf.mxu0 }
0x1c07   :  { %v2960_v50 = vadd.f32 %v2959_v18, %v5514_v3 }
0x1c08   :  { %v4420_v21 = vpop.f32.mrf.mxu0 }
0x1c09   :  { %v2963_v28 = vadd.f32 %v5372_v38, %v2960_v50 }
0x1c0a   :  { %v3230_v53 = vpop.f32.mrf.mxu1 }
0x1c0b   :  { %4683 = vtanh.f32 %v2963_v28  ;;  %v3234_v22 = vadd.f32 %v3230_v53, %v3163_v19  ;;  %v2964_v55 = vmul.f32 0.5, %v2963_v28 }
0x1c0c   :  { %v4453_v30 = vpop.f32.mrf.mxu1 }
0x1c0d   :  { %v3235_v23 = vadd.f32 %v5305_v54, %v3234_v22 }
0x1c0f   :  { %4685 = vtanh.f32 %v3235_v23  ;;  %v3236_v3 = vmul.f32 0.5, %v3235_v23 }
0x1c10   :  { %4687 = vtanh.f32 %v2964_v55 }
0x1c11   :  { %4689 = vtanh.f32 %v3236_v3 }
0x1c18   :  { %v4684_v20 = vpop.eup %4683 }
0x1c19   :  { %2971 = vrot.lane.b32.xlu1 %v4684_v20, %s4811_s0 }
0x1c1c   :  { %v4686_v24 = vpop.eup %4685 }
0x1c1d   :  { %3243 = vrot.lane.b32.xlu1 %v4686_v24, %s4811_s0  ;;  %v4688_v37 = vpop.eup %4687 }
0x1c1e   :  { %v2966_v4 = vmul.f32 0.5, %v4688_v37  ;;  %v4690_v5 = vpop.eup %4689 }
0x1c1f   :  { %v3238_v47 = vmul.f32 0.5, %v4690_v5 }
0x1c20   :  { %v2967_v32 = vadd.f32 0.5, %v2966_v4 }
0x1c21   :  { %v3239_v54 = vadd.f32 0.5, %v3238_v47 }
0x1c22   :  { %v2969_v58 = vmul.f32 %v2967_v32, %v5458_v61 }
0x1c23   :  { %v3241_v63 = vmul.f32 %v3239_v54, %v5525_v33 }
0x1c8b   :  { %v2972_v6 = vpop.permute.xlu1 %2971 }
0x1c8c   :  { %v2974_v56 = vmul.f32 %v2972_v6, %v2967_v32 }
0x1c8e   :  { %2976 = vrot.lane.b32.xlu0 %v2974_v56, %s4812_s1 }
0x1c8f   :  { %v3244_v2 = vpop.permute.xlu1 %3243 }
0x1c90   :  { %v3246_v57 = vmul.f32 %v3244_v2, %v3239_v54 }
0x1c92   :  { %3248 = vrot.lane.b32.xlu1 %v3246_v57, %s4812_s1 }
0x1d00   :  { %v2977_v59 = vpop.permute.xlu0 %2976 }
0x1d01   :  { %v5577_v43 = vadd.f32 %v2977_v59, %v2969_v58 }
0x1d03   :  { %4691 = vtanh.f32 %v5577_v43 }
0x1d04   :  { %v3249_v8 = vpop.permute.xlu1 %3248 }
0x1d05   :  { %v3251_v13 = vadd.f32 %v3249_v8, %v3241_v63 }
0x1d07   :  { %4693 = vtanh.f32 %v3251_v13 }
0x1d10   :  { %v4692_v10 = vpop.eup %4691 }
0x1d11   :  { %2982 = vrot.lane.b32.xlu0 %v4692_v10, %s4811_s0  ;;  %v3602_v10 = vld [vmem:[#allocation5 + $0xbc] sm:$0xff] }
0x1d14   :  { %v4694_v12 = vpop.eup %4693 }
0x1d15   :  { %3254 = vrot.lane.b32.xlu1 %v4694_v12, %s4811_s0  ;;  %v3601_v12 = vld [vmem:[#allocation5 + $0xb4] sm:$0xff] }
0x1d83   :  { %v2983_v1 = vpop.permute.xlu0 %2982 }
0x1d84   :  { %v2985_v45 = vmul.f32 %v2983_v1, %v2967_v32  ;;  %v3599_v1 = vld [vmem:[#allocation5 + $0xa4] sm:$0xff] }
0x1d86   :  { %3062 = vrot.lane.b32.xlu0 %v2985_v45, %s4812_s1 }
0x1d87   :  { %v3255_v61 = vpop.permute.xlu1 %3254 }
0x1d88   :  { %v3257_v60 = vmul.f32 %v3255_v61, %v3239_v54  ;;  %v3699_v61 = vld [vmem:[#allocation5 + $0x13d] sm:$0xff] }
0x1d8a   :  { %3329 = vrot.lane.b32.xlu1 %v3257_v60, %s4812_s1  ;;  %v3698_v60 = vld [vmem:[#allocation5 + $0x135] sm:$0xff] }
0x1df8   :  { %v3063_v34 = vpop.permute.xlu0 %3062 }
0x1df9   :  { %4441 = vmatmul.mubr.msk.f32.vlgmr.msra.gmra.mxu0 %vm54_vm1, %v3063_v34 }
0x1dfa   :  { %4455 = vmatpush3.msra.mxu0 %v5393_v14  ;;  %4462 = vmatprep.mubr.msk.f32.mxu0 %vm4809_vm0, %v4808_v0 }
0x1dfb   :  { %4456 = vmatprep.subr.mxu0 %v4808_v0 }
0x1dfc   :  { %4457 = vmatpush3.msra.mxu0 %v5399_v9  ;;  %v3330_v33 = vpop.permute.xlu1 %3329 }
0x1dfd   :  { %4458 = vmatprep.subr.mxu0 %v4808_v0  ;;  %4474 = vmatmul.mubr.msk.f32.vlgmr.msra.gmra.mxu1 %vm54_vm1, %v3330_v33  ;;  %v3696_v33 = vld [vmem:[#allocation5 + $0x125] sm:$0xff] }
0x1dfe   :  { %4459 = vmatpush3.msra.mxu0 %v5407_v11  ;;  %4488 = vmatpush3.msra.mxu1 %v5410_v44 }
0x1dff   :  { %4460 = vmatprep.subr.mxu0 %v4808_v0  ;;  %4489 = vmatprep.subr.mxu1 %v4808_v0 }
0x1e00   :  { %4461 = vmatpush3.msra.mxu0 %v5415_v46  ;;  %4490 = vmatpush3.msra.mxu1 %v5418_v16 }
0x1e01   :  { %4463 = vmatmul.mubr.msk.f32.vlgmr.msra.gmra.mxu0 %vm54_vm1, %v3063_v34  ;;  %4476 = vmatprep.subr.mxu0 %v4808_v0  ;;  %v3697_v34 = vld [vmem:[#allocation5 + $0x12d] sm:$0xff] }
0x1e02   :  { %4477 = vmatpush3.msra.mxu0 %v5278_v25  ;;  %4484 = vmatprep.mubr.msk.f32.mxu0 %vm4809_vm0, %v4808_v0 }
0x1e03   :  { %4478 = vmatprep.subr.mxu0 %v4808_v0  ;;  %4491 = vmatprep.subr.mxu1 %v4808_v0 }
0x1e04   :  { %4479 = vmatpush3.msra.mxu0 %v5285_v27  ;;  %4492 = vmatpush3.msra.mxu1 %v5429_v39 }
0x1e05   :  { %4480 = vmatprep.subr.mxu0 %v4808_v0  ;;  %4493 = vmatprep.subr.mxu1 %v4808_v0 }
0x1e06   :  { %4481 = vmatpush3.msra.mxu0 %v5292_v29  ;;  %4494 = vmatpush3.msra.mxu1 %v5435_v40 }
0x1e07   :  { %4482 = vmatprep.subr.mxu0 %v4808_v0  ;;  %4495 = vmatprep.mubr.msk.f32.mxu1 %vm4809_vm0, %v4808_v0 }
0x1e08   :  { %4483 = vmatpush3.msra.mxu0 %v5297_v31  ;;  %4509 = vmatprep.subr.mxu1 %v4808_v0 }
0x1e09   :  { %4498 = vmatprep.subr.mxu0 %v4808_v0 }
0x1eb9   :  { %v3132_v25 = vpop.f32.mrf.mxu0 }
0x1eba   :  { %v3133_v27 = vadd.f32 %v3132_v25, %v5566_v35  ;;  %v3695_v25 = vld [vmem:[#allocation5 + $0x11d] sm:$0xff] }
0x1ebb   :  { %v4442_v14 = vpop.f32.mrf.mxu0 }
0x1ebc   :  { %v3136_v9 = vadd.f32 %v5445_v36, %v3133_v27  ;;  %v3694_v27 = vld [vmem:[#allocation5 + $0x115] sm:$0xff] }
0x1ebd   :  { %v3399_v29 = vpop.f32.mrf.mxu1 }
0x1ebe   :  { %4695 = vtanh.f32 %v3136_v9  ;;  %v3137_v15 = vmul.f32 0.5, %v3136_v9  ;;  %v3693_v9 = vld [vmem:[#allocation5 + $0x10d] sm:$0xff] }
0x1ebf   :  { %v4475_v11 = vpop.f32.mrf.mxu1 }
0x1ec0   :  { %v3692_v11 = vld [vmem:[#allocation5 + $0x105] sm:$0xff] }
0x1ec1   :  { %v3324_v44 = vpop.f32.mrf.mxu0 }
0x1ec2   :  { %v3400_v46 = vadd.f32 %v3399_v29, %v3324_v44  ;;  %v3691_v44 = vld [vmem:[#allocation5 + $0xfd] sm:$0xff] }
0x1ec3   :  { %v4464_v16 = vpop.f32.mrf.mxu0 }
0x1ec4   :  { %v3403_v39 = vadd.f32 %v5372_v38, %v3400_v46  ;;  %v3690_v46 = vld [vmem:[#allocation5 + $0xf5] sm:$0xff]  ;;  %v3689_v16 = vld [vmem:[#allocation5 + $0xed] sm:$0xff] }
0x1ec6   :  { %4697 = vtanh.f32 %v3403_v39  ;;  %v3404_v51 = vmul.f32 0.5, %v3403_v39  ;;  %v3688_v39 = vld [vmem:[#allocation5 + $0xe5] sm:$0xff] }
0x1ec7   :  { %4699 = vtanh.f32 %v3137_v15  ;;  %v3686_v15 = vld [vmem:[#allocation5 + $0xd5] sm:$0xff] }
0x1ec8   :  { %4701 = vtanh.f32 %v3404_v51  ;;  %v3685_v51 = vld [vmem:[#allocation5 + $0xcd] sm:$0xff] }
0x1ecb   :  { %v4696_v31 = vpop.eup %4695 }
0x1ecc   :  { %3144 = vrot.lane.b32.xlu0 %v4696_v31, %s4811_s0  ;;  %v3687_v31 = vld [vmem:[#allocation5 + $0xdd] sm:$0xff] }
0x1ed3   :  { %v4698_v40 = vpop.eup %4697 }
0x1ed4   :  { %3411 = vrot.lane.b32.xlu1 %v4698_v40, %s4811_s0  ;;  %v4700_v62 = vpop.eup %4699 }
0x1ed5   :  { %v3139_v17 = vmul.f32 0.5, %v4700_v62  ;;  %v4702_v52 = vpop.eup %4701  ;;  %v3684_v62 = vld [vmem:[#allocation5 + $0xc5] sm:$0xff] }
0x1ed6   :  { %v3406_v38 = vmul.f32 0.5, %v4702_v52 }
0x1ed7   :  { %v3140_v48 = vadd.f32 0.5, %v3139_v17  ;;  %v3833_v17 = vld [vmem:[#allocation5 + $0xc4] ss:$0 sm:$0xff] }
0x1ed8   :  { %v3407_v35 = vadd.f32 0.5, %v3406_v38  ;;  %v3835_v38 = vld [vmem:[#allocation5 + $0x145] ss:$0 sm:$0xff] }
0x1ed9   :  { %v3142_v18 = vmul.f32 %v3140_v48, %v5521_v7 }
0x1eda   :  { %v3409_v21 = vmul.f32 %v3407_v35, %v5577_v43 }
0x1f3e   :  { %v3145_v49 = vpop.permute.xlu0 %3144 }
0x1f3f   :  { %v3147_v26 = vmul.f32 %v3145_v49, %v3140_v48 }
0x1f41   :  { %3149 = vrot.lane.b32.xlu0 %v3147_v26, %s4812_s1 }
0x1f46   :  { %v3412_v41 = vpop.permute.xlu1 %3411 }
0x1f47   :  { %v3414_v42 = vmul.f32 %v3412_v41, %v3407_v35 }
0x1f49   :  { %3416 = vrot.lane.b32.xlu1 %v3414_v42, %s4812_s1 }
0x1fb3   :  { %v3150_v50 = vpop.permute.xlu0 %3149 }
0x1fb4   :  { %v3152_v19 = vadd.f32 %v3150_v50, %v3142_v18 }
0x1fb6   :  { %4703 = vtanh.f32 %v3152_v19 }
0x1fbb   :  { %v3417_v28 = vpop.permute.xlu1 %3416 }
0x1fbc   :  { %v3419_v53 = vadd.f32 %v3417_v28, %v3409_v21 }
0x1fbe   :  { %4705 = vtanh.f32 %v3419_v53 }
0x1fc3   :  { %v4704_v22 = vpop.eup %4703 }
0x1fc4   :  { %3155 = vrot.lane.b32.xlu0 %v4704_v22, %s4811_s0 }
0x1fcb   :  { %v4706_v30 = vpop.eup %4705 }
0x1fcc   :  { %3422 = vrot.lane.b32.xlu1 %v4706_v30, %s4811_s0 }
0x2036   :  { %v3156_v23 = vpop.permute.xlu0 %3155 }
0x2037   :  { %v3158_v20 = vmul.f32 %v3156_v23, %v3140_v48 }
0x2039   :  { %3427 = vrot.lane.b32.xlu0 %v3158_v20, %s4812_s1 }
0x203e   :  { %v3423_v24 = vpop.permute.xlu1 %3422 }
0x203f   :  { %v3425_v7 = vmul.f32 %v3423_v24, %v3407_v35 }
0x2041   :  { %3502 = vrot.lane.b32.xlu1 %v3425_v7, %s4812_s1 }
0x20ab   :  { %v3428_v55 = vpop.permute.xlu0 %3427 }
0x20ac   :  { %4485 = vmatmul.mubr.msk.f32.vlgmr.msra.gmra.mxu0 %vm54_vm1, %v3428_v55 }
0x20ad   :  { %4506 = vmatprep.mubr.msk.f32.mxu0 %vm4809_vm0, %v4808_v0  ;;  %4499 = vmatpush3.msra.mxu0 %v3602_v10 }
0x20ae   :  { %4500 = vmatprep.subr.mxu0 %v4808_v0 }
0x20af   :  { %4501 = vmatpush3.msra.mxu0 %v3601_v12 }
0x20b0   :  { %4502 = vmatprep.subr.mxu0 %v4808_v0 }
0x20b3   :  { %v3503_v3 = vpop.permute.xlu1 %3502 }
0x20b4   :  { %4496 = vmatmul.mubr.msk.f32.vlgmr.msra.gmra.mxu1 %vm54_vm1, %v3503_v3 }
0x20b5   :  { %4541 = vmatprep.mubr.msk.f32.mxu1 %vm4809_vm0, %v4808_v0  ;;  %4510 = vmatpush3.msra.mxu1 %v3699_v61 }
0x20b6   :  { %4511 = vmatprep.subr.mxu1 %v4808_v0 }
0x20b7   :  { %4512 = vmatpush3.msra.mxu1 %v3698_v60 }
0x20b8   :  { %4513 = vmatprep.subr.mxu1 %v4808_v0 }
0x20b9   :  { %4514 = vmatpush3.msra.mxu1 %v3697_v34 }
0x20ba   :  { %4515 = vmatprep.subr.mxu1 %v4808_v0 }
0x20bb   :  { %4516 = vmatpush3.msra.mxu1 %v3696_v33 }
0x20bc   :  { %4517 = vmatprep.subr.mxu1 %v4808_v0 }
0x20bd   :  { %4518 = vmatpush3.msra.mxu1 %v3695_v25 }
0x20be   :  { %4519 = vmatprep.subr.mxu1 %v4808_v0 }
0x20bf   :  { %4520 = vmatpush3.msra.mxu1 %v3694_v27 }
0x20c0   :  { %4521 = vmatprep.subr.mxu1 %v4808_v0 }
0x20c1   :  { %4522 = vmatpush3.msra.mxu1 %v3693_v9 }
0x20c2   :  { %4523 = vmatprep.subr.mxu1 %v4808_v0 }
0x20c3   :  { %4524 = vmatpush3.msra.mxu1 %v3692_v11 }
0x20c4   :  { %4525 = vmatprep.subr.mxu1 %v4808_v0 }
0x20c5   :  { %4526 = vmatpush3.msra.mxu1 %v3691_v44 }
0x20c6   :  { %4527 = vmatprep.subr.mxu1 %v4808_v0 }
0x20c7   :  { %4528 = vmatpush3.msra.mxu1 %v3690_v46 }
0x20c8   :  { %4529 = vmatprep.subr.mxu1 %v4808_v0 }
0x20c9   :  { %4530 = vmatpush3.msra.mxu1 %v3689_v16 }
0x20ca   :  { %4531 = vmatprep.subr.mxu1 %v4808_v0 }
0x20cb   :  { %4532 = vmatpush3.msra.mxu1 %v3688_v39 }
0x20cc   :  { %4533 = vmatprep.subr.mxu1 %v4808_v0 }
0x20cd   :  { %4534 = vmatpush3.msra.mxu1 %v3687_v31 }
0x20ce   :  { %4535 = vmatprep.subr.mxu1 %v4808_v0 }
0x20cf   :  { %4536 = vmatpush3.msra.mxu1 %v3686_v15 }
0x20d0   :  { %4537 = vmatprep.subr.mxu1 %v4808_v0 }
0x20d1   :  { %4538 = vmatpush3.msra.mxu1 %v3685_v51 }
0x20d2   :  { %4539 = vmatprep.subr.mxu1 %v4808_v0 }
0x20d3   :  { %4540 = vmatpush3.msra.mxu1 %v3684_v62 }
0x216c   :  { %v3497_v37 = vpop.f32.mrf.mxu0 }
0x216e   :  { %v4486_v4 = vpop.f32.mrf.mxu0 }
0x2174   :  { %v3572_v5 = vpop.f32.mrf.mxu1 }
0x2175   :  { %v3573_v32 = vadd.f32 %v3572_v5, %v3497_v37 }
0x2176   :  { %v4497_v47 = vpop.f32.mrf.mxu1 }
0x2177   :  { %v3576_v6 = vadd.f32 %v5445_v36, %v3573_v32  ;;  %v3600_v36 = vld [vmem:[#allocation5 + $0xac] sm:$0xff] }
0x2178   :  { %4503 = vmatpush3.msra.mxu0 %v3600_v36 }
0x2179   :  { %4707 = vtanh.f32 %v3576_v6  ;;  %v3577_v54 = vmul.f32 0.5, %v3576_v6  ;;  %4504 = vmatprep.subr.mxu0 %v4808_v0 }
0x217a   :  { %4505 = vmatpush3.msra.mxu0 %v3599_v1 }
0x217b   :  { %4709 = vtanh.f32 %v3577_v54 }
0x2186   :  { %v4708_v56 = vpop.eup %4707 }
0x2187   :  { %3584 = vrot.lane.b32.xlu0 %v4708_v56, %s4811_s0 }
0x2188   :  { %v4710_v2 = vpop.eup %4709 }
0x2189   :  { %v3579_v57 = vmul.f32 0.5, %v4710_v2 }
0x218b   :  { %v3580_v58 = vadd.f32 0.5, %v3579_v57 }
0x218d   :  { %v3582_v63 = vmul.f32 %v3580_v58, %v3152_v19 }
0x21f9   :  { %v3585_v59 = vpop.permute.xlu0 %3584 }
0x21fa   :  { %v3587_v43 = vmul.f32 %v3585_v59, %v3580_v58 }
0x21fc   :  { %3589 = vrot.lane.b32.xlu1 %v3587_v43, %s4812_s1 }
0x226e   :  { %v3590_v8 = vpop.permute.xlu1 %3589 }
0x226f   :  { %v3592_v13 = vadd.f32 %v3590_v8, %v3582_v63 }
0x2271   :  { %4711 = vtanh.f32 %v3592_v13 }
0x227e   :  { %v4712_v45 = vpop.eup %4711 }
0x227f   :  { %3595 = vrot.lane.b32.xlu0 %v4712_v45, %s4811_s0 }
0x22f1   :  { %v3596_v14 = vpop.permute.xlu0 %3595 }
0x22f2   :  { %v3598_v29 = vmul.f32 %v3596_v14, %v3580_v58 }
0x22f4   :  { %3609 = vrot.lane.b32.xlu1 %v3598_v29, %s4812_s1 }
0x2366   :  { %v3610_v40 = vpop.permute.xlu1 %3609 }
0x2367   :  { %4507 = vmatmul.mubr.msk.f32.vlgmr.msra.gmra.mxu0 %vm54_vm1, %v3610_v40 }
0x2427   :  { %v3679_v48 = vpop.f32.mrf.mxu0 }
0x2428   :  { %v3680_v52 = vadd.f32 %v3833_v17, %v3679_v48 }
0x2429   :  { %v4508_v49 = vpop.f32.mrf.mxu0 }
0x242a   :  { %v3683_v26 = vmax.f32 %v3680_v52, 0.0 }
0x242c   :  { %4542 = vmatmul.mubr.f32.vlgmr.msra.gmra.mxu1 %v3683_v26 }
0x24ec   :  { %v3771_v35 = vpop.f32.mrf.mxu1 }
0x24ed   :  { %v3772_v41 = vadd.f32 %v3835_v38, %v3771_v35 }
0x24ee   :  { %v4543_v42 = vpop.f32.mrf.mxu1 }
0x24ef   :  { %3775 = vst [vmem:[#allocation7] sm:$0x3] %v3772_v41 }
0x24f0   :  { %4789 = shalt.err (!%p4786_p0)
}
0x24f1   :  { %3785 = dma.vmem_to_hbm [thread:$0]  %s3783_s22, 32, %s5666_s2, [#allocation4]  }
0x24f2   :  { %4802 = dma.done.wait [#allocation4], 32  }
0x24f3   :  { %4803 = vsyncadd [#allocation4], 4294967264 }
0x24f4   :  { %3789 = vsyncpa [#allocation3], 1 }
0x24f5   :  { %3790 = vsyncpa [#allocation6], 1 }
0x24f6   :  { %3791 = vsyncpa [#allocation4], 1 }

</bundles_post_ra>
